<compile_context>
chip_gen: v5e
topology: v5e:2x2
jax: 0.10.0
libtpu: 0.0.40
codegen_flags: <defaults>
</compile_context>

<pallas_src>
import functools

import jax
import jax.numpy as jnp
from jax.experimental import pallas as pl
from jax.experimental.pallas import tpu as pltpu


# ------------------------------ tiling helpers -------------------------------

def _pick_tile(dim, cap, align):
    """Largest tile <= cap that divides `dim` and is a multiple of `align`
    (falls back to the full dim for small dims)."""
    if dim <= cap:
        return dim
    t = (cap // align) * align
    while t >= align:
        if dim % t == 0:
            return t
        t -= align
    return dim


def _compiler_params(dims, vmem_bytes_estimate):
    kwargs = {"dimension_semantics": dims}
    # Only raise the scoped-VMEM limit when the tiles actually need it.
    # TODO(synk): on v7x (64 MiB physical) prefer re-deriving smaller tiles /
    # adding a K grid axis instead of raising the limit further.
    if vmem_bytes_estimate > 28 * 1024 * 1024:
        kwargs["vmem_limit_bytes"] = min(int(vmem_bytes_estimate * 1.5),
                                         60 * 1024 * 1024)
    return pltpu.CompilerParams(**kwargs)


# ----------------------------- fused linear kernels --------------------------
# y = act( LN?(x) @ W + b ) + residual?
# Activation-resident variant: grid (M//tm, N//tn), i outer ("parallel"),
# j inner ("arbitrary").  LN (+ cast to compute dtype) is done once per row
# tile at j == 0 into a persistent VMEM scratch.

def _linear_kernel(*refs, activation, has_ln, has_res, eps, compute_dtype):
    refs = list(refs)
    xs_ref = refs.pop()          # VMEM scratch (tm, K) in compute dtype
    o_ref = refs.pop()
    x_ref = refs.pop(0)
    if has_ln:
        g_ref = refs.pop(0)
        bln_ref = refs.pop(0)
    w_ref = refs.pop(0)
    b_ref = refs.pop(0)
    r_ref = refs.pop(0) if has_res else None

    @pl.when(pl.program_id(1) == 0)
    def _():
        x = x_ref[...].astype(jnp.float32)                    # (tm, K)
        if has_ln:
            mu = jnp.mean(x, axis=-1, keepdims=True)
            xc = x - mu
            var = jnp.mean(xc * xc, axis=-1, keepdims=True)
            x = xc * jax.lax.rsqrt(var + eps)
            x = (x * g_ref[...].astype(jnp.float32)
                 + bln_ref[...].astype(jnp.float32))
        xs_ref[...] = x.astype(compute_dtype)

    acc = jnp.dot(xs_ref[...], w_ref[...].astype(compute_dtype),
                  preferred_element_type=jnp.float32)          # (tm, tn)
    acc = acc + b_ref[...].astype(jnp.float32)
    if activation == "gelu":
        acc = jax.nn.gelu(acc)
    if has_res:
        acc = acc + r_ref[...].astype(jnp.float32)
    o_ref[...] = acc.astype(o_ref.dtype)


# Weight-resident variant (for the logits GEMM): grid (N//tn, M//tm), the big
# weight column block stays resident across the inner M loop.  No LN/residual.

def _linear_kernel_wres(x_ref, w_ref, b_ref, o_ref, *, activation,
                        compute_dtype):
    acc = jnp.dot(x_ref[...].astype(compute_dtype),
                  w_ref[...].astype(compute_dtype),
                  preferred_element_type=jnp.float32)
    acc = acc + b_ref[...].astype(jnp.float32)
    if activation == "gelu":
        acc = jax.nn.gelu(acc)
    o_ref[...] = acc.astype(o_ref.dtype)


def linear(x, w, b, *, ln=None, activation=None, residual=None,
           tm=256, tn=256, eps=1e-5, compute_dtype=jnp.bfloat16,
           weight_resident=False):
    """y = act(LN?(x) @ w + b) + residual?, tiled over (M, N); K kept whole."""
    M, K = x.shape
    N = w.shape[1]
    row_align = 16 if x.dtype == jnp.bfloat16 else 8
    tm = _pick_tile(M, tm, row_align)
    tn = _pick_tile(N, tn, 128)

    xb = x.dtype.itemsize
    wb = w.dtype.itemsize
    cb = jnp.dtype(compute_dtype).itemsize
    cost = pl.CostEstimate(
        flops=2 * M * K * N,
        transcendentals=M * N if activation == "gelu" else 0,
        bytes_accessed=(M * K * xb + K * N * wb + M * N * xb
                        + (M * N * xb if residual is not None else 0)))
    vmem_est = 2 * (tm * K * xb + K * tn * wb + (1 + tm) * tn * xb) + tm * K * cb
    if residual is not None:
        vmem_est += 2 * tm * tn * xb

    if weight_resident:
        assert ln is None and residual is None
        kernel = functools.partial(_linear_kernel_wres, activation=activation,
                                   compute_dtype=compute_dtype)
        return pl.pallas_call(
            kernel,
            out_shape=jax.ShapeDtypeStruct((M, N), x.dtype),
            grid=(N // tn, M // tm),
            in_specs=[pl.BlockSpec((tm, K), lambda j, i: (i, 0)),
                      pl.BlockSpec((K, tn), lambda j, i: (0, j)),
                      pl.BlockSpec((1, tn), lambda j, i: (0, j))],
            out_specs=pl.BlockSpec((tm, tn), lambda j, i: (i, j)),
            compiler_params=_compiler_params(("parallel", "arbitrary"),
                                             vmem_est),
            cost_estimate=cost,
        )(x, w, b.reshape(1, N))

    in_specs = [pl.BlockSpec((tm, K), lambda i, j: (i, 0))]
    args = [x]
    if ln is not None:
        g, bln = ln
        in_specs += [pl.BlockSpec((1, K), lambda i, j: (0, 0)),
                     pl.BlockSpec((1, K), lambda i, j: (0, 0))]
        args += [g.reshape(1, K), bln.reshape(1, K)]
    in_specs += [pl.BlockSpec((K, tn), lambda i, j: (0, j)),
                 pl.BlockSpec((1, tn), lambda i, j: (0, j))]
    args += [w, b.reshape(1, N)]
    if residual is not None:
        in_specs.append(pl.BlockSpec((tm, tn), lambda i, j: (i, j)))
        args.append(residual)

    kernel = functools.partial(
        _linear_kernel, activation=activation, has_ln=ln is not None,
        has_res=residual is not None, eps=eps, compute_dtype=compute_dtype)

    return pl.pallas_call(
        kernel,
        out_shape=jax.ShapeDtypeStruct((M, N), x.dtype),
        grid=(M // tm, N // tn),
        in_specs=in_specs,
        out_specs=pl.BlockSpec((tm, tn), lambda i, j: (i, j)),
        scratch_shapes=[pltpu.VMEM((tm, K), compute_dtype)],
        compiler_params=_compiler_params(("parallel", "arbitrary"), vmem_est),
        cost_estimate=cost,
    )(*args)


# ------------------------------ attention kernel ----------------------------
# Flash-style causal MHA.  Grid = (batch, query-tile, kv-tile) with the kv axis
# last ("arbitrary").  Q/K/V are column blocks of the fused (B*S, 3E) QKV
# tensor (no host splits / transposes).  All heads are computed per step with
# batched einsums; online-softmax stats live in f32 VMEM scratch; fully-masked
# KV blocks are skipped (causal block skipping).

def _attention_kernel(q_ref, k_ref, v_ref, o_ref, m_sc, l_sc, acc_sc, *,
                      H, Dh, tq, tk, scale, compute_dtype, approx_recip):
    qi = pl.program_id(1)
    ki = pl.program_id(2)
    nk = pl.num_programs(2)

    @pl.when(ki == 0)
    def _():
        m_sc[...] = jnp.full_like(m_sc, -jnp.inf)
        l_sc[...] = jnp.zeros_like(l_sc)
        acc_sc[...] = jnp.zeros_like(acc_sc)

    # Causal block skipping: compute only if this KV block intersects the mask.
    @pl.when(ki * tk <= qi * tq + (tq - 1))
    def _():
        # Fold the softmax scale into Q once (f32), then cast for the MXU.
        q = (q_ref[...].astype(jnp.float32) * scale)
        q = q.reshape(tq, H, Dh).astype(compute_dtype)
        k = k_ref[...].reshape(tk, H, Dh).astype(compute_dtype)
        v = v_ref[...].reshape(tk, H, Dh).astype(compute_dtype)

        s = jnp.einsum("qhd,khd->hqk", q, k,
                       preferred_element_type=jnp.float32)     # (H, tq, tk)
        q_pos = qi * tq + jax.lax.broadcasted_iota(jnp.int32, (1, tq, tk), 1)
        k_pos = ki * tk + jax.lax.broadcasted_iota(jnp.int32, (1, tq, tk), 2)
        # Mask stays in f32: -1e30 is safe only because scores are f32.
        s = jnp.where(k_pos <= q_pos, s, jnp.float32(-1e30))

        m_prev = m_sc[...]
        m_new = jnp.maximum(m_prev, jnp.max(s, axis=-1, keepdims=True))
        alpha = jnp.exp(m_prev - m_new)
        p = jnp.exp(s - m_new)
        l_sc[...] = alpha * l_sc[...] + jnp.sum(p, axis=-1, keepdims=True)
        pv = jnp.einsum("hqk,khd->hqd", p.astype(compute_dtype), v,
                        preferred_element_type=jnp.float32)    # (H, tq, Dh)
        acc_sc[...] = alpha * acc_sc[...] + pv
        m_sc[...] = m_new

    @pl.when(ki == nk - 1)
    def _():
        if approx_recip:
            inv_l = pl.reciprocal(l_sc[...], approx=True)
        else:
            inv_l = 1.0 / l_sc[...]
        o = acc_sc[...] * inv_l                                 # (H, tq, Dh)
        o_ref[...] = jnp.transpose(o, (1, 0, 2)).reshape(tq, H * Dh).astype(
            o_ref.dtype)


def attention(qkv, B, S, H, *, tq=256, tk=256, compute_dtype=jnp.bfloat16):
    """Causal MHA reading directly from the fused (B*S, 3E) QKV tensor."""
    M, threeE = qkv.shape
    E = threeE // 3
    Dh = E // H
    align = 16 if qkv.dtype == jnp.bfloat16 else 8
    tq = _pick_tile(S, tq, align)
    tk = _pick_tile(S, tk, align)
    nq = S // tq
    nk = S // tk
    scale = 1.0 / (Dh ** 0.5)
    approx_recip = compute_dtype != jnp.float32

    kernel = functools.partial(_attention_kernel, H=H, Dh=Dh, tq=tq, tk=tk,
                               scale=scale, compute_dtype=compute_dtype,
                               approx_recip=approx_recip)
    q_spec = pl.BlockSpec((tq, E), lambda b, qi, ki: (b * nq + qi, 0))
    k_spec = pl.BlockSpec((tk, E), lambda b, qi, ki: (b * nk + ki, 1))
    v_spec = pl.BlockSpec((tk, E), lambda b, qi, ki: (b * nk + ki, 2))
    o_spec = pl.BlockSpec((tq, E), lambda b, qi, ki: (b * nq + qi, 0))

    return pl.pallas_call(
        kernel,
        out_shape=jax.ShapeDtypeStruct((M, E), qkv.dtype),
        grid=(B, nq, nk),
        in_specs=[q_spec, k_spec, v_spec],
        out_specs=o_spec,
        scratch_shapes=[pltpu.VMEM((H, tq, 1), jnp.float32),
                        pltpu.VMEM((H, tq, 1), jnp.float32),
                        pltpu.VMEM((H, tq, Dh), jnp.float32)],
        compiler_params=pltpu.CompilerParams(
            dimension_semantics=("parallel", "parallel", "arbitrary")),
    )(qkv, qkv, qkv)


# ------------------------------ Model (glue) -------------------------------

def init_params(key, vocab_size, embed_size, num_heads, num_layers,
                mlp_ratio=4, dtype=jnp.float32):
    del num_heads
    keys = jax.random.split(key, num_layers * 4 + 2)

    def nrm(k, shape, scale=0.02):
        return (scale * jax.random.normal(k, shape)).astype(dtype)

    hidden = mlp_ratio * embed_size
    params = {"embedding": nrm(keys[0], (vocab_size, embed_size))}
    blocks = []
    ki = 1
    for _ in range(num_layers):
        blocks.append({
            "ln1_g": jnp.ones((embed_size,), dtype),
            "ln1_b": jnp.zeros((embed_size,), dtype),
            "w_qkv": nrm(keys[ki + 0], (embed_size, 3 * embed_size)),
            "b_qkv": jnp.zeros((3 * embed_size,), dtype),
            "w_proj": nrm(keys[ki + 1], (embed_size, embed_size)),
            "b_proj": jnp.zeros((embed_size,), dtype),
            "ln2_g": jnp.ones((embed_size,), dtype),
            "ln2_b": jnp.zeros((embed_size,), dtype),
            "w_fc1": nrm(keys[ki + 2], (embed_size, hidden)),
            "b_fc1": jnp.zeros((hidden,), dtype),
            "w_fc2": nrm(keys[ki + 3], (hidden, embed_size)),
            "b_fc2": jnp.zeros((embed_size,), dtype),
        })
        ki += 4
    params["blocks"] = blocks
    params["w_out"] = nrm(keys[ki], (embed_size, vocab_size))
    params["b_out"] = jnp.zeros((vocab_size,), dtype)
    return params


def transformer_block_fwd(x2d, blk, B, S, H, compute_dtype):
    # attention sub-block (pre-LN fused into the QKV matmul)
    qkv = linear(x2d, blk["w_qkv"], blk["b_qkv"],
                 ln=(blk["ln1_g"], blk["ln1_b"]), compute_dtype=compute_dtype)
    o = attention(qkv, B, S, H, compute_dtype=compute_dtype)
    x2d = linear(o, blk["w_proj"], blk["b_proj"],
                 residual=x2d, compute_dtype=compute_dtype)
    # MLP sub-block (pre-LN fused into FC1, residual fused into FC2)
    h2 = linear(x2d, blk["w_fc1"], blk["b_fc1"], activation="gelu", tn=512,
                ln=(blk["ln2_g"], blk["ln2_b"]), compute_dtype=compute_dtype)
    x2d = linear(h2, blk["w_fc2"], blk["b_fc2"], tn=512,
                 residual=x2d, compute_dtype=compute_dtype)
    return x2d


def gpt2_forward(params, tokens, num_heads, compute_dtype=jnp.bfloat16):
    B, S = tokens.shape
    # TODO(synk): embedding gather stays as host-side jnp.take (glue).
    emb = jnp.take(params["embedding"], tokens, axis=0)   # (B, S, E)
    E = emb.shape[-1]
    x = emb.reshape(B * S, E)
    for blk in params["blocks"]:
        x = transformer_block_fwd(x, blk, B, S, num_heads, compute_dtype)

    # Vocab projection: pad V to a multiple of 128 (lane-dense tiles) and use
    # the weight-resident grid so the big (E, V) weight is streamed only once.
    w_out, b_out = params["w_out"], params["b_out"]
    V = w_out.shape[1]
    Vp = ((V + 127) // 128) * 128
    if Vp != V:
        w_out = jnp.pad(w_out, ((0, 0), (0, Vp - V)))
        b_out = jnp.pad(b_out, ((0, Vp - V),))
    logits = linear(x, w_out, b_out, tn=512, weight_resident=True,
                    compute_dtype=compute_dtype)
    if Vp != V:
        logits = logits[:, :V]
    return logits.reshape(B, S, -1)


# --------------------------- Pure-JAX reference -----------------------------

def gpt2_reference(params, tokens, num_heads):
    B, S = tokens.shape
    emb = jnp.take(params["embedding"], tokens, axis=0)
    E = emb.shape[-1]
    x = emb.reshape(B * S, E)

    def ln(t, g, b):
        mu = jnp.mean(t, -1, keepdims=True)
        var = jnp.mean((t - mu) ** 2, -1, keepdims=True)
        return (t - mu) * jax.lax.rsqrt(var + 1e-5) * g + b

    Dh = E // num_heads
    for blk in params["blocks"]:
        h = ln(x, blk["ln1_g"], blk["ln1_b"])
        qkv = h @ blk["w_qkv"] + blk["b_qkv"]
        q, k, v = jnp.split(qkv, 3, axis=-1)

        def th(t):
            return t.reshape(B, S, num_heads, Dh).transpose(0, 2, 1, 3)

        q, k, v = th(q), th(k), th(v)
        s = jnp.einsum("bhqd,bhkd->bhqk", q, k) / (Dh ** 0.5)
        row = jax.lax.broadcasted_iota(jnp.int32, (S, S), 0)
        col = jax.lax.broadcasted_iota(jnp.int32, (S, S), 1)
        s = jnp.where(col <= row, s, -1e30)
        p = jax.nn.softmax(s, axis=-1)
        o = jnp.einsum("bhqk,bhkd->bhqd", p, v)
        o = o.transpose(0, 2, 1, 3).reshape(B * S, E)
        x = x + o @ blk["w_proj"] + blk["b_proj"]
        h2 = ln(x, blk["ln2_g"], blk["ln2_b"])
        h2 = jax.nn.gelu(h2 @ blk["w_fc1"] + blk["b_fc1"])
        x = x + h2 @ blk["w_fc2"] + blk["b_fc2"]
    logits = x @ params["w_out"] + params["b_out"]
    return logits.reshape(B, S, -1)


if __name__ == "__main__":
    # Small, kernel-friendly config consistent with the module's forward.
    VOCAB, EMBED, HEADS, LAYERS = 512, 128, 4, 2
    B, S = 2, 16

    key = jax.random.PRNGKey(0)
    pkey, tkey = jax.random.split(key)
    params_f32 = init_params(pkey, VOCAB, EMBED, HEADS, LAYERS)
    params_bf16 = jax.tree_util.tree_map(
        lambda p: p.astype(jnp.bfloat16), params_f32)
    tokens = jax.random.randint(tkey, (B, S), 0, VOCAB, dtype=jnp.int32)

    ref = jax.block_until_ready(gpt2_reference(params_f32, tokens, HEADS))

    # f32 path: tight correctness check against the pure-JAX reference
    # (exact softmax reciprocal on this path; approx recip on the bf16 path).
    fwd_f32 = jax.jit(functools.partial(
        gpt2_forward, num_heads=HEADS, compute_dtype=jnp.float32))
    out = jax.block_until_ready(fwd_f32(params_f32, tokens))
    assert out.shape == (B, S, VOCAB), out.shape
    max_err = float(jnp.max(jnp.abs(out - ref)))
    assert jnp.allclose(out, ref, atol=2e-3, rtol=2e-3), max_err

    # Default bf16 storage + bf16 MXU path (f32 accumulation): looser check.
    fwd_bf16 = jax.jit(functools.partial(gpt2_forward, num_heads=HEADS))
    out_bf16 = jax.block_until_ready(fwd_bf16(params_bf16, tokens))
    max_err_bf16 = float(jnp.max(jnp.abs(out_bf16.astype(jnp.float32) - ref)))
    assert jnp.allclose(out_bf16.astype(jnp.float32), ref,
                        atol=5e-2, rtol=5e-2), max_err_bf16

    print("KERNEL_OK")
</pallas_src>

<mosaic_0001>
module attributes {stable_mosaic.version = 11 : i64} {
  func.func @_linear_kernel(%arg0: i32, %arg1: i32, %arg2: memref<32x128xf32, #tpu.memory_space<vmem>>, %arg3: memref<1x128xf32, #tpu.memory_space<vmem>>, %arg4: memref<1x128xf32, #tpu.memory_space<vmem>>, %arg5: memref<128x128xf32, #tpu.memory_space<vmem>>, %arg6: memref<1x128xf32, #tpu.memory_space<vmem>>, %arg7: memref<32x128xf32, #tpu.memory_space<vmem>>, %arg8: memref<32x128xf32, #tpu.memory_space<vmem>>) attributes {dimension_semantics = [#tpu.dimension_semantics<parallel>, #tpu.dimension_semantics<arbitrary>], iteration_bounds = array<i64: 1, 3>, scalar_prefetch = 0 : i64, scratch_operands = 1 : i64, tpu.core_type = #tpu.core_type<tc>, window_params = [{transform_indices = @transform_0, window_bounds = array<i64: 32, 128>}, {pipeline_mode = #tpu.pipeline_mode<synchronous>, transform_indices = @transform_1, window_bounds = array<i64: 1, 128>}, {pipeline_mode = #tpu.pipeline_mode<synchronous>, transform_indices = @transform_2, window_bounds = array<i64: 1, 128>}, {transform_indices = @transform_3, window_bounds = array<i64: 128, 128>}, {transform_indices = @transform_4, window_bounds = array<i64: 1, 128>}, {transform_indices = @transform_5, window_bounds = array<i64: 32, 128>}]} {
    %c0_i32 = arith.constant 0 : i32
    %0 = arith.cmpi eq, %arg1, %c0_i32 : i32
    %1 = arith.extui %0 : i1 to i32
    %c0_i32_0 = arith.constant 0 : i32
    %2 = arith.cmpi ne, %1, %c0_i32_0 : i32
    scf.if %2 {
      %c0_8 = arith.constant 0 : index
      %c0_9 = arith.constant 0 : index
      %10 = vector.load %arg2[%c0_8, %c0_9] : memref<32x128xf32, #tpu.memory_space<vmem>>, vector<32x128xf32>
      %cst_10 = arith.constant dense<0.000000e+00> : vector<32xf32>
      %11 = vector.multi_reduction <add>, %10, %cst_10 [1] : vector<32x128xf32> to vector<32xf32>
      %12 = vector.shape_cast %11 : vector<32xf32> to vector<32x1xf32>
      %cst_11 = arith.constant 1.280000e+02 : f32
      %13 = vector.broadcast %cst_11 : f32 to vector<32x1xf32>
      %14 = arith.divf %12, %13 : vector<32x1xf32>
      %15 = vector.broadcast %14 : vector<32x1xf32> to vector<32x128xf32>
      %16 = arith.subf %10, %15 : vector<32x128xf32>
      %17 = arith.mulf %16, %16 : vector<32x128xf32>
      %cst_12 = arith.constant dense<0.000000e+00> : vector<32xf32>
      %18 = vector.multi_reduction <add>, %17, %cst_12 [1] : vector<32x128xf32> to vector<32xf32>
      %19 = vector.shape_cast %18 : vector<32xf32> to vector<32x1xf32>
      %cst_13 = arith.constant 1.280000e+02 : f32
      %20 = vector.broadcast %cst_13 : f32 to vector<32x1xf32>
      %21 = arith.divf %19, %20 : vector<32x1xf32>
      %cst_14 = arith.constant 9.99999974E-6 : f32
      %22 = vector.broadcast %cst_14 : f32 to vector<32x1xf32>
      %23 = arith.addf %21, %22 : vector<32x1xf32>
      %24 = math.rsqrt %23 : vector<32x1xf32>
      %25 = vector.broadcast %24 : vector<32x1xf32> to vector<32x128xf32>
      %26 = arith.mulf %16, %25 : vector<32x128xf32>
      %c0_15 = arith.constant 0 : index
      %c0_16 = arith.constant 0 : index
      %27 = vector.load %arg3[%c0_15, %c0_16] : memref<1x128xf32, #tpu.memory_space<vmem>>, vector<1x128xf32>
      %28 = vector.broadcast %27 : vector<1x128xf32> to vector<32x128xf32>
      %29 = arith.mulf %26, %28 : vector<32x128xf32>
      %c0_17 = arith.constant 0 : index
      %c0_18 = arith.constant 0 : index
      %30 = vector.load %arg4[%c0_17, %c0_18] : memref<1x128xf32, #tpu.memory_space<vmem>>, vector<1x128xf32>
      %31 = vector.broadcast %30 : vector<1x128xf32> to vector<32x128xf32>
      %32 = arith.addf %29, %31 : vector<32x128xf32>
      %c0_19 = arith.constant 0 : index
      %c0_20 = arith.constant 0 : index
      %33 = vector.load %arg8[%c0_19, %c0_20] : memref<32x128xf32, #tpu.memory_space<vmem>>, vector<32x128xf32>
      tpu.vector_store %arg8[%c0_19, %c0_20], %32 {strides = array<i32>} : memref<32x128xf32, #tpu.memory_space<vmem>>, vector<32x128xf32>,
    } else {
    }
    %c0 = arith.constant 0 : index
    %c0_1 = arith.constant 0 : index
    %3 = vector.load %arg8[%c0, %c0_1] : memref<32x128xf32, #tpu.memory_space<vmem>>, vector<32x128xf32>
    %c0_2 = arith.constant 0 : index
    %c0_3 = arith.constant 0 : index
    %4 = vector.load %arg5[%c0_2, %c0_3] : memref<128x128xf32, #tpu.memory_space<vmem>>, vector<128x128xf32>
    %cst = arith.constant dense<0.000000e+00> : vector<32x128xf32>
    %5 = tpu.matmul %3, %4, %cst {dimension_numbers = #tpu.dot_dimension_numbers<[1], [0], [0], [1], [0, 0, 1, 1], [], []>} : vector<32x128xf32>, vector<128x128xf32>, vector<32x128xf32> -> vector<32x128xf32>
    %c0_4 = arith.constant 0 : index
    %c0_5 = arith.constant 0 : index
    %6 = vector.load %arg6[%c0_4, %c0_5] : memref<1x128xf32, #tpu.memory_space<vmem>>, vector<1x128xf32>
    %7 = vector.broadcast %6 : vector<1x128xf32> to vector<32x128xf32>
    %8 = arith.addf %5, %7 : vector<32x128xf32>
    %c0_6 = arith.constant 0 : index
    %c0_7 = arith.constant 0 : index
    %9 = vector.load %arg7[%c0_6, %c0_7] : memref<32x128xf32, #tpu.memory_space<vmem>>, vector<32x128xf32>
    tpu.vector_store %arg7[%c0_6, %c0_7], %8 {strides = array<i32>} : memref<32x128xf32, #tpu.memory_space<vmem>>, vector<32x128xf32>,
    return
  }
  func.func @transform_0(%arg0: i32, %arg1: i32) -> (i32, i32) {
    %c0_i32 = arith.constant 0 : i32
    %c0_i32_0 = arith.constant 0 : i32
    return %arg0, %c0_i32 : i32, i32
  }
  func.func @transform_1(%arg0: i32, %arg1: i32) -> (i32, i32) {
    %c0_i32 = arith.constant 0 : i32
    %c0_i32_0 = arith.constant 0 : i32
    %c0_i32_1 = arith.constant 0 : i32
    return %c0_i32, %c0_i32_0 : i32, i32
  }
  func.func @transform_2(%arg0: i32, %arg1: i32) -> (i32, i32) {
    %c0_i32 = arith.constant 0 : i32
    %c0_i32_0 = arith.constant 0 : i32
    %c0_i32_1 = arith.constant 0 : i32
    return %c0_i32, %c0_i32_0 : i32, i32
  }
  func.func @transform_3(%arg0: i32, %arg1: i32) -> (i32, i32) {
    %c0_i32 = arith.constant 0 : i32
    %c0_i32_0 = arith.constant 0 : i32
    return %c0_i32, %arg1 : i32, i32
  }
  func.func @transform_4(%arg0: i32, %arg1: i32) -> (i32, i32) {
    %c0_i32 = arith.constant 0 : i32
    %c0_i32_0 = arith.constant 0 : i32
    return %c0_i32, %arg1 : i32, i32
  }
  func.func @transform_5(%arg0: i32, %arg1: i32) -> (i32, i32) {
    %c0_i32 = arith.constant 0 : i32
    return %arg0, %arg1 : i32, i32
  }
}

module attributes {stable_mosaic.version = 11 : i64} {
  func.func @_attention_kernel(%arg0: i32, %arg1: i32, %arg2: i32, %arg3: memref<16x128xf32, #tpu.memory_space<vmem>>, %arg4: memref<16x128xf32, #tpu.memory_space<vmem>>, %arg5: memref<16x128xf32, #tpu.memory_space<vmem>>, %arg6: memref<16x128xf32, #tpu.memory_space<vmem>>, %arg7: memref<4x16x1xf32, #tpu.memory_space<vmem>>, %arg8: memref<4x16x1xf32, #tpu.memory_space<vmem>>, %arg9: memref<4x16x32xf32, #tpu.memory_space<vmem>>) attributes {dimension_semantics = [#tpu.dimension_semantics<parallel>, #tpu.dimension_semantics<parallel>, #tpu.dimension_semantics<arbitrary>], iteration_bounds = array<i64: 2, 1, 1>, scalar_prefetch = 0 : i64, scratch_operands = 3 : i64, tpu.core_type = #tpu.core_type<tc>, window_params = [{transform_indices = @transform_0, window_bounds = array<i64: 16, 128>}, {transform_indices = @transform_1, window_bounds = array<i64: 16, 128>}, {transform_indices = @transform_2, window_bounds = array<i64: 16, 128>}, {transform_indices = @transform_3, window_bounds = array<i64: 16, 128>}]} {
    %c0_i32 = arith.constant 0 : i32
    %0 = arith.cmpi eq, %arg2, %c0_i32 : i32
    %1 = arith.extui %0 : i1 to i32
    %c0_i32_0 = arith.constant 0 : i32
    %2 = arith.cmpi ne, %1, %c0_i32_0 : i32
    scf.if %2 {
      %cst = arith.constant 0xFF800000 : f32
      %12 = vector.broadcast %cst : f32 to vector<4x16x1xf32>
      %c0 = arith.constant 0 : index
      %c0_5 = arith.constant 0 : index
      %c0_6 = arith.constant 0 : index
      %13 = vector.load %arg7[%c0, %c0_5, %c0_6] : memref<4x16x1xf32, #tpu.memory_space<vmem>>, vector<4x16x1xf32>
      tpu.vector_store %arg7[%c0, %c0_5, %c0_6], %12 {strides = array<i32>} : memref<4x16x1xf32, #tpu.memory_space<vmem>>, vector<4x16x1xf32>,
      %cst_7 = arith.constant 0.000000e+00 : f32
      %14 = vector.broadcast %cst_7 : f32 to vector<4x16x1xf32>
      %c0_8 = arith.constant 0 : index
      %c0_9 = arith.constant 0 : index
      %c0_10 = arith.constant 0 : index
      %15 = vector.load %arg8[%c0_8, %c0_9, %c0_10] : memref<4x16x1xf32, #tpu.memory_space<vmem>>, vector<4x16x1xf32>
      tpu.vector_store %arg8[%c0_8, %c0_9, %c0_10], %14 {strides = array<i32>} : memref<4x16x1xf32, #tpu.memory_space<vmem>>, vector<4x16x1xf32>,
      %cst_11 = arith.constant 0.000000e+00 : f32
      %16 = vector.broadcast %cst_11 : f32 to vector<4x16x32xf32>
      %c0_12 = arith.constant 0 : index
      %c0_13 = arith.constant 0 : index
      %c0_14 = arith.constant 0 : index
      %17 = vector.load %arg9[%c0_12, %c0_13, %c0_14] : memref<4x16x32xf32, #tpu.memory_space<vmem>>, vector<4x16x32xf32>
      tpu.vector_store %arg9[%c0_12, %c0_13, %c0_14], %16 {strides = array<i32>} : memref<4x16x32xf32, #tpu.memory_space<vmem>>, vector<4x16x32xf32>,
    } else {
    }
    %c16_i32 = arith.constant 16 : i32
    %3 = arith.muli %arg2, %c16_i32 : i32
    %c16_i32_1 = arith.constant 16 : i32
    %4 = arith.muli %arg1, %c16_i32_1 : i32
    %c15_i32 = arith.constant 15 : i32
    %5 = arith.addi %4, %c15_i32 : i32
    %6 = arith.cmpi sle, %3, %5 : i32
    %7 = arith.extui %6 : i1 to i32
    %c0_i32_2 = arith.constant 0 : i32
    %8 = arith.cmpi ne, %7, %c0_i32_2 : i32
    scf.if %8 {
      %c0 = arith.constant 0 : index
      %c0_5 = arith.constant 0 : index
      %12 = vector.load %arg3[%c0, %c0_5] : memref<16x128xf32, #tpu.memory_space<vmem>>, vector<16x128xf32>
      %cst = arith.constant 0.176776692 : f32
      %13 = vector.broadcast %cst : f32 to vector<16x128xf32>
      %14 = arith.mulf %12, %13 : vector<16x128xf32>
      %15 = vector.shape_cast %14 : vector<16x128xf32> to vector<16x4x32xf32>
      %c0_6 = arith.constant 0 : index
      %c0_7 = arith.constant 0 : index
      %16 = vector.load %arg4[%c0_6, %c0_7] : memref<16x128xf32, #tpu.memory_space<vmem>>, vector<16x128xf32>
      %17 = vector.shape_cast %16 : vector<16x128xf32> to vector<16x4x32xf32>
      %c0_8 = arith.constant 0 : index
      %c0_9 = arith.constant 0 : index
      %18 = vector.load %arg5[%c0_8, %c0_9] : memref<16x128xf32, #tpu.memory_space<vmem>>, vector<16x128xf32>
      %19 = vector.shape_cast %18 : vector<16x128xf32> to vector<16x4x32xf32>
      "tpu.trace_start"() <{level = 10 : i32, message = "qhd,khd->hqk"}> : () -> ()
      %cst_10 = arith.constant dense<0.000000e+00> : vector<4x16x16xf32>
      %20 = tpu.matmul %15, %17, %cst_10 {dimension_numbers = #tpu.dot_dimension_numbers<[2], [2], [0], [0], [0, 1, 0, 0, 1, 0], [1], [1]>} : vector<16x4x32xf32>, vector<16x4x32xf32>, vector<4x16x16xf32> -> vector<4x16x16xf32>
      "tpu.trace_stop"() : () -> ()
      %c16_i32_11 = arith.constant 16 : i32
      %21 = arith.muli %arg1, %c16_i32_11 : i32
      %22 = tpu.iota {dimensions = array<i32: 1>} : vector<1x16x16xi32>
      %23 = vector.broadcast %21 : i32 to vector<1x16x16xi32>
      %24 = arith.addi %23, %22 : vector<1x16x16xi32>
      %c16_i32_12 = arith.constant 16 : i32
      %25 = arith.muli %arg2, %c16_i32_12 : i32
      %26 = tpu.iota {dimensions = array<i32: 2>} : vector<1x16x16xi32>
      %27 = vector.broadcast %25 : i32 to vector<1x16x16xi32>
      %28 = arith.addi %27, %26 : vector<1x16x16xi32>
      %29 = arith.cmpi sle, %28, %24 : vector<1x16x16xi32>
      %cst_13 = arith.constant -1.000000e+30 : f32
      %30 = vector.shape_cast %29 : vector<1x16x16xi1> to vector<1x16x16xi1>
      %31 = vector.broadcast %30 : vector<1x16x16xi1> to vector<4x16x16xi1>
      %32 = vector.broadcast %cst_13 : f32 to vector<4x16x16xf32>
      %33 = arith.select %31, %20, %32 : vector<4x16x16xi1>, vector<4x16x16xf32>
      %c0_14 = arith.constant 0 : index
      %c0_15 = arith.constant 0 : index
      %c0_16 = arith.constant 0 : index
      %34 = vector.load %arg7[%c0_14, %c0_15, %c0_16] : memref<4x16x1xf32, #tpu.memory_space<vmem>>, vector<4x16x1xf32>
      %cst_17 = arith.constant dense<0xFF800000> : vector<4x16xf32>
      %35 = vector.multi_reduction <maximumf>, %33, %cst_17 [2] : vector<4x16x16xf32> to vector<4x16xf32>
      %36 = vector.shape_cast %35 : vector<4x16xf32> to vector<4x16x1xf32>
      %37 = arith.maximumf %34, %36 : vector<4x16x1xf32>
      %38 = arith.subf %34, %37 : vector<4x16x1xf32>
      %39 = math.exp %38 : vector<4x16x1xf32>
      %40 = vector.broadcast %37 : vector<4x16x1xf32> to vector<4x16x16xf32>
      %41 = arith.subf %33, %40 : vector<4x16x16xf32>
      %42 = math.exp %41 : vector<4x16x16xf32>
      %c0_18 = arith.constant 0 : index
      %c0_19 = arith.constant 0 : index
      %c0_20 = arith.constant 0 : index
      %43 = vector.load %arg8[%c0_18, %c0_19, %c0_20] : memref<4x16x1xf32, #tpu.memory_space<vmem>>, vector<4x16x1xf32>
      %44 = arith.mulf %39, %43 : vector<4x16x1xf32>
      %cst_21 = arith.constant dense<0.000000e+00> : vector<4x16xf32>
      %45 = vector.multi_reduction <add>, %42, %cst_21 [2] : vector<4x16x16xf32> to vector<4x16xf32>
      %46 = vector.shape_cast %45 : vector<4x16xf32> to vector<4x16x1xf32>
      %47 = arith.addf %44, %46 : vector<4x16x1xf32>
      %c0_22 = arith.constant 0 : index
      %c0_23 = arith.constant 0 : index
      %c0_24 = arith.constant 0 : index
      %48 = vector.load %arg8[%c0_22, %c0_23, %c0_24] : memref<4x16x1xf32, #tpu.memory_space<vmem>>, vector<4x16x1xf32>
      tpu.vector_store %arg8[%c0_22, %c0_23, %c0_24], %47 {strides = array<i32>} : memref<4x16x1xf32, #tpu.memory_space<vmem>>, vector<4x16x1xf32>,
      "tpu.trace_start"() <{level = 10 : i32, message = "hqk,khd->hqd"}> : () -> ()
      %cst_25 = arith.constant dense<0.000000e+00> : vector<4x16x32xf32>
      %49 = tpu.matmul %42, %19, %cst_25 {dimension_numbers = #tpu.dot_dimension_numbers<[2], [0], [1], [2], [0, 0, 0, 1, 1, 2], [0], [1]>} : vector<4x16x16xf32>, vector<16x4x32xf32>, vector<4x16x32xf32> -> vector<4x16x32xf32>
      "tpu.trace_stop"() : () -> ()
      %c0_26 = arith.constant 0 : index
      %c0_27 = arith.constant 0 : index
      %c0_28 = arith.constant 0 : index
      %50 = vector.load %arg9[%c0_26, %c0_27, %c0_28] : memref<4x16x32xf32, #tpu.memory_space<vmem>>, vector<4x16x32xf32>
      %51 = vector.broadcast %39 : vector<4x16x1xf32> to vector<4x16x32xf32>
      %52 = arith.mulf %51, %50 : vector<4x16x32xf32>
      %53 = arith.addf %52, %49 : vector<4x16x32xf32>
      %c0_29 = arith.constant 0 : index
      %c0_30 = arith.constant 0 : index
      %c0_31 = arith.constant 0 : index
      %54 = vector.load %arg9[%c0_29, %c0_30, %c0_31] : memref<4x16x32xf32, #tpu.memory_space<vmem>>, vector<4x16x32xf32>
      tpu.vector_store %arg9[%c0_29, %c0_30, %c0_31], %53 {strides = array<i32>} : memref<4x16x32xf32, #tpu.memory_space<vmem>>, vector<4x16x32xf32>,
      %c0_32 = arith.constant 0 : index
      %c0_33 = arith.constant 0 : index
      %c0_34 = arith.constant 0 : index
      %55 = vector.load %arg7[%c0_32, %c0_33, %c0_34] : memref<4x16x1xf32, #tpu.memory_space<vmem>>, vector<4x16x1xf32>
      tpu.vector_store %arg7[%c0_32, %c0_33, %c0_34], %37 {strides = array<i32>} : memref<4x16x1xf32, #tpu.memory_space<vmem>>, vector<4x16x1xf32>,
    } else {
    }
    %c0_i32_3 = arith.constant 0 : i32
    %9 = arith.cmpi eq, %arg2, %c0_i32_3 : i32
    %10 = arith.extui %9 : i1 to i32
    %c0_i32_4 = arith.constant 0 : i32
    %11 = arith.cmpi ne, %10, %c0_i32_4 : i32
    scf.if %11 {
      %c0 = arith.constant 0 : index
      %c0_5 = arith.constant 0 : index
      %c0_6 = arith.constant 0 : index
      %12 = vector.load %arg8[%c0, %c0_5, %c0_6] : memref<4x16x1xf32, #tpu.memory_space<vmem>>, vector<4x16x1xf32>
      %cst = arith.constant 1.000000e+00 : f32
      %13 = vector.broadcast %cst : f32 to vector<4x16x1xf32>
      %14 = arith.divf %13, %12 : vector<4x16x1xf32>
      %c0_7 = arith.constant 0 : index
      %c0_8 = arith.constant 0 : index
      %c0_9 = arith.constant 0 : index
      %15 = vector.load %arg9[%c0_7, %c0_8, %c0_9] : memref<4x16x32xf32, #tpu.memory_space<vmem>>, vector<4x16x32xf32>
      %16 = vector.broadcast %14 : vector<4x16x1xf32> to vector<4x16x32xf32>
      %17 = arith.mulf %15, %16 : vector<4x16x32xf32>
      %18 = tpu.transpose %17, [1, 0, 2] : vector<4x16x32xf32> -> vector<16x4x32xf32>
      %19 = vector.shape_cast %18 : vector<16x4x32xf32> to vector<16x128xf32>
      %c0_10 = arith.constant 0 : index
      %c0_11 = arith.constant 0 : index
      %20 = vector.load %arg6[%c0_10, %c0_11] : memref<16x128xf32, #tpu.memory_space<vmem>>, vector<16x128xf32>
      tpu.vector_store %arg6[%c0_10, %c0_11], %19 {strides = array<i32>} : memref<16x128xf32, #tpu.memory_space<vmem>>, vector<16x128xf32>,
    } else {
    }
    return
  }
  func.func @transform_0(%arg0: i32, %arg1: i32, %arg2: i32) -> (i32, i32) {
    %c1_i32 = arith.constant 1 : i32
    %0 = arith.muli %arg0, %c1_i32 : i32
    %1 = arith.addi %0, %arg1 : i32
    %c0_i32 = arith.constant 0 : i32
    %c0_i32_0 = arith.constant 0 : i32
    return %1, %c0_i32 : i32, i32
  }
  func.func @transform_1(%arg0: i32, %arg1: i32, %arg2: i32) -> (i32, i32) {
    %c1_i32 = arith.constant 1 : i32
    %0 = arith.muli %arg0, %c1_i32 : i32
    %1 = arith.addi %0, %arg2 : i32
    %c1_i32_0 = arith.constant 1 : i32
    %c0_i32 = arith.constant 0 : i32
    return %1, %c1_i32_0 : i32, i32
  }
  func.func @transform_2(%arg0: i32, %arg1: i32, %arg2: i32) -> (i32, i32) {
    %c1_i32 = arith.constant 1 : i32
    %0 = arith.muli %arg0, %c1_i32 : i32
    %1 = arith.addi %0, %arg2 : i32
    %c2_i32 = arith.constant 2 : i32
    %c0_i32 = arith.constant 0 : i32
    return %1, %c2_i32 : i32, i32
  }
  func.func @transform_3(%arg0: i32, %arg1: i32, %arg2: i32) -> (i32, i32) {
    %c1_i32 = arith.constant 1 : i32
    %0 = arith.muli %arg0, %c1_i32 : i32
    %1 = arith.addi %0, %arg1 : i32
    %c0_i32 = arith.constant 0 : i32
    %c0_i32_0 = arith.constant 0 : i32
    return %1, %c0_i32 : i32, i32
  }
}

module attributes {stable_mosaic.version = 11 : i64} {
  func.func @_linear_kernel(%arg0: i32, %arg1: i32, %arg2: memref<32x128xf32, #tpu.memory_space<vmem>>, %arg3: memref<128x128xf32, #tpu.memory_space<vmem>>, %arg4: memref<1x128xf32, #tpu.memory_space<vmem>>, %arg5: memref<32x128xf32, #tpu.memory_space<vmem>>, %arg6: memref<32x128xf32, #tpu.memory_space<vmem>>, %arg7: memref<32x128xf32, #tpu.memory_space<vmem>>) attributes {dimension_semantics = [#tpu.dimension_semantics<parallel>, #tpu.dimension_semantics<arbitrary>], iteration_bounds = array<i64: 1, 1>, scalar_prefetch = 0 : i64, scratch_operands = 1 : i64, tpu.core_type = #tpu.core_type<tc>, window_params = [{transform_indices = @transform_0, window_bounds = array<i64: 32, 128>}, {transform_indices = @transform_1, window_bounds = array<i64: 128, 128>}, {transform_indices = @transform_2, window_bounds = array<i64: 1, 128>}, {transform_indices = @transform_3, window_bounds = array<i64: 32, 128>}, {transform_indices = @transform_4, window_bounds = array<i64: 32, 128>}]} {
    %c0_i32 = arith.constant 0 : i32
    %0 = arith.cmpi eq, %arg1, %c0_i32 : i32
    %1 = arith.extui %0 : i1 to i32
    %c0_i32_0 = arith.constant 0 : i32
    %2 = arith.cmpi ne, %1, %c0_i32_0 : i32
    scf.if %2 {
      %c0_10 = arith.constant 0 : index
      %c0_11 = arith.constant 0 : index
      %12 = vector.load %arg2[%c0_10, %c0_11] : memref<32x128xf32, #tpu.memory_space<vmem>>, vector<32x128xf32>
      %c0_12 = arith.constant 0 : index
      %c0_13 = arith.constant 0 : index
      %13 = vector.load %arg7[%c0_12, %c0_13] : memref<32x128xf32, #tpu.memory_space<vmem>>, vector<32x128xf32>
      tpu.vector_store %arg7[%c0_12, %c0_13], %12 {strides = array<i32>} : memref<32x128xf32, #tpu.memory_space<vmem>>, vector<32x128xf32>,
    } else {
    }
    %c0 = arith.constant 0 : index
    %c0_1 = arith.constant 0 : index
    %3 = vector.load %arg7[%c0, %c0_1] : memref<32x128xf32, #tpu.memory_space<vmem>>, vector<32x128xf32>
    %c0_2 = arith.constant 0 : index
    %c0_3 = arith.constant 0 : index
    %4 = vector.load %arg3[%c0_2, %c0_3] : memref<128x128xf32, #tpu.memory_space<vmem>>, vector<128x128xf32>
    %cst = arith.constant dense<0.000000e+00> : vector<32x128xf32>
    %5 = tpu.matmul %3, %4, %cst {dimension_numbers = #tpu.dot_dimension_numbers<[1], [0], [0], [1], [0, 0, 1, 1], [], []>} : vector<32x128xf32>, vector<128x128xf32>, vector<32x128xf32> -> vector<32x128xf32>
    %c0_4 = arith.constant 0 : index
    %c0_5 = arith.constant 0 : index
    %6 = vector.load %arg4[%c0_4, %c0_5] : memref<1x128xf32, #tpu.memory_space<vmem>>, vector<1x128xf32>
    %7 = vector.broadcast %6 : vector<1x128xf32> to vector<32x128xf32>
    %8 = arith.addf %5, %7 : vector<32x128xf32>
    %c0_6 = arith.constant 0 : index
    %c0_7 = arith.constant 0 : index
    %9 = vector.load %arg5[%c0_6, %c0_7] : memref<32x128xf32, #tpu.memory_space<vmem>>, vector<32x128xf32>
    %10 = arith.addf %8, %9 : vector<32x128xf32>
    %c0_8 = arith.constant 0 : index
    %c0_9 = arith.constant 0 : index
    %11 = vector.load %arg6[%c0_8, %c0_9] : memref<32x128xf32, #tpu.memory_space<vmem>>, vector<32x128xf32>
    tpu.vector_store %arg6[%c0_8, %c0_9], %10 {strides = array<i32>} : memref<32x128xf32, #tpu.memory_space<vmem>>, vector<32x128xf32>,
    return
  }
  func.func @transform_0(%arg0: i32, %arg1: i32) -> (i32, i32) {
    %c0_i32 = arith.constant 0 : i32
    %c0_i32_0 = arith.constant 0 : i32
    return %arg0, %c0_i32 : i32, i32
  }
  func.func @transform_1(%arg0: i32, %arg1: i32) -> (i32, i32) {
    %c0_i32 = arith.constant 0 : i32
    %c0_i32_0 = arith.constant 0 : i32
    return %c0_i32, %arg1 : i32, i32
  }
  func.func @transform_2(%arg0: i32, %arg1: i32) -> (i32, i32) {
    %c0_i32 = arith.constant 0 : i32
    %c0_i32_0 = arith.constant 0 : i32
    return %c0_i32, %arg1 : i32, i32
  }
  func.func @transform_3(%arg0: i32, %arg1: i32) -> (i32, i32) {
    %c0_i32 = arith.constant 0 : i32
    return %arg0, %arg1 : i32, i32
  }
  func.func @transform_4(%arg0: i32, %arg1: i32) -> (i32, i32) {
    %c0_i32 = arith.constant 0 : i32
    return %arg0, %arg1 : i32, i32
  }
}

module attributes {stable_mosaic.version = 11 : i64} {
  func.func @_linear_kernel(%arg0: i32, %arg1: i32, %arg2: memref<32x128xf32, #tpu.memory_space<vmem>>, %arg3: memref<1x128xf32, #tpu.memory_space<vmem>>, %arg4: memref<1x128xf32, #tpu.memory_space<vmem>>, %arg5: memref<128x512xf32, #tpu.memory_space<vmem>>, %arg6: memref<1x512xf32, #tpu.memory_space<vmem>>, %arg7: memref<32x512xf32, #tpu.memory_space<vmem>>, %arg8: memref<32x128xf32, #tpu.memory_space<vmem>>) attributes {dimension_semantics = [#tpu.dimension_semantics<parallel>, #tpu.dimension_semantics<arbitrary>], iteration_bounds = array<i64: 1, 1>, scalar_prefetch = 0 : i64, scratch_operands = 1 : i64, tpu.core_type = #tpu.core_type<tc>, window_params = [{transform_indices = @transform_0, window_bounds = array<i64: 32, 128>}, {pipeline_mode = #tpu.pipeline_mode<synchronous>, transform_indices = @transform_1, window_bounds = array<i64: 1, 128>}, {pipeline_mode = #tpu.pipeline_mode<synchronous>, transform_indices = @transform_2, window_bounds = array<i64: 1, 128>}, {transform_indices = @transform_3, window_bounds = array<i64: 128, 512>}, {transform_indices = @transform_4, window_bounds = array<i64: 1, 512>}, {transform_indices = @transform_5, window_bounds = array<i64: 32, 512>}]} {
    %c0_i32 = arith.constant 0 : i32
    %0 = arith.cmpi eq, %arg1, %c0_i32 : i32
    %1 = arith.extui %0 : i1 to i32
    %c0_i32_0 = arith.constant 0 : i32
    %2 = arith.cmpi ne, %1, %c0_i32_0 : i32
    scf.if %2 {
      %c0_12 = arith.constant 0 : index
      %c0_13 = arith.constant 0 : index
      %23 = vector.load %arg2[%c0_12, %c0_13] : memref<32x128xf32, #tpu.memory_space<vmem>>, vector<32x128xf32>
      %cst_14 = arith.constant dense<0.000000e+00> : vector<32xf32>
      %24 = vector.multi_reduction <add>, %23, %cst_14 [1] : vector<32x128xf32> to vector<32xf32>
      %25 = vector.shape_cast %24 : vector<32xf32> to vector<32x1xf32>
      %cst_15 = arith.constant 1.280000e+02 : f32
      %26 = vector.broadcast %cst_15 : f32 to vector<32x1xf32>
      %27 = arith.divf %25, %26 : vector<32x1xf32>
      %28 = vector.broadcast %27 : vector<32x1xf32> to vector<32x128xf32>
      %29 = arith.subf %23, %28 : vector<32x128xf32>
      %30 = arith.mulf %29, %29 : vector<32x128xf32>
      %cst_16 = arith.constant dense<0.000000e+00> : vector<32xf32>
      %31 = vector.multi_reduction <add>, %30, %cst_16 [1] : vector<32x128xf32> to vector<32xf32>
      %32 = vector.shape_cast %31 : vector<32xf32> to vector<32x1xf32>
      %cst_17 = arith.constant 1.280000e+02 : f32
      %33 = vector.broadcast %cst_17 : f32 to vector<32x1xf32>
      %34 = arith.divf %32, %33 : vector<32x1xf32>
      %cst_18 = arith.constant 9.99999974E-6 : f32
      %35 = vector.broadcast %cst_18 : f32 to vector<32x1xf32>
      %36 = arith.addf %34, %35 : vector<32x1xf32>
      %37 = math.rsqrt %36 : vector<32x1xf32>
      %38 = vector.broadcast %37 : vector<32x1xf32> to vector<32x128xf32>
      %39 = arith.mulf %29, %38 : vector<32x128xf32>
      %c0_19 = arith.constant 0 : index
      %c0_20 = arith.constant 0 : index
      %40 = vector.load %arg3[%c0_19, %c0_20] : memref<1x128xf32, #tpu.memory_space<vmem>>, vector<1x128xf32>
      %41 = vector.broadcast %40 : vector<1x128xf32> to vector<32x128xf32>
      %42 = arith.mulf %39, %41 : vector<32x128xf32>
      %c0_21 = arith.constant 0 : index
      %c0_22 = arith.constant 0 : index
      %43 = vector.load %arg4[%c0_21, %c0_22] : memref<1x128xf32, #tpu.memory_space<vmem>>, vector<1x128xf32>
      %44 = vector.broadcast %43 : vector<1x128xf32> to vector<32x128xf32>
      %45 = arith.addf %42, %44 : vector<32x128xf32>
      %c0_23 = arith.constant 0 : index
      %c0_24 = arith.constant 0 : index
      %46 = vector.load %arg8[%c0_23, %c0_24] : memref<32x128xf32, #tpu.memory_space<vmem>>, vector<32x128xf32>
      tpu.vector_store %arg8[%c0_23, %c0_24], %45 {strides = array<i32>} : memref<32x128xf32, #tpu.memory_space<vmem>>, vector<32x128xf32>,
    } else {
    }
    %c0 = arith.constant 0 : index
    %c0_1 = arith.constant 0 : index
    %3 = vector.load %arg8[%c0, %c0_1] : memref<32x128xf32, #tpu.memory_space<vmem>>, vector<32x128xf32>
    %c0_2 = arith.constant 0 : index
    %c0_3 = arith.constant 0 : index
    %4 = vector.load %arg5[%c0_2, %c0_3] : memref<128x512xf32, #tpu.memory_space<vmem>>, vector<128x512xf32>
    %cst = arith.constant dense<0.000000e+00> : vector<32x512xf32>
    %5 = tpu.matmul %3, %4, %cst {dimension_numbers = #tpu.dot_dimension_numbers<[1], [0], [0], [1], [0, 0, 1, 1], [], []>} : vector<32x128xf32>, vector<128x512xf32>, vector<32x512xf32> -> vector<32x512xf32>
    %c0_4 = arith.constant 0 : index
    %c0_5 = arith.constant 0 : index
    %6 = vector.load %arg6[%c0_4, %c0_5] : memref<1x512xf32, #tpu.memory_space<vmem>>, vector<1x512xf32>
    %7 = vector.broadcast %6 : vector<1x512xf32> to vector<32x512xf32>
    %8 = arith.addf %5, %7 : vector<32x512xf32>
    %9 = arith.mulf %8, %8 : vector<32x512xf32>
    %10 = arith.mulf %8, %9 : vector<32x512xf32>
    %cst_6 = arith.constant 4.471500e-02 : f32
    %11 = vector.broadcast %cst_6 : f32 to vector<32x512xf32>
    %12 = arith.mulf %11, %10 : vector<32x512xf32>
    %13 = arith.addf %8, %12 : vector<32x512xf32>
    %cst_7 = arith.constant 0.797884583 : f32
    %14 = vector.broadcast %cst_7 : f32 to vector<32x512xf32>
    %15 = arith.mulf %14, %13 : vector<32x512xf32>
    %16 = math.tanh %15 : vector<32x512xf32>
    %cst_8 = arith.constant 1.000000e+00 : f32
    %17 = vector.broadcast %cst_8 : f32 to vector<32x512xf32>
    %18 = arith.addf %17, %16 : vector<32x512xf32>
    %cst_9 = arith.constant 5.000000e-01 : f32
    %19 = vector.broadcast %cst_9 : f32 to vector<32x512xf32>
    %20 = arith.mulf %19, %18 : vector<32x512xf32>
    %21 = arith.mulf %8, %20 : vector<32x512xf32>
    %c0_10 = arith.constant 0 : index
    %c0_11 = arith.constant 0 : index
    %22 = vector.load %arg7[%c0_10, %c0_11] : memref<32x512xf32, #tpu.memory_space<vmem>>, vector<32x512xf32>
    tpu.vector_store %arg7[%c0_10, %c0_11], %21 {strides = array<i32>} : memref<32x512xf32, #tpu.memory_space<vmem>>, vector<32x512xf32>,
    return
  }
  func.func @transform_0(%arg0: i32, %arg1: i32) -> (i32, i32) {
    %c0_i32 = arith.constant 0 : i32
    %c0_i32_0 = arith.constant 0 : i32
    return %arg0, %c0_i32 : i32, i32
  }
  func.func @transform_1(%arg0: i32, %arg1: i32) -> (i32, i32) {
    %c0_i32 = arith.constant 0 : i32
    %c0_i32_0 = arith.constant 0 : i32
    %c0_i32_1 = arith.constant 0 : i32
    return %c0_i32, %c0_i32_0 : i32, i32
  }
  func.func @transform_2(%arg0: i32, %arg1: i32) -> (i32, i32) {
    %c0_i32 = arith.constant 0 : i32
    %c0_i32_0 = arith.constant 0 : i32
    %c0_i32_1 = arith.constant 0 : i32
    return %c0_i32, %c0_i32_0 : i32, i32
  }
  func.func @transform_3(%arg0: i32, %arg1: i32) -> (i32, i32) {
    %c0_i32 = arith.constant 0 : i32
    %c0_i32_0 = arith.constant 0 : i32
    return %c0_i32, %arg1 : i32, i32
  }
  func.func @transform_4(%arg0: i32, %arg1: i32) -> (i32, i32) {
    %c0_i32 = arith.constant 0 : i32
    %c0_i32_0 = arith.constant 0 : i32
    return %c0_i32, %arg1 : i32, i32
  }
  func.func @transform_5(%arg0: i32, %arg1: i32) -> (i32, i32) {
    %c0_i32 = arith.constant 0 : i32
    return %arg0, %arg1 : i32, i32
  }
}

module attributes {stable_mosaic.version = 11 : i64} {
  func.func @_linear_kernel(%arg0: i32, %arg1: i32, %arg2: memref<32x512xf32, #tpu.memory_space<vmem>>, %arg3: memref<512x128xf32, #tpu.memory_space<vmem>>, %arg4: memref<1x128xf32, #tpu.memory_space<vmem>>, %arg5: memref<32x128xf32, #tpu.memory_space<vmem>>, %arg6: memref<32x128xf32, #tpu.memory_space<vmem>>, %arg7: memref<32x512xf32, #tpu.memory_space<vmem>>) attributes {dimension_semantics = [#tpu.dimension_semantics<parallel>, #tpu.dimension_semantics<arbitrary>], iteration_bounds = array<i64: 1, 1>, scalar_prefetch = 0 : i64, scratch_operands = 1 : i64, tpu.core_type = #tpu.core_type<tc>, window_params = [{transform_indices = @transform_0, window_bounds = array<i64: 32, 512>}, {transform_indices = @transform_1, window_bounds = array<i64: 512, 128>}, {transform_indices = @transform_2, window_bounds = array<i64: 1, 128>}, {transform_indices = @transform_3, window_bounds = array<i64: 32, 128>}, {transform_indices = @transform_4, window_bounds = array<i64: 32, 128>}]} {
    %c0_i32 = arith.constant 0 : i32
    %0 = arith.cmpi eq, %arg1, %c0_i32 : i32
    %1 = arith.extui %0 : i1 to i32
    %c0_i32_0 = arith.constant 0 : i32
    %2 = arith.cmpi ne, %1, %c0_i32_0 : i32
    scf.if %2 {
      %c0_10 = arith.constant 0 : index
      %c0_11 = arith.constant 0 : index
      %12 = vector.load %arg2[%c0_10, %c0_11] : memref<32x512xf32, #tpu.memory_space<vmem>>, vector<32x512xf32>
      %c0_12 = arith.constant 0 : index
      %c0_13 = arith.constant 0 : index
      %13 = vector.load %arg7[%c0_12, %c0_13] : memref<32x512xf32, #tpu.memory_space<vmem>>, vector<32x512xf32>
      tpu.vector_store %arg7[%c0_12, %c0_13], %12 {strides = array<i32>} : memref<32x512xf32, #tpu.memory_space<vmem>>, vector<32x512xf32>,
    } else {
    }
    %c0 = arith.constant 0 : index
    %c0_1 = arith.constant 0 : index
    %3 = vector.load %arg7[%c0, %c0_1] : memref<32x512xf32, #tpu.memory_space<vmem>>, vector<32x512xf32>
    %c0_2 = arith.constant 0 : index
    %c0_3 = arith.constant 0 : index
    %4 = vector.load %arg3[%c0_2, %c0_3] : memref<512x128xf32, #tpu.memory_space<vmem>>, vector<512x128xf32>
    %cst = arith.constant dense<0.000000e+00> : vector<32x128xf32>
    %5 = tpu.matmul %3, %4, %cst {dimension_numbers = #tpu.dot_dimension_numbers<[1], [0], [0], [1], [0, 0, 1, 1], [], []>} : vector<32x512xf32>, vector<512x128xf32>, vector<32x128xf32> -> vector<32x128xf32>
    %c0_4 = arith.constant 0 : index
    %c0_5 = arith.constant 0 : index
    %6 = vector.load %arg4[%c0_4, %c0_5] : memref<1x128xf32, #tpu.memory_space<vmem>>, vector<1x128xf32>
    %7 = vector.broadcast %6 : vector<1x128xf32> to vector<32x128xf32>
    %8 = arith.addf %5, %7 : vector<32x128xf32>
    %c0_6 = arith.constant 0 : index
    %c0_7 = arith.constant 0 : index
    %9 = vector.load %arg5[%c0_6, %c0_7] : memref<32x128xf32, #tpu.memory_space<vmem>>, vector<32x128xf32>
    %10 = arith.addf %8, %9 : vector<32x128xf32>
    %c0_8 = arith.constant 0 : index
    %c0_9 = arith.constant 0 : index
    %11 = vector.load %arg6[%c0_8, %c0_9] : memref<32x128xf32, #tpu.memory_space<vmem>>, vector<32x128xf32>
    tpu.vector_store %arg6[%c0_8, %c0_9], %10 {strides = array<i32>} : memref<32x128xf32, #tpu.memory_space<vmem>>, vector<32x128xf32>,
    return
  }
  func.func @transform_0(%arg0: i32, %arg1: i32) -> (i32, i32) {
    %c0_i32 = arith.constant 0 : i32
    %c0_i32_0 = arith.constant 0 : i32
    return %arg0, %c0_i32 : i32, i32
  }
  func.func @transform_1(%arg0: i32, %arg1: i32) -> (i32, i32) {
    %c0_i32 = arith.constant 0 : i32
    %c0_i32_0 = arith.constant 0 : i32
    return %c0_i32, %arg1 : i32, i32
  }
  func.func @transform_2(%arg0: i32, %arg1: i32) -> (i32, i32) {
    %c0_i32 = arith.constant 0 : i32
    %c0_i32_0 = arith.constant 0 : i32
    return %c0_i32, %arg1 : i32, i32
  }
  func.func @transform_3(%arg0: i32, %arg1: i32) -> (i32, i32) {
    %c0_i32 = arith.constant 0 : i32
    return %arg0, %arg1 : i32, i32
  }
  func.func @transform_4(%arg0: i32, %arg1: i32) -> (i32, i32) {
    %c0_i32 = arith.constant 0 : i32
    return %arg0, %arg1 : i32, i32
  }
}

module attributes {stable_mosaic.version = 11 : i64} {
  func.func @_linear_kernel_wres(%arg0: i32, %arg1: i32, %arg2: memref<32x128xf32, #tpu.memory_space<vmem>>, %arg3: memref<128x512xf32, #tpu.memory_space<vmem>>, %arg4: memref<1x512xf32, #tpu.memory_space<vmem>>, %arg5: memref<32x512xf32, #tpu.memory_space<vmem>>) attributes {dimension_semantics = [#tpu.dimension_semantics<parallel>, #tpu.dimension_semantics<arbitrary>], iteration_bounds = array<i64: 1, 1>, scalar_prefetch = 0 : i64, scratch_operands = 0 : i64, tpu.core_type = #tpu.core_type<tc>, window_params = [{transform_indices = @transform_0, window_bounds = array<i64: 32, 128>}, {transform_indices = @transform_1, window_bounds = array<i64: 128, 512>}, {transform_indices = @transform_2, window_bounds = array<i64: 1, 512>}, {transform_indices = @transform_3, window_bounds = array<i64: 32, 512>}]} {
    %c0 = arith.constant 0 : index
    %c0_0 = arith.constant 0 : index
    %0 = vector.load %arg2[%c0, %c0_0] : memref<32x128xf32, #tpu.memory_space<vmem>>, vector<32x128xf32>
    %c0_1 = arith.constant 0 : index
    %c0_2 = arith.constant 0 : index
    %1 = vector.load %arg3[%c0_1, %c0_2] : memref<128x512xf32, #tpu.memory_space<vmem>>, vector<128x512xf32>
    %cst = arith.constant dense<0.000000e+00> : vector<32x512xf32>
    %2 = tpu.matmul %0, %1, %cst {dimension_numbers = #tpu.dot_dimension_numbers<[1], [0], [0], [1], [0, 0, 1, 1], [], []>} : vector<32x128xf32>, vector<128x512xf32>, vector<32x512xf32> -> vector<32x512xf32>
    %c0_3 = arith.constant 0 : index
    %c0_4 = arith.constant 0 : index
    %3 = vector.load %arg4[%c0_3, %c0_4] : memref<1x512xf32, #tpu.memory_space<vmem>>, vector<1x512xf32>
    %4 = vector.broadcast %3 : vector<1x512xf32> to vector<32x512xf32>
    %5 = arith.addf %2, %4 : vector<32x512xf32>
    %c0_5 = arith.constant 0 : index
    %c0_6 = arith.constant 0 : index
    %6 = vector.load %arg5[%c0_5, %c0_6] : memref<32x512xf32, #tpu.memory_space<vmem>>, vector<32x512xf32>
    tpu.vector_store %arg5[%c0_5, %c0_6], %5 {strides = array<i32>} : memref<32x512xf32, #tpu.memory_space<vmem>>, vector<32x512xf32>,
    return
  }
  func.func @transform_0(%arg0: i32, %arg1: i32) -> (i32, i32) {
    %c0_i32 = arith.constant 0 : i32
    %c0_i32_0 = arith.constant 0 : i32
    return %arg1, %c0_i32 : i32, i32
  }
  func.func @transform_1(%arg0: i32, %arg1: i32) -> (i32, i32) {
    %c0_i32 = arith.constant 0 : i32
    %c0_i32_0 = arith.constant 0 : i32
    return %c0_i32, %arg0 : i32, i32
  }
  func.func @transform_2(%arg0: i32, %arg1: i32) -> (i32, i32) {
    %c0_i32 = arith.constant 0 : i32
    %c0_i32_0 = arith.constant 0 : i32
    return %c0_i32, %arg0 : i32, i32
  }
  func.func @transform_3(%arg0: i32, %arg1: i32) -> (i32, i32) {
    %c0_i32 = arith.constant 0 : i32
    return %arg1, %arg0 : i32, i32
  }
}

</mosaic_0001>

<bundles_post_ra>
// kernel: gpt2_forward.13
= control target key start
LH: loop header
LB: loop body
LE: loop exit
PB: predicated region body
PF: predicated region fallthrough
CT: control target
= control target key end

     0   :  { %s259_s1 = inlined_call_operand.vmem [shape: f32[128,128], index: 1, kind: input, shape index: {}]   ;;  %s260_s2 = inlined_call_operand.vmem [shape: f32[1,128], index: 2, kind: input, shape index: {}]   ;;  %s261_s0 = inlined_call_operand.vmem [shape: f32[32,128], index: 0, kind: input, shape index: {}]   ;;  %s262_s3 = inlined_call_operand.vmem [shape: f32[32,128], index: 3, kind: input, shape index: {}]   ;;  %s263_s4 = inlined_call_operand.vmem [shape: f32[32,128], index: 4, kind: output, shape index: {}]  }
   0x1   :  { %v48_v0 = vld [vmem:[%s259_s1 + $0x78] sm:$0xff]  ;;  %v47_v1 = vld [vmem:[%s259_s1 + $0x70] sm:$0xff]  ;;  %v46_v2 = vld [vmem:[%s259_s1 + $0x68] sm:$0xff] }
   0x2   :  { %99 = vmatpush.msra.mxu2 %v48_v0  ;;  %100 = vmatpush.msra.mxu3 %v48_v0  ;;  %v45_v3 = vld [vmem:[%s259_s1 + $0x60] sm:$0xff]  ;;  %v44_v4 = vld [vmem:[%s259_s1 + $0x58] sm:$0xff]  ;;  %v43_v5 = vld [vmem:[%s259_s1 + $0x50] sm:$0xff] }
   0x3   :  { %53 = vmatpush.msra.mxu0 %v48_v0  ;;  %98 = vmatpush.msra.mxu1 %v48_v0  ;;  %v42_v6 = vld [vmem:[%s259_s1 + $0x48] sm:$0xff]  ;;  %v41_v7 = vld [vmem:[%s259_s1 + $0x40] sm:$0xff]  ;;  %v40_v8 = vld [vmem:[%s259_s1 + $0x38] sm:$0xff] }
   0x4   :  { %102 = vmatpush.msra.mxu2 %v47_v1  ;;  %103 = vmatpush.msra.mxu3 %v47_v1  ;;  %v39_v9 = vld [vmem:[%s259_s1 + $0x30] sm:$0xff]  ;;  %v38_v10 = vld [vmem:[%s259_s1 + $0x28] sm:$0xff]  ;;  %v37_v11 = vld [vmem:[%s259_s1 + $0x20] sm:$0xff] }
   0x5   :  { %54 = vmatpush.msra.mxu0 %v47_v1  ;;  %101 = vmatpush.msra.mxu1 %v47_v1  ;;  %v36_v12 = vld [vmem:[%s259_s1 + $0x18] sm:$0xff]  ;;  %v35_v13 = vld [vmem:[%s259_s1 + $0x10] sm:$0xff]  ;;  %v34_v14 = vld [vmem:[%s259_s1 + $0x8] sm:$0xff] }
   0x6   :  { %105 = vmatpush.msra.mxu2 %v46_v2  ;;  %106 = vmatpush.msra.mxu3 %v46_v2  ;;  %v33_v15 = vld [vmem:[%s259_s1] sm:$0xff]  ;;  %v23_v16 = vld [vmem:[%s261_s0 + $0x10] sm:$0xff]  ;;  %v24_v17 = vld [vmem:[%s261_s0 + $0x18] sm:$0xff] }
   0x7   :  { %55 = vmatpush.msra.mxu0 %v46_v2  ;;  %104 = vmatpush.msra.mxu1 %v46_v2  ;;  %v21_v18 = vld [vmem:[%s261_s0] sm:$0xff]  ;;  %v22_v19 = vld [vmem:[%s261_s0 + $0x8] sm:$0xff]  ;;  %v84_v30 = vld [vmem:[%s262_s3 + $0x10] sm:$0xff] }
   0x8   :  { %108 = vmatpush.msra.mxu2 %v45_v3  ;;  %109 = vmatpush.msra.mxu3 %v45_v3  ;;  %v146_v20 = vld [vmem:[%s260_s2] ss:$0 sm:$0xff]  ;;  %v83_v24 = vld [vmem:[%s262_s3 + $0x8] sm:$0xff]  ;;  %v85_v32 = vld [vmem:[%s262_s3 + $0x18] sm:$0xff] }
   0x9   :  { %56 = vmatpush.msra.mxu0 %v45_v3  ;;  %107 = vmatpush.msra.mxu1 %v45_v3  ;;  %v82_v22 = vld [vmem:[%s262_s3] sm:$0xff] }
   0xa   :  { %111 = vmatpush.msra.mxu2 %v44_v4  ;;  %112 = vmatpush.msra.mxu3 %v44_v4 }
   0xb   :  { %57 = vmatpush.msra.mxu0 %v44_v4  ;;  %110 = vmatpush.msra.mxu1 %v44_v4 }
   0xc   :  { %114 = vmatpush.msra.mxu2 %v43_v5  ;;  %115 = vmatpush.msra.mxu3 %v43_v5 }
   0xd   :  { %58 = vmatpush.msra.mxu0 %v43_v5  ;;  %113 = vmatpush.msra.mxu1 %v43_v5 }
   0xe   :  { %117 = vmatpush.msra.mxu2 %v42_v6  ;;  %118 = vmatpush.msra.mxu3 %v42_v6 }
   0xf   :  { %59 = vmatpush.msra.mxu0 %v42_v6  ;;  %116 = vmatpush.msra.mxu1 %v42_v6 }
  0x10   :  { %120 = vmatpush.msra.mxu2 %v41_v7  ;;  %121 = vmatpush.msra.mxu3 %v41_v7 }
  0x11   :  { %60 = vmatpush.msra.mxu0 %v41_v7  ;;  %119 = vmatpush.msra.mxu1 %v41_v7 }
  0x12   :  { %123 = vmatpush.msra.mxu2 %v40_v8  ;;  %124 = vmatpush.msra.mxu3 %v40_v8 }
  0x13   :  { %61 = vmatpush.msra.mxu0 %v40_v8  ;;  %122 = vmatpush.msra.mxu1 %v40_v8 }
  0x14   :  { %126 = vmatpush.msra.mxu2 %v39_v9  ;;  %127 = vmatpush.msra.mxu3 %v39_v9 }
  0x15   :  { %62 = vmatpush.msra.mxu0 %v39_v9  ;;  %125 = vmatpush.msra.mxu1 %v39_v9 }
  0x16   :  { %129 = vmatpush.msra.mxu2 %v38_v10  ;;  %130 = vmatpush.msra.mxu3 %v38_v10 }
  0x17   :  { %63 = vmatpush.msra.mxu0 %v38_v10  ;;  %128 = vmatpush.msra.mxu1 %v38_v10 }
  0x18   :  { %132 = vmatpush.msra.mxu2 %v37_v11  ;;  %133 = vmatpush.msra.mxu3 %v37_v11 }
  0x19   :  { %64 = vmatpush.msra.mxu0 %v37_v11  ;;  %131 = vmatpush.msra.mxu1 %v37_v11 }
  0x1a   :  { %135 = vmatpush.msra.mxu2 %v36_v12  ;;  %136 = vmatpush.msra.mxu3 %v36_v12 }
  0x1b   :  { %65 = vmatpush.msra.mxu0 %v36_v12  ;;  %134 = vmatpush.msra.mxu1 %v36_v12 }
  0x1c   :  { %138 = vmatpush.msra.mxu2 %v35_v13  ;;  %139 = vmatpush.msra.mxu3 %v35_v13 }
  0x1d   :  { %66 = vmatpush.msra.mxu0 %v35_v13  ;;  %137 = vmatpush.msra.mxu1 %v35_v13 }
  0x1e   :  { %141 = vmatpush.msra.mxu2 %v34_v14  ;;  %142 = vmatpush.msra.mxu3 %v34_v14 }
  0x1f   :  { %67 = vmatpush.msra.mxu0 %v34_v14  ;;  %140 = vmatpush.msra.mxu1 %v34_v14 }
  0x20   :  { %144 = vmatpush.msra.mxu2 %v33_v15  ;;  %145 = vmatpush.msra.mxu3 %v33_v15 }
  0x21   :  { %75 = vmatmul.f32.vlgmr.msra.gmra.mxu2 %v23_v16  ;;  %78 = vmatmul.f32.vlgmr.msra.gmra.mxu3 %v24_v17 }
  0x22   :  { %68 = vmatpush.msra.mxu0 %v33_v15  ;;  %143 = vmatpush.msra.mxu1 %v33_v15 }
  0x23   :  { %69 = vmatmul.f32.vlgmr.msra.gmra.mxu0 %v21_v18  ;;  %72 = vmatmul.f32.vlgmr.msra.gmra.mxu1 %v22_v19 }
  0xa0   :  { %v70_v21 = vpop.f32.mrf.mxu0  ;;  %v73_v23 = vpop.f32.mrf.mxu1 }
  0xa1   :  { %v71_v25 = vadd.f32 %v146_v20, %v70_v21  ;;  %v74_v26 = vadd.f32 %v146_v20, %v73_v23 }
  0xa3   :  { %v86_v27 = vadd.f32 %v82_v22, %v71_v25  ;;  %v87_v28 = vadd.f32 %v83_v24, %v74_v26 }
  0xa4   :  { %v76_v29 = vpop.f32.mrf.mxu2  ;;  %v79_v31 = vpop.f32.mrf.mxu3 }
  0xa5   :  { %90 = vst [vmem:[%s263_s4] sm:$0xff] %v86_v27  ;;  %v77_v33 = vadd.f32 %v146_v20, %v76_v29  ;;  %v80_v34 = vadd.f32 %v146_v20, %v79_v31 }
  0xa6   :  { %91 = vst [vmem:[%s263_s4 + $0x8] sm:$0xff] %v87_v28 }
  0xa7   :  { %v88_v35 = vadd.f32 %v84_v30, %v77_v33  ;;  %v89_v36 = vadd.f32 %v85_v32, %v80_v34 }
  0xa9   :  { %92 = vst [vmem:[%s263_s4 + $0x10] sm:$0xff] %v88_v35 }
  0xaa   :  { %93 = vst [vmem:[%s263_s4 + $0x18] sm:$0xff] %v89_v36 }

// kernel: gpt2_forward.11
= control target key start
LH: loop header
LB: loop body
LE: loop exit
PB: predicated region body
PF: predicated region fallthrough
CT: control target
= control target key end

     0   :  { %s873_s18 = smov 0   ;;  %s875_s19 = smov 0   ;;  %s1033_s0 = inlined_call_operand.vmem [shape: f32[32,128], index: 0, kind: input, shape index: {}]   ;;  %s1034_s1 = inlined_call_operand.vmem [shape: f32[1,128], index: 1, kind: input, shape index: {}]   ;;  %s1035_s2 = inlined_call_operand.vmem [shape: f32[1,128], index: 2, kind: input, shape index: {}]   ;;  %s1036_s3 = inlined_call_operand.vmem [shape: f32[128,384], index: 3, kind: input, shape index: {}]   ;;  %s1037_s4 = inlined_call_operand.vmem [shape: f32[1,384], index: 4, kind: input, shape index: {}]   ;;  %s1038_s5 = inlined_call_operand.vmem [shape: f32[32,384], index: 5, kind: output, shape index: {}]  }
   0x1   :  { %s877_s20 = smov 0   ;;  %s879_s21 = smov 0  }
   0x2   :  { %s881_s22 = smov 0  }
   0x3 LB: > { %s24_s23 = sadd.s32 1, %s836_s21  ;;  %s685_s24 = sadd.s32 4294967295, %s840_s22   ;;  %s840_s22 = sphi %s881_s22, %s15_s22   ;;  %s836_s21 = sphi %s879_s21, %s1043_s21   ;;  %s832_s20 = sphi %s877_s20, %s1042_s20   ;;  %s828_s19 = sphi %s875_s19, %s1041_s19   ;;  %s824_s18 = sphi %s873_s18, %s1040_s18  }
   0x4   : > { %p25_p0 = scmp.ge.s32.totalorder %s24_s23, 3  ;;  %p109_p1 = scmp.ne.s32.totalorder %s828_s19, %s824_s18 }
   0x5   : > { %p110_p2 = scmp.eq.s32.totalorder %s840_s22, 0  ;;  %p167_p4 = scmp.eq.s32.totalorder %s685_s24, 2 }
   0x6   : > { %s1045_s23 = smov (%p25_p0, %s24_s23), 0  ;;  %s102_s26 = sadd.s32 1, %s828_s19 }
   0x7   : > { %p111_p3 = por %p110_p2, %p109_p1  ;;  %s99_s25 = ssub.s32 %s836_s21, %s1045_s23 }
   0x8   : > { %p100_p5 = scmp.eq.s32.totalorder %s99_s25, 0  ;;  %p908_p6 = por %p167_p4, %p109_p1 }
   0x9   : > { %p689_p7 = scmp.ge.s32.totalorder %s840_s22, 3 }
   0xa   : > { %s913_s28 = scalar_select %p100_p5, %s828_s19, %s102_s26  }
   0xb   : > { %204 = sbr.rel (%p689_p7) target bundleno = 36 (0x24), region = 28 }
  0x10   : > { %207 = sbr.rel (!%p111_p3) target bundleno = 36 (0x24), region = 32  ;;  %s209_s29 = sand.u32 (%p111_p3), 1, %s828_s19  }
  0x11   : > { %s691_s30 = sshll.u32 (%p111_p3), %s836_s21, 3  ;;  %s690_s6 = sshll.u32 (%p111_p3), %s209_s29, 7 }
  0x12   : > { %s921_s9 = scalar_lea.vmem (%p111_p3), %s1036_s3, %s691_s30  ;;  %s211_s10 = scalar_lea.vmem (%p111_p3), [#allocation3], %s690_s6 }
  0x13   : > { %v272_v0 = vld [vmem:[%s921_s9] sm:$0xff] (%p111_p3)  ;;  %v274_v1 = vld [vmem:[%s921_s9 + $0x18] sm:$0xff] (%p111_p3)  ;;  %v276_v2 = vld [vmem:[%s921_s9 + $0x30] sm:$0xff] (%p111_p3) }
  0x14   : > { %273 = vst [vmem:[%s211_s10] sm:$0xff] (%p111_p3), %v272_v0  ;;  %v278_v3 = vld [vmem:[%s921_s9 + $0x48] sm:$0xff] (%p111_p3)  ;;  %v280_v4 = vld [vmem:[%s921_s9 + $0x60] sm:$0xff] (%p111_p3)  ;;  %v282_v5 = vld [vmem:[%s921_s9 + $0x78] sm:$0xff] (%p111_p3) }
  0x15   : > { %275 = vst [vmem:[%s211_s10 + $0x8] sm:$0xff] %v274_v1  ;;  %v284_v6 = vld [vmem:[%s921_s9 + $0x90] sm:$0xff]  ;;  %v286_v7 = vld [vmem:[%s921_s9 + $0xa8] sm:$0xff]  ;;  %v288_v8 = vld [vmem:[%s921_s9 + $0xc0] sm:$0xff] }
  0x16   : > { %277 = vst [vmem:[%s211_s10 + $0x10] sm:$0xff] %v276_v2  ;;  %v290_v9 = vld [vmem:[%s921_s9 + $0xd8] sm:$0xff]  ;;  %v292_v10 = vld [vmem:[%s921_s9 + $0xf0] sm:$0xff]  ;;  %v294_v11 = vld [vmem:[%s921_s9 + $0x108] sm:$0xff] }
  0x17   : > { %279 = vst [vmem:[%s211_s10 + $0x18] sm:$0xff] %v278_v3  ;;  %v296_v12 = vld [vmem:[%s921_s9 + $0x120] sm:$0xff]  ;;  %v298_v13 = vld [vmem:[%s921_s9 + $0x138] sm:$0xff]  ;;  %v300_v14 = vld [vmem:[%s921_s9 + $0x150] sm:$0xff] }
  0x18   : > { %281 = vst [vmem:[%s211_s10 + $0x20] sm:$0xff] %v280_v4  ;;  %v302_v15 = vld [vmem:[%s921_s9 + $0x168] sm:$0xff] }
  0x19   : > { %283 = vst [vmem:[%s211_s10 + $0x28] sm:$0xff] %v282_v5 }
  0x1a   : > { %285 = vst [vmem:[%s211_s10 + $0x30] sm:$0xff] %v284_v6 }
  0x1b   : > { %287 = vst [vmem:[%s211_s10 + $0x38] sm:$0xff] %v286_v7 }
  0x1c   : > { %289 = vst [vmem:[%s211_s10 + $0x40] sm:$0xff] %v288_v8 }
  0x1d   : > { %291 = vst [vmem:[%s211_s10 + $0x48] sm:$0xff] %v290_v9 }
  0x1e   : > { %293 = vst [vmem:[%s211_s10 + $0x50] sm:$0xff] %v292_v10 }
  0x1f   : > { %295 = vst [vmem:[%s211_s10 + $0x58] sm:$0xff] %v294_v11 }
  0x20   : > { %297 = vst [vmem:[%s211_s10 + $0x60] sm:$0xff] %v296_v12 }
  0x21   : > { %299 = vst [vmem:[%s211_s10 + $0x68] sm:$0xff] %v298_v13 }
  0x22   : > { %301 = vst [vmem:[%s211_s10 + $0x70] sm:$0xff] %v300_v14 }
  0x23   : > { %303 = vst [vmem:[%s211_s10 + $0x78] sm:$0xff] %v302_v15 }
  0x24 PF: > { %p692_p8 = scmp.ge.s32.totalorder %s840_s22, 1  ;;  %p314_p9 = scmp.lt.s32.totalorder %s840_s22, 4 }
  0x26   : > { %p315_p10 = pnand %p692_p8, %p314_p9 }
  0x27   : > { %s321_s11 = sand.u32 (!%p315_p10), 1, %s824_s18   ;;  %p361_p11 = scmp.lt.s32.totalorder (!%p315_p10), %s832_s20, 2 }
  0x28   : > { %318 = sbr.rel (%p315_p10) target bundleno = 504 (0x1f8), region = 74  ;;  %s693_s12 = sshll.u32 (!%p315_p10), %s321_s11, 7 }
  0x29   : > { %s694_s13 = sshll.u32 (!%p315_p10), %s321_s11, 5  ;;  %s950_s24 = scalar_lea.vmem (!%p315_p10), [#allocation3], %s693_s12 }
  0x2a   : > { %s952_s25 = scalar_lea.vmem (!%p315_p10), [#allocation4], %s694_s13  ;;  %p695_p12 = scmp.ne.s32.totalorder (!%p315_p10), %s832_s20, 0 }
  0x2d   : > { %s944_s14 = scalar_select %p361_p11, %s832_s20, 2 }
  0x2e   : > { %368 = sbr.rel (%p695_p12) target bundleno = 328 (0x148), region = 82 }
  0x2f   : > { %s363_s17 = scalar_lea.vmem %s1037_s4, %s944_s14 }
  0x33   : > { %v371_v16 = vld [vmem:[%s1033_s0 + $0x10] sm:$0xff]  ;;  %v369_v17 = vld [vmem:[%s1033_s0] sm:$0xff]  ;;  %v372_v18 = vld [vmem:[%s1033_s0 + $0x18] sm:$0xff]  ;;  %v842_v20 = vmov 128.0  }
  0x34   : > { %377 = vadd.xlane.f32.xlu1 %v371_v16  ;;  %373 = vadd.xlane.f32.xlu0 %v369_v17  ;;  %v370_v19 = vld [vmem:[%s1033_s0 + $0x8] sm:$0xff]  ;;  %791 = vrcp.f32 %v842_v20  ;;  %v789_v5 = vld [vmem:[%s1034_s1] ss:$0 sm:$0xff] }
  0x35   : > { %v790_v10 = vld [vmem:[%s1035_s2] ss:$0 sm:$0xff] }
  0x3a   : > { %v792_v21 = vpop.eup %791 }
  0x3b   : > { %v382_v22 = vmul.f32 128.0, %v792_v21  ;;  %vm386_vm0 = vweird.f32 %v792_v21 }
  0x3c   : > { %379 = vadd.xlane.f32.xlu1 %v372_v18  ;;  %375 = vadd.xlane.f32.xlu0 %v370_v19 }
  0x3d   : > { %v383_v23 = vsub.f32 1.0, %v382_v22 }
  0x3f   : > { %v384_v24 = vmul.f32 %v792_v21, %v383_v23 }
  0x41   : > { %v385_v25 = vadd.f32 %v792_v21, %v384_v24 }
  0x43   : > { %v387_v26 = vsel %vm386_vm0, %v792_v21, %v385_v25 }
  0xa7   : > { %v378_v27 = vpop.xlane.xlu1 %377  ;;  %v374_v28 = vpop.xlane.xlu0 %373 }
  0xa8   : > { %v390_v29 = vmul.f32 %v387_v26, %v378_v27  ;;  %v388_v30 = vmul.f32 %v387_v26, %v374_v28 }
  0xaa   : > { %v394_v31 = vsub.f32 %v371_v16, %v390_v29  ;;  %v392_v32 = vsub.f32 %v369_v17, %v388_v30 }
  0xac   : > { %v398_v33 = vmul.f32 %v394_v31, %v394_v31  ;;  %v396_v34 = vmul.f32 %v392_v32, %v392_v32 }
  0xae   : > { %404 = vadd.xlane.f32.xlu0 %v398_v33  ;;  %400 = vadd.xlane.f32.xlu2 %v396_v34 }
  0xaf   : > { %v380_v35 = vpop.xlane.xlu1 %379  ;;  %v376_v36 = vpop.xlane.xlu0 %375 }
  0xb0   : > { %v391_v37 = vmul.f32 %v387_v26, %v380_v35  ;;  %v389_v38 = vmul.f32 %v387_v26, %v376_v36 }
  0xb2   : > { %v967_v39 = vsub.f32 %v372_v18, %v391_v37  ;;  %v969_v40 = vsub.f32 %v370_v19, %v389_v38 }
  0xb4   : > { %v399_v41 = vmul.f32 %v967_v39, %v967_v39  ;;  %v397_v42 = vmul.f32 %v969_v40, %v969_v40 }
  0xb6   : > { %406 = vadd.xlane.f32.xlu1 %v399_v41  ;;  %402 = vadd.xlane.f32.xlu2 %v397_v42 }
 0x121   : > { %v401_v43 = vpop.xlane.xlu2 %400  ;;  %v405_v44 = vpop.xlane.xlu0 %404 }
 0x122   : > { %v408_v45 = vmul.f32 %v401_v43, %v387_v26  ;;  %v410_v46 = vmul.f32 %v405_v44, %v387_v26 }
 0x124   : > { %v412_v47 = vadd.f32 1e-05, %v408_v45  ;;  %v414_v48 = vadd.f32 1e-05, %v410_v46 }
 0x126   : > { %793 = vrsqrt.f32 %v412_v47  ;;  %vm422_vm3 = vweird.f32 %v412_v47  ;;  %vm442_vm5 = vweird.f32 %v414_v48 }
 0x127   : > { %795 = vrsqrt.f32 %v414_v48 }
 0x129   : > { %v407_v49 = vpop.xlane.xlu1 %406  ;;  %v403_v50 = vpop.xlane.xlu2 %402 }
 0x12a   : > { %v411_v51 = vmul.f32 %v407_v49, %v387_v26  ;;  %v409_v52 = vmul.f32 %v403_v50, %v387_v26 }
 0x12c   : > { %v794_v53 = vpop.eup %793  ;;  %v415_v54 = vadd.f32 1e-05, %v411_v51  ;;  %v413_v55 = vadd.f32 1e-05, %v409_v52 }
 0x12d   : > { %v796_v56 = vpop.eup %795  ;;  %v417_v57 = vmul.f32 %v794_v53, %v412_v47  ;;  %vm423_vm1 = vweird.f32 %v794_v53 }
 0x12e   : > { %v437_v58 = vmul.f32 %v796_v56, %v414_v48  ;;  %797 = vrsqrt.f32 %v415_v54  ;;  %vm443_vm2 = vweird.f32 %v796_v56  ;;  %vm424_vm4 = vmor %vm422_vm3, %vm423_vm1  ;;  %vm452_vm9 = vweird.f32 %v415_v54 }
 0x12f   : > { %v418_v59 = vmul.f32 %v794_v53, %v417_v57  ;;  %799 = vrsqrt.f32 %v413_v55  ;;  %vm444_vm6 = vmor %vm442_vm5, %vm443_vm2  ;;  %vm432_vm11 = vweird.f32 %v413_v55 }
 0x130   : > { %v438_v60 = vmul.f32 %v796_v56, %v437_v58 }
 0x131   : > { %v419_v61 = vmul.f32 0.5, %v418_v59 }
 0x132   : > { %v439_v62 = vmul.f32 0.5, %v438_v60 }
 0x133   : > { %v420_v63 = vsub.f32 1.5, %v419_v61 }
 0x134   : > { %v798_v0 = vpop.eup %797  ;;  %v440_v1 = vsub.f32 1.5, %v439_v62 }
 0x135   : > { %v800_v2 = vpop.eup %799  ;;  %v421_v3 = vmul.f32 %v794_v53, %v420_v63  ;;  %v447_v4 = vmul.f32 %v798_v0, %v415_v54  ;;  %vm453_vm7 = vweird.f32 %v798_v0 }
 0x136   : > { %v441_v6 = vmul.f32 %v796_v56, %v440_v1  ;;  %v427_v7 = vmul.f32 %v800_v2, %v413_v55  ;;  %vm433_vm8 = vweird.f32 %v800_v2  ;;  %vm454_vm10 = vmor %vm452_vm9, %vm453_vm7 }
 0x137   : > { %v425_v8 = vsel %vm424_vm4, %v794_v53, %v421_v3  ;;  %v448_v9 = vmul.f32 %v798_v0, %v447_v4  ;;  %vm434_vm12 = vmor %vm432_vm11, %vm433_vm8 }
 0x138   : > { %v456_v11 = vmul.f32 %v425_v8, %v392_v32  ;;  %v445_v12 = vsel %vm444_vm6, %v796_v56, %v441_v6  ;;  %v428_v13 = vmul.f32 %v800_v2, %v427_v7 }
 0x139   : > { %v458_v14 = vmul.f32 %v445_v12, %v394_v31  ;;  %v449_v15 = vmul.f32 0.5, %v448_v9 }
 0x13a   : > { %v464_v16 = vmul.f32 %v789_v5, %v456_v11  ;;  %v429_v17 = vmul.f32 0.5, %v428_v13 }
 0x13b   : > { %v466_v18 = vmul.f32 %v789_v5, %v458_v14  ;;  %v450_v19 = vsub.f32 1.5, %v449_v15 }
 0x13c   : > { %v472_v20 = vadd.f32 %v790_v10, %v464_v16  ;;  %v430_v21 = vsub.f32 1.5, %v429_v17 }
 0x13d   : > { %v474_v22 = vadd.f32 %v790_v10, %v466_v18  ;;  %v451_v23 = vmul.f32 %v798_v0, %v450_v19 }
 0x13e   : > { %476 = vst [vmem:[#allocation2 + $0x10] sm:$0xff] %v472_v20  ;;  %v431_v24 = vmul.f32 %v800_v2, %v430_v21 }
 0x13f   : > { %478 = vst [vmem:[#allocation2 + $0x18] sm:$0xff] %v474_v22  ;;  %v455_v25 = vsel %vm454_vm10, %v798_v0, %v451_v23 }
 0x140   : > { %v459_v26 = vmul.f32 %v455_v25, %v967_v39  ;;  %v435_v27 = vsel %vm434_vm12, %v800_v2, %v431_v24 }
 0x141   : > { %v457_v28 = vmul.f32 %v435_v27, %v969_v40 }
 0x142   : > { %v467_v29 = vmul.f32 %v789_v5, %v459_v26 }
 0x143   : > { %v465_v30 = vmul.f32 %v789_v5, %v457_v28 }
 0x144   : > { %v475_v31 = vadd.f32 %v790_v10, %v467_v29 }
 0x145   : > { %v473_v32 = vadd.f32 %v790_v10, %v465_v30 }
 0x146   : > { %479 = vst [vmem:[#allocation2 + $0x8] sm:$0xff] %v475_v31 }
 0x147   : > { %477 = vst [vmem:[#allocation2] sm:$0xff] %v473_v32 }
 0x148 PF: > { %v499_v33 = vld [vmem:[%s950_s24 + $0x78] sm:$0xff]  ;;  %v498_v34 = vld [vmem:[%s950_s24 + $0x70] sm:$0xff]  ;;  %v497_v35 = vld [vmem:[%s950_s24 + $0x68] sm:$0xff]  ;;  %s697_s14 = sshll.u32 (%p908_p6), %s832_s20, 3 }
 0x149   : > { %701 = vmatpush.msra.mxu2 %v499_v33  ;;  %702 = vmatpush.msra.mxu3 %v499_v33  ;;  %v496_v36 = vld [vmem:[%s950_s24 + $0x60] sm:$0xff]  ;;  %v495_v37 = vld [vmem:[%s950_s24 + $0x58] sm:$0xff]  ;;  %v494_v38 = vld [vmem:[%s950_s24 + $0x50] sm:$0xff]  ;;  %s548_s26 = scalar_lea.vmem (%p908_p6), %s1038_s5, %s697_s14 }
 0x14a   : > { %504 = vmatpush.msra.mxu0 %v499_v33  ;;  %700 = vmatpush.msra.mxu1 %v499_v33  ;;  %v493_v39 = vld [vmem:[%s950_s24 + $0x48] sm:$0xff]  ;;  %v492_v40 = vld [vmem:[%s950_s24 + $0x40] sm:$0xff]  ;;  %v491_v41 = vld [vmem:[%s950_s24 + $0x38] sm:$0xff] }
 0x14b   : > { %704 = vmatpush.msra.mxu2 %v498_v34  ;;  %705 = vmatpush.msra.mxu3 %v498_v34  ;;  %v490_v42 = vld [vmem:[%s950_s24 + $0x30] sm:$0xff]  ;;  %v489_v43 = vld [vmem:[%s950_s24 + $0x28] sm:$0xff]  ;;  %v488_v44 = vld [vmem:[%s950_s24 + $0x20] sm:$0xff] }
 0x14c   : > { %505 = vmatpush.msra.mxu0 %v498_v34  ;;  %703 = vmatpush.msra.mxu1 %v498_v34  ;;  %v487_v45 = vld [vmem:[%s950_s24 + $0x18] sm:$0xff]  ;;  %v486_v46 = vld [vmem:[%s950_s24 + $0x10] sm:$0xff]  ;;  %v485_v47 = vld [vmem:[%s950_s24 + $0x8] sm:$0xff] }
 0x14d   : > { %707 = vmatpush.msra.mxu2 %v497_v35  ;;  %708 = vmatpush.msra.mxu3 %v497_v35  ;;  %v484_v48 = vld [vmem:[%s950_s24] sm:$0xff]  ;;  %v482_v49 = vld [vmem:[#allocation2 + $0x18] sm:$0xff]  ;;  %v483_v50 = vld [vmem:[#allocation2 + $0x8] sm:$0xff] }
 0x14e   : > { %506 = vmatpush.msra.mxu0 %v497_v35  ;;  %706 = vmatpush.msra.mxu1 %v497_v35  ;;  %v480_v51 = vld [vmem:[#allocation2 + $0x10] sm:$0xff]  ;;  %v481_v52 = vld [vmem:[#allocation2] sm:$0xff] }
 0x14f   : > { %710 = vmatpush.msra.mxu2 %v496_v36  ;;  %711 = vmatpush.msra.mxu3 %v496_v36  ;;  %v801_v53 = vld [vmem:[%s363_s17] ss:$0 sm:$0xff] }
 0x150   : > { %507 = vmatpush.msra.mxu0 %v496_v36  ;;  %709 = vmatpush.msra.mxu1 %v496_v36 }
 0x151   : > { %713 = vmatpush.msra.mxu2 %v495_v37  ;;  %714 = vmatpush.msra.mxu3 %v495_v37 }
 0x152   : > { %508 = vmatpush.msra.mxu0 %v495_v37  ;;  %712 = vmatpush.msra.mxu1 %v495_v37 }
 0x153   : > { %716 = vmatpush.msra.mxu2 %v494_v38  ;;  %717 = vmatpush.msra.mxu3 %v494_v38 }
 0x154   : > { %509 = vmatpush.msra.mxu0 %v494_v38  ;;  %715 = vmatpush.msra.mxu1 %v494_v38 }
 0x155   : > { %719 = vmatpush.msra.mxu2 %v493_v39  ;;  %720 = vmatpush.msra.mxu3 %v493_v39 }
 0x156   : > { %510 = vmatpush.msra.mxu0 %v493_v39  ;;  %718 = vmatpush.msra.mxu1 %v493_v39 }
 0x157   : > { %722 = vmatpush.msra.mxu2 %v492_v40  ;;  %723 = vmatpush.msra.mxu3 %v492_v40 }
 0x158   : > { %511 = vmatpush.msra.mxu0 %v492_v40  ;;  %721 = vmatpush.msra.mxu1 %v492_v40 }
 0x159   : > { %725 = vmatpush.msra.mxu2 %v491_v41  ;;  %726 = vmatpush.msra.mxu3 %v491_v41 }
 0x15a   : > { %512 = vmatpush.msra.mxu0 %v491_v41  ;;  %724 = vmatpush.msra.mxu1 %v491_v41 }
 0x15b   : > { %728 = vmatpush.msra.mxu2 %v490_v42  ;;  %729 = vmatpush.msra.mxu3 %v490_v42 }
 0x15c   : > { %513 = vmatpush.msra.mxu0 %v490_v42  ;;  %727 = vmatpush.msra.mxu1 %v490_v42 }
 0x15d   : > { %731 = vmatpush.msra.mxu2 %v489_v43  ;;  %732 = vmatpush.msra.mxu3 %v489_v43 }
 0x15e   : > { %514 = vmatpush.msra.mxu0 %v489_v43  ;;  %730 = vmatpush.msra.mxu1 %v489_v43 }
 0x15f   : > { %734 = vmatpush.msra.mxu2 %v488_v44  ;;  %735 = vmatpush.msra.mxu3 %v488_v44 }
 0x160   : > { %515 = vmatpush.msra.mxu0 %v488_v44  ;;  %733 = vmatpush.msra.mxu1 %v488_v44 }
 0x161   : > { %737 = vmatpush.msra.mxu2 %v487_v45  ;;  %738 = vmatpush.msra.mxu3 %v487_v45 }
 0x162   : > { %516 = vmatpush.msra.mxu0 %v487_v45  ;;  %736 = vmatpush.msra.mxu1 %v487_v45 }
 0x163   : > { %740 = vmatpush.msra.mxu2 %v486_v46  ;;  %741 = vmatpush.msra.mxu3 %v486_v46 }
 0x164   : > { %517 = vmatpush.msra.mxu0 %v486_v46  ;;  %739 = vmatpush.msra.mxu1 %v486_v46 }
 0x165   : > { %743 = vmatpush.msra.mxu2 %v485_v47  ;;  %744 = vmatpush.msra.mxu3 %v485_v47 }
 0x166   : > { %518 = vmatpush.msra.mxu0 %v485_v47  ;;  %742 = vmatpush.msra.mxu1 %v485_v47 }
 0x167   : > { %746 = vmatpush.msra.mxu2 %v484_v48  ;;  %747 = vmatpush.msra.mxu3 %v484_v48 }
 0x168   : > { %526 = vmatmul.f32.vlgmr.msra.gmra.mxu2 %v482_v49  ;;  %529 = vmatmul.f32.vlgmr.msra.gmra.mxu3 %v483_v50 }
 0x169   : > { %519 = vmatpush.msra.mxu0 %v484_v48  ;;  %745 = vmatpush.msra.mxu1 %v484_v48 }
 0x16a   : > { %520 = vmatmul.f32.vlgmr.msra.gmra.mxu0 %v480_v51  ;;  %523 = vmatmul.f32.vlgmr.msra.gmra.mxu1 %v481_v52 }
 0x1e7   : > { %v521_v54 = vpop.f32.mrf.mxu0  ;;  %v524_v55 = vpop.f32.mrf.mxu1 }
 0x1e8   : > { %v522_v56 = vadd.f32 %v801_v53, %v521_v54  ;;  %v525_v57 = vadd.f32 %v801_v53, %v524_v55 }
 0x1ea   : > { %533 = vst [vmem:[%s952_s25] sm:$0xff] %v522_v56 }
 0x1eb   : > { %534 = vst [vmem:[%s952_s25 + $0x8] sm:$0xff] %v525_v57  ;;  %v527_v58 = vpop.f32.mrf.mxu2  ;;  %v530_v59 = vpop.f32.mrf.mxu3  ;;  %543 = sbr.rel (!%p908_p6) target bundleno = 504 (0x1f8), region = 86 }
 0x1ec   : > { %v528_v60 = vadd.f32 %v801_v53, %v527_v58  ;;  %v531_v61 = vadd.f32 %v801_v53, %v530_v59 }
 0x1ee   : > { %535 = vst [vmem:[%s952_s25 + $0x10] sm:$0xff] %v528_v60 }
 0x1ef   : > { %536 = vst [vmem:[%s952_s25 + $0x18] sm:$0xff] %v531_v61 }
 0x1f1   : > { %v583_v62 = vld [vmem:[%s952_s25] sm:$0xff] }
 0x1f2   : > { %v585_v63 = vld [vmem:[%s952_s25 + $0x8] sm:$0xff]  ;;  %584 = vst [vmem:[%s548_s26] sm:$0xff] %v583_v62 }
 0x1f3   : > { %586 = vst [vmem:[%s548_s26 + $0x18] sm:$0xff] %v585_v63 }
 0x1f5   : > { %v587_v0 = vld [vmem:[%s952_s25 + $0x10] sm:$0xff] }
 0x1f6   : > { %v589_v1 = vld [vmem:[%s952_s25 + $0x18] sm:$0xff]  ;;  %588 = vst [vmem:[%s548_s26 + $0x30] sm:$0xff] %v587_v0 }
 0x1f7   : > { %590 = vst [vmem:[%s548_s26 + $0x48] sm:$0xff] %v589_v1 }
 0x1f8 PF: > { %s15_s22 = sadd.s32 1, %s840_s22   ;;  %s1040_s18 = smov %s828_s19 }
 0x1f9   : > { %p12_p13 = scmp.ge.s32.totalorder %s15_s22, 5   ;;  %s1041_s19 = smov %s913_s28 }
 0x1fa   : > { %s1042_s20 = smov %s836_s21  ;;  %s1043_s21 = smov %s1045_s23 }
 0x1fb   :  { %14 = sbr.rel (!%p12_p13) target bundleno = 3 (0x3), region = 161 }

// kernel: gpt2_forward.14
= control target key start
LH: loop header
LB: loop body
LE: loop exit
PB: predicated region body
PF: predicated region fallthrough
CT: control target
= control target key end

     0   :  { %v538_v4 = vmov 128.0   ;;  %s1002_s0 = inlined_call_operand.vmem [shape: f32[32,128], index: 0, kind: input, shape index: {}]   ;;  %s1003_s3 = inlined_call_operand.vmem [shape: f32[128,512], index: 3, kind: input, shape index: {}]   ;;  %s1004_s1 = inlined_call_operand.vmem [shape: f32[1,128], index: 1, kind: input, shape index: {}]   ;;  %s1005_s2 = inlined_call_operand.vmem [shape: f32[1,128], index: 2, kind: input, shape index: {}]   ;;  %s1006_s4 = inlined_call_operand.vmem [shape: f32[1,512], index: 4, kind: input, shape index: {}]   ;;  %s1007_s5 = inlined_call_operand.vmem [shape: f32[32,512], index: 5, kind: output, shape index: {}]  }
   0x1   :  { %v26_v0 = vld [vmem:[%s1002_s0 + $0x10] sm:$0xff]  ;;  %v24_v1 = vld [vmem:[%s1002_s0] sm:$0xff]  ;;  %v27_v2 = vld [vmem:[%s1002_s0 + $0x18] sm:$0xff]  ;;  %496 = vrcp.f32 %v538_v4 }
   0x2   :  { %32 = vadd.xlane.f32.xlu1 %v26_v0  ;;  %28 = vadd.xlane.f32.xlu0 %v24_v1  ;;  %v25_v3 = vld [vmem:[%s1002_s0 + $0x8] sm:$0xff]  ;;  %v199_v7 = vld [vmem:[%s1003_s3 + $0x1e0] sm:$0xff]  ;;  %v201_v9 = vld [vmem:[%s1003_s3 + $0x1f0] sm:$0xff] }
   0x3   :  { %v200_v8 = vld [vmem:[%s1003_s3 + $0x1e8] sm:$0xff]  ;;  %213 = vmatpush.msra.mxu0 %v199_v7  ;;  %v202_v10 = vld [vmem:[%s1003_s3 + $0x1f8] sm:$0xff]  ;;  %v195_v11 = vld [vmem:[%s1003_s3 + $0x1c0] sm:$0xff]  ;;  %271 = vmatpush.msra.mxu2 %v201_v9 }
   0x4   :  { %242 = vmatpush.msra.mxu1 %v200_v8  ;;  %v196_v12 = vld [vmem:[%s1003_s3 + $0x1c8] sm:$0xff]  ;;  %300 = vmatpush.msra.mxu3 %v202_v10  ;;  %v197_v13 = vld [vmem:[%s1003_s3 + $0x1d0] sm:$0xff]  ;;  %v198_v14 = vld [vmem:[%s1003_s3 + $0x1d8] sm:$0xff] }
   0x5   :  { %214 = vmatpush.msra.mxu0 %v195_v11  ;;  %272 = vmatpush.msra.mxu2 %v197_v13  ;;  %v191_v35 = vld [vmem:[%s1003_s3 + $0x1a0] sm:$0xff]  ;;  %v192_v36 = vld [vmem:[%s1003_s3 + $0x1a8] sm:$0xff]  ;;  %v193_v37 = vld [vmem:[%s1003_s3 + $0x1b0] sm:$0xff] }
   0x6   :  { %243 = vmatpush.msra.mxu1 %v196_v12  ;;  %301 = vmatpush.msra.mxu3 %v198_v14  ;;  %v194_v38 = vld [vmem:[%s1003_s3 + $0x1b8] sm:$0xff]  ;;  %v187_v39 = vld [vmem:[%s1003_s3 + $0x180] sm:$0xff]  ;;  %v188_v40 = vld [vmem:[%s1003_s3 + $0x188] sm:$0xff] }
   0x7   :  { %v497_v5 = vpop.eup %496  ;;  %215 = vmatpush.msra.mxu0 %v191_v35  ;;  %273 = vmatpush.msra.mxu2 %v193_v37  ;;  %v189_v41 = vld [vmem:[%s1003_s3 + $0x190] sm:$0xff]  ;;  %v190_v42 = vld [vmem:[%s1003_s3 + $0x198] sm:$0xff]  ;;  %v183_v43 = vld [vmem:[%s1003_s3 + $0x160] sm:$0xff] }
   0x8   :  { %v37_v6 = vmul.f32 128.0, %v497_v5  ;;  %vm41_vm0 = vweird.f32 %v497_v5  ;;  %244 = vmatpush.msra.mxu1 %v192_v36  ;;  %302 = vmatpush.msra.mxu3 %v194_v38  ;;  %v184_v44 = vld [vmem:[%s1003_s3 + $0x168] sm:$0xff]  ;;  %v185_v45 = vld [vmem:[%s1003_s3 + $0x170] sm:$0xff]  ;;  %v186_v46 = vld [vmem:[%s1003_s3 + $0x178] sm:$0xff] }
   0x9   :  { %216 = vmatpush.msra.mxu0 %v187_v39  ;;  %274 = vmatpush.msra.mxu2 %v189_v41  ;;  %v179_v47 = vld [vmem:[%s1003_s3 + $0x140] sm:$0xff]  ;;  %v180_v48 = vld [vmem:[%s1003_s3 + $0x148] sm:$0xff]  ;;  %v181_v49 = vld [vmem:[%s1003_s3 + $0x150] sm:$0xff] }
   0xa   :  { %34 = vadd.xlane.f32.xlu1 %v27_v2  ;;  %30 = vadd.xlane.f32.xlu0 %v25_v3  ;;  %v38_v15 = vsub.f32 1.0, %v37_v6  ;;  %v182_v50 = vld [vmem:[%s1003_s3 + $0x158] sm:$0xff]  ;;  %v175_v51 = vld [vmem:[%s1003_s3 + $0x120] sm:$0xff]  ;;  %v176_v52 = vld [vmem:[%s1003_s3 + $0x128] sm:$0xff] }
   0xb   :  { %245 = vmatpush.msra.mxu1 %v188_v40  ;;  %303 = vmatpush.msra.mxu3 %v190_v42  ;;  %v177_v53 = vld [vmem:[%s1003_s3 + $0x130] sm:$0xff]  ;;  %v178_v54 = vld [vmem:[%s1003_s3 + $0x138] sm:$0xff]  ;;  %v171_v55 = vld [vmem:[%s1003_s3 + $0x100] sm:$0xff] }
   0xc   :  { %v39_v16 = vmul.f32 %v497_v5, %v38_v15  ;;  %217 = vmatpush.msra.mxu0 %v183_v43  ;;  %275 = vmatpush.msra.mxu2 %v185_v45  ;;  %v172_v56 = vld [vmem:[%s1003_s3 + $0x108] sm:$0xff]  ;;  %v173_v57 = vld [vmem:[%s1003_s3 + $0x110] sm:$0xff]  ;;  %v174_v58 = vld [vmem:[%s1003_s3 + $0x118] sm:$0xff] }
   0xd   :  { %246 = vmatpush.msra.mxu1 %v184_v44  ;;  %304 = vmatpush.msra.mxu3 %v186_v46  ;;  %v167_v59 = vld [vmem:[%s1003_s3 + $0xe0] sm:$0xff]  ;;  %v168_v60 = vld [vmem:[%s1003_s3 + $0xe8] sm:$0xff]  ;;  %v169_v61 = vld [vmem:[%s1003_s3 + $0xf0] sm:$0xff] }
   0xe   :  { %v40_v17 = vadd.f32 %v497_v5, %v39_v16  ;;  %218 = vmatpush.msra.mxu0 %v179_v47  ;;  %276 = vmatpush.msra.mxu2 %v181_v49  ;;  %v170_v62 = vld [vmem:[%s1003_s3 + $0xf8] sm:$0xff]  ;;  %v163_v63 = vld [vmem:[%s1003_s3 + $0xc0] sm:$0xff]  ;;  %v160_v4 = vld [vmem:[%s1003_s3 + $0xa8] sm:$0xff] }
   0xf   :  { %247 = vmatpush.msra.mxu1 %v180_v48  ;;  %305 = vmatpush.msra.mxu3 %v182_v50  ;;  %v162_v6 = vld [vmem:[%s1003_s3 + $0xb8] sm:$0xff]  ;;  %v155_v7 = vld [vmem:[%s1003_s3 + $0x80] sm:$0xff]  ;;  %v156_v8 = vld [vmem:[%s1003_s3 + $0x88] sm:$0xff] }
  0x10   :  { %v605_v18 = vsel %vm41_vm0, %v497_v5, %v40_v17  ;;  %219 = vmatpush.msra.mxu0 %v175_v51  ;;  %277 = vmatpush.msra.mxu2 %v177_v53  ;;  %v161_v5 = vld [vmem:[%s1003_s3 + $0xb0] sm:$0xff]  ;;  %v158_v10 = vld [vmem:[%s1003_s3 + $0x98] sm:$0xff]  ;;  %v151_v11 = vld [vmem:[%s1003_s3 + $0x60] sm:$0xff] }
  0x11   :  { %248 = vmatpush.msra.mxu1 %v176_v52  ;;  %306 = vmatpush.msra.mxu3 %v178_v54  ;;  %v157_v9 = vld [vmem:[%s1003_s3 + $0x90] sm:$0xff]  ;;  %v152_v12 = vld [vmem:[%s1003_s3 + $0x68] sm:$0xff]  ;;  %v154_v14 = vld [vmem:[%s1003_s3 + $0x78] sm:$0xff] }
  0x12   :  { %220 = vmatpush.msra.mxu0 %v171_v55  ;;  %278 = vmatpush.msra.mxu2 %v173_v57  ;;  %v153_v13 = vld [vmem:[%s1003_s3 + $0x70] sm:$0xff]  ;;  %v147_v15 = vld [vmem:[%s1003_s3 + $0x40] sm:$0xff]  ;;  %v148_v16 = vld [vmem:[%s1003_s3 + $0x48] sm:$0xff] }
  0x13   :  { %249 = vmatpush.msra.mxu1 %v172_v56  ;;  %307 = vmatpush.msra.mxu3 %v174_v58  ;;  %v149_v17 = vld [vmem:[%s1003_s3 + $0x50] sm:$0xff]  ;;  %v494_v57 = vld [vmem:[%s1004_s1] ss:$0 sm:$0xff] }
  0x14   :  { %221 = vmatpush.msra.mxu0 %v167_v59  ;;  %279 = vmatpush.msra.mxu2 %v169_v61  ;;  %v495_v61 = vld [vmem:[%s1005_s2] ss:$0 sm:$0xff] }
  0x15   :  { %250 = vmatpush.msra.mxu1 %v168_v60  ;;  %308 = vmatpush.msra.mxu3 %v170_v62 }
  0x16   :  { %222 = vmatpush.msra.mxu0 %v163_v63 }
  0x75   :  { %v33_v19 = vpop.xlane.xlu1 %32  ;;  %v29_v20 = vpop.xlane.xlu0 %28 }
  0x76   :  { %v45_v21 = vmul.f32 %v605_v18, %v33_v19  ;;  %v43_v22 = vmul.f32 %v605_v18, %v29_v20  ;;  %v150_v19 = vld [vmem:[%s1003_s3 + $0x58] sm:$0xff]  ;;  %v143_v20 = vld [vmem:[%s1003_s3 + $0x20] sm:$0xff] }
  0x78   :  { %v609_v23 = vsub.f32 %v26_v0, %v45_v21  ;;  %v611_v24 = vsub.f32 %v24_v1, %v43_v22  ;;  %v164_v0 = vld [vmem:[%s1003_s3 + $0xc8] sm:$0xff]  ;;  %v165_v1 = vld [vmem:[%s1003_s3 + $0xd0] sm:$0xff] }
  0x79   :  { %251 = vmatpush.msra.mxu1 %v164_v0  ;;  %280 = vmatpush.msra.mxu2 %v165_v1  ;;  %v144_v21 = vld [vmem:[%s1003_s3 + $0x28] sm:$0xff]  ;;  %v145_v22 = vld [vmem:[%s1003_s3 + $0x30] sm:$0xff] }
  0x7a   :  { %v53_v25 = vmul.f32 %v609_v23, %v609_v23  ;;  %v51_v26 = vmul.f32 %v611_v24, %v611_v24 }
  0x7b   :  { %252 = vmatpush.msra.mxu1 %v160_v4  ;;  %281 = vmatpush.msra.mxu2 %v161_v5 }
  0x7c   :  { %59 = vadd.xlane.f32.xlu0 %v53_v25  ;;  %55 = vadd.xlane.f32.xlu2 %v51_v26  ;;  %v146_v25 = vld [vmem:[%s1003_s3 + $0x38] sm:$0xff]  ;;  %v139_v26 = vld [vmem:[%s1003_s3] sm:$0xff] }
  0x7d   :  { %v35_v27 = vpop.xlane.xlu1 %34  ;;  %v31_v28 = vpop.xlane.xlu0 %30  ;;  %253 = vmatpush.msra.mxu1 %v156_v8  ;;  %282 = vmatpush.msra.mxu2 %v157_v9 }
  0x7e   :  { %v46_v29 = vmul.f32 %v605_v18, %v35_v27  ;;  %v44_v30 = vmul.f32 %v605_v18, %v31_v28  ;;  %v140_v27 = vld [vmem:[%s1003_s3 + $0x8] sm:$0xff]  ;;  %v141_v28 = vld [vmem:[%s1003_s3 + $0x10] sm:$0xff] }
  0x7f   :  { %254 = vmatpush.msra.mxu1 %v152_v12  ;;  %283 = vmatpush.msra.mxu2 %v153_v13 }
  0x80   :  { %v619_v31 = vsub.f32 %v27_v2, %v46_v29  ;;  %v621_v32 = vsub.f32 %v25_v3, %v44_v30  ;;  %v166_v2 = vld [vmem:[%s1003_s3 + $0xd8] sm:$0xff]  ;;  %v159_v3 = vld [vmem:[%s1003_s3 + $0xa0] sm:$0xff] }
  0x81   :  { %309 = vmatpush.msra.mxu3 %v166_v2  ;;  %223 = vmatpush.msra.mxu0 %v159_v3  ;;  %v142_v29 = vld [vmem:[%s1003_s3 + $0x18] sm:$0xff] }
  0x82   :  { %v54_v33 = vmul.f32 %v619_v31, %v619_v31  ;;  %v52_v34 = vmul.f32 %v621_v32, %v621_v32  ;;  %255 = vmatpush.msra.mxu1 %v148_v16  ;;  %284 = vmatpush.msra.mxu2 %v149_v17 }
  0x83   :  { %310 = vmatpush.msra.mxu3 %v162_v6  ;;  %224 = vmatpush.msra.mxu0 %v155_v7 }
  0x84   :  { %61 = vadd.xlane.f32.xlu1 %v54_v33  ;;  %57 = vadd.xlane.f32.xlu2 %v52_v34 }
  0x85   :  { %311 = vmatpush.msra.mxu3 %v158_v10  ;;  %225 = vmatpush.msra.mxu0 %v151_v11 }
  0x86   :  { %256 = vmatpush.msra.mxu1 %v144_v21  ;;  %285 = vmatpush.msra.mxu2 %v145_v22 }
  0x87   :  { %312 = vmatpush.msra.mxu3 %v154_v14  ;;  %226 = vmatpush.msra.mxu0 %v147_v15 }
  0x88   :  { %257 = vmatpush.msra.mxu1 %v140_v27  ;;  %286 = vmatpush.msra.mxu2 %v141_v28 }
  0x89   :  { %313 = vmatpush.msra.mxu3 %v150_v19  ;;  %227 = vmatpush.msra.mxu0 %v143_v20 }
  0x8b   :  { %314 = vmatpush.msra.mxu3 %v146_v25  ;;  %228 = vmatpush.msra.mxu0 %v139_v26 }
  0x8d   :  { %315 = vmatpush.msra.mxu3 %v142_v29 }
  0xef   :  { %v56_v30 = vpop.xlane.xlu2 %55  ;;  %v60_v33 = vpop.xlane.xlu0 %59 }
  0xf0   :  { %v63_v34 = vmul.f32 %v56_v30, %v605_v18  ;;  %v65_v35 = vmul.f32 %v60_v33, %v605_v18 }
  0xf2   :  { %v67_v36 = vadd.f32 1e-05, %v63_v34  ;;  %v69_v37 = vadd.f32 1e-05, %v65_v35 }
  0xf4   :  { %498 = vrsqrt.f32 %v67_v36  ;;  %vm77_vm2 = vweird.f32 %v67_v36  ;;  %vm97_vm4 = vweird.f32 %v69_v37 }
  0xf5   :  { %500 = vrsqrt.f32 %v69_v37 }
  0xf7   :  { %v62_v38 = vpop.xlane.xlu1 %61  ;;  %v58_v39 = vpop.xlane.xlu2 %57 }
  0xf8   :  { %v66_v40 = vmul.f32 %v62_v38, %v605_v18  ;;  %v64_v41 = vmul.f32 %v58_v39, %v605_v18 }
  0xfa   :  { %v499_v42 = vpop.eup %498  ;;  %v70_v43 = vadd.f32 1e-05, %v66_v40  ;;  %v68_v44 = vadd.f32 1e-05, %v64_v41 }
  0xfb   :  { %v501_v45 = vpop.eup %500  ;;  %v72_v46 = vmul.f32 %v499_v42, %v67_v36  ;;  %vm78_vm1 = vweird.f32 %v499_v42 }
  0xfc   :  { %v92_v47 = vmul.f32 %v501_v45, %v69_v37  ;;  %502 = vrsqrt.f32 %v70_v43  ;;  %vm79_vm3 = vmor %vm77_vm2, %vm78_vm1  ;;  %vm98_vm5 = vweird.f32 %v501_v45  ;;  %vm87_vm8 = vweird.f32 %v68_v44 }
  0xfd   :  { %v73_v48 = vmul.f32 %v499_v42, %v72_v46  ;;  %504 = vrsqrt.f32 %v68_v44  ;;  %vm806_vm7 = vmor %vm97_vm4, %vm98_vm5  ;;  %vm107_vm10 = vweird.f32 %v70_v43 }
  0xfe   :  { %v93_v50 = vmul.f32 %v501_v45, %v92_v47 }
  0xff   :  { %v74_v49 = vmul.f32 0.5, %v73_v48 }
 0x100   :  { %v94_v55 = vmul.f32 0.5, %v93_v50 }
 0x101   :  { %v75_v51 = vsub.f32 1.5, %v74_v49 }
 0x102   :  { %v503_v52 = vpop.eup %502  ;;  %v95_v62 = vsub.f32 1.5, %v94_v55 }
 0x103   :  { %v505_v53 = vpop.eup %504  ;;  %v76_v54 = vmul.f32 %v499_v42, %v75_v51  ;;  %v102_v18 = vmul.f32 %v503_v52, %v70_v43  ;;  %vm108_vm11 = vweird.f32 %v503_v52 }
 0x104   :  { %v82_v56 = vmul.f32 %v505_v53, %v68_v44  ;;  %vm88_vm6 = vweird.f32 %v505_v53  ;;  %v96_v4 = vmul.f32 %v501_v45, %v95_v62  ;;  %vm109_vm12 = vmor %vm107_vm10, %vm108_vm11 }
 0x105   :  { %v80_v58 = vsel %vm79_vm3, %v499_v42, %v76_v54  ;;  %v103_v63 = vmul.f32 %v503_v52, %v102_v18  ;;  %vm89_vm9 = vmor %vm87_vm8, %vm88_vm6 }
 0x106   :  { %v111_v59 = vmul.f32 %v80_v58, %v611_v24  ;;  %v83_v60 = vmul.f32 %v505_v53, %v82_v56  ;;  %v100_v9 = vsel %vm806_vm7, %v501_v45, %v96_v4 }
 0x107   :  { %v104_v24 = vmul.f32 0.5, %v103_v63  ;;  %v113_v12 = vmul.f32 %v100_v9, %v609_v23  ;;  %v203_v23 = vld [vmem:[%s1006_s4] sm:$0xf] }
 0x108   :  { %v84_v0 = vmul.f32 0.5, %v83_v60  ;;  %v119_v1 = vmul.f32 %v494_v57, %v111_v59  ;;  %v818_v21 = vperm.slane %v203_v23, 0  ;;  %v820_v22 = vperm.slane %v203_v23, 1 }
 0x109   :  { %v105_v10 = vsub.f32 1.5, %v104_v24  ;;  %v121_v15 = vmul.f32 %v494_v57, %v113_v12  ;;  %v832_v30 = vperm.slane %v203_v23, 2  ;;  %v834_v33 = vperm.slane %v203_v23, 3 }
 0x10a   :  { %v85_v2 = vsub.f32 1.5, %v84_v0  ;;  %v127_v3 = vadd.f32 %v495_v61, %v119_v1 }
 0x10b   :  { %v106_v14 = vmul.f32 %v503_v52, %v105_v10  ;;  %v129_v17 = vadd.f32 %v495_v61, %v121_v15 }
 0x10c   :  { %v86_v6 = vmul.f32 %v505_v53, %v85_v2  ;;  %229 = vmatmul.f32.vlgmr.msra.gmra.mxu0 %v127_v3  ;;  %258 = vmatmul.f32.vlgmr.msra.gmra.mxu1 %v127_v3 }
 0x10d   :  { %287 = vmatmul.f32.vlgmr.msra.gmra.mxu2 %v127_v3  ;;  %316 = vmatmul.f32.vlgmr.msra.gmra.mxu3 %v127_v3  ;;  %v110_v16 = vsel %vm109_vm12, %v503_v52, %v106_v14 }
 0x10e   :  { %v90_v7 = vsel %vm89_vm9, %v505_v53, %v86_v6 }
 0x10f   :  { %v112_v8 = vmul.f32 %v90_v7, %v621_v32  ;;  %v114_v32 = vmul.f32 %v110_v16, %v619_v31 }
 0x111   :  { %v120_v11 = vmul.f32 %v494_v57, %v112_v8  ;;  %v122_v19 = vmul.f32 %v494_v57, %v114_v32 }
 0x113   :  { %v128_v13 = vadd.f32 %v495_v61, %v120_v11  ;;  %v130_v20 = vadd.f32 %v495_v61, %v122_v19 }
 0x115   :  { %232 = vmatmul.f32.gmra.mxu0 %v128_v13  ;;  %261 = vmatmul.f32.gmra.mxu1 %v128_v13 }
 0x116   :  { %290 = vmatmul.f32.gmra.mxu2 %v128_v13  ;;  %319 = vmatmul.f32.gmra.mxu3 %v128_v13 }
 0x11d   :  { %235 = vmatmul.f32.gmra.mxu0 %v129_v17  ;;  %264 = vmatmul.f32.gmra.mxu1 %v129_v17 }
 0x11e   :  { %293 = vmatmul.f32.gmra.mxu2 %v129_v17  ;;  %322 = vmatmul.f32.gmra.mxu3 %v129_v17 }
 0x125   :  { %238 = vmatmul.f32.gmra.mxu0 %v130_v20  ;;  %267 = vmatmul.f32.gmra.mxu1 %v130_v20 }
 0x126   :  { %296 = vmatmul.f32.gmra.mxu2 %v130_v20  ;;  %325 = vmatmul.f32.gmra.mxu3 %v130_v20 }
 0x189   :  { %v230_v31 = vpop.f32.mrf.mxu0  ;;  %v259_v25 = vpop.f32.mrf.mxu1 }
 0x18a   :  { %v823_v26 = vadd.f32 %v230_v31, %v818_v21  ;;  %v826_v27 = vadd.f32 %v259_v25, %v820_v22 }
 0x18c   :  { %v329_v28 = vmul.f32 %v823_v26, %v823_v26  ;;  %v330_v29 = vmul.f32 %v826_v27, %v826_v27 }
 0x18e   :  { %v345_v34 = vmul.f32 %v329_v28, %v823_v26  ;;  %v346_v35 = vmul.f32 %v330_v29, %v826_v27 }
 0x190   :  { %v361_v36 = vmul.f32 0.044715, %v345_v34  ;;  %v362_v37 = vmul.f32 0.044715, %v346_v35  ;;  %v288_v38 = vpop.f32.mrf.mxu2  ;;  %v317_v39 = vpop.f32.mrf.mxu3 }
 0x191   :  { %v839_v40 = vadd.f32 %v288_v38, %v832_v30  ;;  %v842_v41 = vadd.f32 %v317_v39, %v834_v33 }
 0x192   :  { %v377_v42 = vadd.f32 %v361_v36, %v823_v26  ;;  %v378_v43 = vadd.f32 %v362_v37, %v826_v27  ;;  %v233_v44 = vpop.f32.mrf.mxu0  ;;  %v262_v45 = vpop.f32.mrf.mxu1 }
 0x193   :  { %v331_v46 = vmul.f32 %v839_v40, %v839_v40  ;;  %v332_v47 = vmul.f32 %v842_v41, %v842_v41  ;;  %v851_v48 = vadd.f32 %v233_v44, %v818_v21  ;;  %v854_v49 = vadd.f32 %v262_v45, %v820_v22 }
 0x194   :  { %v393_v50 = vmul.f32 0.7978846, %v377_v42  ;;  %v394_v51 = vmul.f32 0.7978846, %v378_v43 }
 0x195   :  { %v347_v52 = vmul.f32 %v331_v46, %v839_v40  ;;  %v348_v53 = vmul.f32 %v332_v47, %v842_v41  ;;  %v333_v54 = vmul.f32 %v851_v48, %v851_v48  ;;  %v334_v55 = vmul.f32 %v854_v49, %v854_v49 }
 0x196   :  { %506 = vtanh.f32 %v393_v50 }
 0x197   :  { %508 = vtanh.f32 %v394_v51  ;;  %v363_v18 = vmul.f32 0.044715, %v347_v52  ;;  %v364_v56 = vmul.f32 0.044715, %v348_v53  ;;  %v349_v57 = vmul.f32 %v333_v54, %v851_v48 }
 0x198   :  { %v350_v58 = vmul.f32 %v334_v55, %v854_v49 }
 0x199   :  { %v379_v59 = vadd.f32 %v363_v18, %v839_v40  ;;  %v380_v60 = vadd.f32 %v364_v56, %v842_v41  ;;  %v365_v61 = vmul.f32 0.044715, %v349_v57  ;;  %v291_v62 = vpop.f32.mrf.mxu2  ;;  %v320_v63 = vpop.f32.mrf.mxu3 }
 0x19a   :  { %v366_v0 = vmul.f32 0.044715, %v350_v58  ;;  %v867_v1 = vadd.f32 %v291_v62, %v832_v30  ;;  %v870_v2 = vadd.f32 %v320_v63, %v834_v33  ;;  %v236_v3 = vpop.f32.mrf.mxu0  ;;  %v265_v4 = vpop.f32.mrf.mxu1 }
 0x19b   :  { %v395_v5 = vmul.f32 0.7978846, %v379_v59  ;;  %v396_v24 = vmul.f32 0.7978846, %v380_v60  ;;  %v381_v6 = vadd.f32 %v365_v61, %v851_v48  ;;  %v874_v7 = vadd.f32 %v236_v3, %v818_v21 }
 0x19c   :  { %v507_v8 = vpop.eup %506  ;;  %v382_v9 = vadd.f32 %v366_v0, %v854_v49  ;;  %v335_v10 = vmul.f32 %v867_v1, %v867_v1  ;;  %v336_v11 = vmul.f32 %v870_v2, %v870_v2  ;;  %v882_v12 = vadd.f32 %v265_v4, %v820_v22 }
 0x19d   :  { %v509_v13 = vpop.eup %508  ;;  %v425_v14 = vadd.f32 1.0, %v507_v8  ;;  %510 = vtanh.f32 %v395_v5  ;;  %v397_v15 = vmul.f32 0.7978846, %v381_v6  ;;  %v337_v16 = vmul.f32 %v874_v7, %v874_v7 }
 0x19e   :  { %v426_v32 = vadd.f32 1.0, %v509_v13  ;;  %512 = vtanh.f32 %v396_v24  ;;  %v398_v17 = vmul.f32 0.7978846, %v382_v9  ;;  %v351_v19 = vmul.f32 %v335_v10, %v867_v1 }
 0x19f   :  { %v441_v20 = vmul.f32 0.5, %v425_v14  ;;  %514 = vtanh.f32 %v397_v15  ;;  %v352_v23 = vmul.f32 %v336_v11, %v870_v2  ;;  %v353_v31 = vmul.f32 %v337_v16, %v874_v7 }
 0x1a0   :  { %v442_v25 = vmul.f32 0.5, %v426_v32  ;;  %516 = vtanh.f32 %v398_v17  ;;  %v367_v28 = vmul.f32 0.044715, %v351_v19  ;;  %v338_v29 = vmul.f32 %v882_v12, %v882_v12 }
 0x1a1   :  { %v457_v34 = vmul.f32 %v441_v20, %v823_v26  ;;  %v368_v35 = vmul.f32 0.044715, %v352_v23  ;;  %v369_v36 = vmul.f32 0.044715, %v353_v31  ;;  %v294_v37 = vpop.f32.mrf.mxu2  ;;  %v323_v38 = vpop.f32.mrf.mxu3 }
 0x1a2   :  { %v458_v39 = vmul.f32 %v442_v25, %v826_v27  ;;  %v383_v42 = vadd.f32 %v367_v28, %v867_v1  ;;  %v354_v43 = vmul.f32 %v338_v29, %v882_v12  ;;  %v896_v44 = vadd.f32 %v294_v37, %v832_v30  ;;  %v239_v45 = vpop.f32.mrf.mxu0  ;;  %v268_v4 = vpop.f32.mrf.mxu1 }
 0x1a3   :  { %v511_v46 = vpop.eup %510  ;;  %473 = vst [vmem:[%s1007_s5] sm:$0xff] %v457_v34  ;;  %v384_v26 = vadd.f32 %v368_v35, %v870_v2  ;;  %v385_v47 = vadd.f32 %v369_v36, %v874_v7  ;;  %v904_v50 = vadd.f32 %v323_v38, %v834_v33  ;;  %v907_v27 = vadd.f32 %v239_v45, %v818_v21 }
 0x1a4   :  { %v513_v51 = vpop.eup %512  ;;  %474 = vst [vmem:[%s1007_s5 + $0x8] sm:$0xff] %v458_v39  ;;  %v427_v52 = vadd.f32 1.0, %v511_v46  ;;  %v399_v53 = vmul.f32 0.7978846, %v383_v42  ;;  %v370_v54 = vmul.f32 0.044715, %v354_v43  ;;  %v339_v55 = vmul.f32 %v896_v44, %v896_v44 }
 0x1a5   :  { %v515_v18 = vpop.eup %514  ;;  %v428_v56 = vadd.f32 1.0, %v513_v51  ;;  %v400_v57 = vmul.f32 0.7978846, %v384_v26  ;;  %v401_v58 = vmul.f32 0.7978846, %v385_v47  ;;  %v340_v59 = vmul.f32 %v904_v50, %v904_v50 }
 0x1a6   :  { %v517_v21 = vpop.eup %516  ;;  %v443_v60 = vmul.f32 0.5, %v427_v52  ;;  %v429_v61 = vadd.f32 1.0, %v515_v18  ;;  %518 = vtanh.f32 %v399_v53  ;;  %v386_v62 = vadd.f32 %v370_v54, %v882_v12 }
 0x1a7   :  { %v444_v63 = vmul.f32 0.5, %v428_v56  ;;  %v430_v0 = vadd.f32 1.0, %v517_v21  ;;  %520 = vtanh.f32 %v400_v57  ;;  %v355_v3 = vmul.f32 %v339_v55, %v896_v44 }
 0x1a8   :  { %v459_v5 = vmul.f32 %v443_v60, %v839_v40  ;;  %v445_v24 = vmul.f32 0.5, %v429_v61  ;;  %522 = vtanh.f32 %v401_v58  ;;  %v402_v6 = vmul.f32 0.7978846, %v386_v62 }
 0x1a9   :  { %v460_v8 = vmul.f32 %v444_v63, %v842_v41  ;;  %v446_v9 = vmul.f32 0.5, %v430_v0  ;;  %v371_v10 = vmul.f32 0.044715, %v355_v3  ;;  %v356_v11 = vmul.f32 %v340_v59, %v904_v50  ;;  %v297_v13 = vpop.f32.mrf.mxu2  ;;  %v326_v14 = vpop.f32.mrf.mxu3 }
 0x1aa   :  { %475 = vst [vmem:[%s1007_s5 + $0x10] sm:$0xff] %v459_v5  ;;  %v461_v15 = vmul.f32 %v445_v24, %v851_v48  ;;  %524 = vtanh.f32 %v402_v6  ;;  %v341_v40 = vmul.f32 %v907_v27, %v907_v27  ;;  %v928_v16 = vadd.f32 %v268_v4, %v820_v22 }
 0x1ab   :  { %476 = vst [vmem:[%s1007_s5 + $0x18] sm:$0xff] %v460_v8  ;;  %v462_v41 = vmul.f32 %v446_v9, %v854_v49  ;;  %v387_v32 = vadd.f32 %v371_v10, %v896_v44  ;;  %v372_v17 = vmul.f32 0.044715, %v356_v11  ;;  %v936_v19 = vadd.f32 %v297_v13, %v832_v30 }
 0x1ac   :  { %v519_v48 = vpop.eup %518  ;;  %477 = vst [vmem:[%s1007_s5 + $0x20] sm:$0xff] %v461_v15  ;;  %v357_v22 = vmul.f32 %v341_v40, %v907_v27  ;;  %v342_v20 = vmul.f32 %v928_v16, %v928_v16  ;;  %v945_v23 = vadd.f32 %v326_v14, %v834_v33 }
 0x1ad   :  { %v521_v49 = vpop.eup %520  ;;  %478 = vst [vmem:[%s1007_s5 + $0x28] sm:$0xff] %v462_v41  ;;  %v431_v30 = vadd.f32 1.0, %v519_v48  ;;  %v403_v31 = vmul.f32 0.7978846, %v387_v32  ;;  %v388_v25 = vadd.f32 %v372_v17, %v904_v50  ;;  %v343_v28 = vmul.f32 %v936_v19, %v936_v19 }
 0x1ae   :  { %v523_v29 = vpop.eup %522  ;;  %v432_v34 = vadd.f32 1.0, %v521_v49  ;;  %v373_v35 = vmul.f32 0.044715, %v357_v22  ;;  %v358_v36 = vmul.f32 %v342_v20, %v928_v16  ;;  %v344_v33 = vmul.f32 %v945_v23, %v945_v23 }
 0x1af   :  { %v447_v37 = vmul.f32 0.5, %v431_v30  ;;  %v433_v38 = vadd.f32 1.0, %v523_v29  ;;  %526 = vtanh.f32 %v403_v31  ;;  %v404_v39 = vmul.f32 0.7978846, %v388_v25 }
 0x1b0   :  { %v525_v42 = vpop.eup %524  ;;  %v448_v43 = vmul.f32 0.5, %v432_v34  ;;  %v389_v45 = vadd.f32 %v373_v35, %v907_v27  ;;  %v374_v46 = vmul.f32 0.044715, %v358_v36  ;;  %v359_v26 = vmul.f32 %v343_v28, %v936_v19 }
 0x1b1   :  { %v463_v47 = vmul.f32 %v447_v37, %v867_v1  ;;  %v449_v51 = vmul.f32 0.5, %v433_v38  ;;  %v434_v52 = vadd.f32 1.0, %v525_v42  ;;  %528 = vtanh.f32 %v404_v39 }
 0x1b2   :  { %v464_v53 = vmul.f32 %v448_v43, %v870_v2  ;;  %v405_v54 = vmul.f32 0.7978846, %v389_v45  ;;  %v390_v55 = vadd.f32 %v374_v46, %v928_v16  ;;  %v375_v18 = vmul.f32 0.044715, %v359_v26 }
 0x1b3   :  { %479 = vst [vmem:[%s1007_s5 + $0x30] sm:$0xff] %v463_v47  ;;  %v465_v56 = vmul.f32 %v449_v51, %v874_v7  ;;  %v450_v57 = vmul.f32 0.5, %v434_v52  ;;  %v360_v58 = vmul.f32 %v344_v33, %v945_v23 }
 0x1b4   :  { %480 = vst [vmem:[%s1007_s5 + $0x38] sm:$0xff] %v464_v53  ;;  %530 = vtanh.f32 %v405_v54  ;;  %v406_v1 = vmul.f32 0.7978846, %v390_v55  ;;  %v391_v2 = vadd.f32 %v375_v18, %v936_v19 }
 0x1b5   :  { %v527_v59 = vpop.eup %526  ;;  %481 = vst [vmem:[%s1007_s5 + $0x40] sm:$0xff] %v465_v56  ;;  %v466_v21 = vmul.f32 %v450_v57, %v882_v12  ;;  %v376_v60 = vmul.f32 0.044715, %v360_v58 }
 0x1b6   :  { %v435_v7 = vadd.f32 1.0, %v527_v59  ;;  %532 = vtanh.f32 %v406_v1  ;;  %v407_v61 = vmul.f32 0.7978846, %v391_v2 }
 0x1b7   :  { %v529_v62 = vpop.eup %528  ;;  %482 = vst [vmem:[%s1007_s5 + $0x48] sm:$0xff] %v466_v21  ;;  %v392_v63 = vadd.f32 %v376_v60, %v945_v23 }
 0x1b8   :  { %v451_v0 = vmul.f32 0.5, %v435_v7  ;;  %v436_v3 = vadd.f32 1.0, %v529_v62  ;;  %534 = vtanh.f32 %v407_v61 }
 0x1b9   :  { %v408_v4 = vmul.f32 0.7978846, %v392_v63 }
 0x1ba   :  { %v531_v5 = vpop.eup %530  ;;  %v467_v24 = vmul.f32 %v451_v0, %v896_v44  ;;  %v452_v6 = vmul.f32 0.5, %v436_v3 }
 0x1bb   :  { %v437_v12 = vadd.f32 1.0, %v531_v5  ;;  %536 = vtanh.f32 %v408_v4 }
 0x1bc   :  { %v533_v8 = vpop.eup %532  ;;  %483 = vst [vmem:[%s1007_s5 + $0x50] sm:$0xff] %v467_v24  ;;  %v468_v9 = vmul.f32 %v452_v6, %v904_v50 }
 0x1bd   :  { %v453_v10 = vmul.f32 0.5, %v437_v12  ;;  %v438_v11 = vadd.f32 1.0, %v533_v8 }
 0x1be   :  { %v535_v13 = vpop.eup %534  ;;  %484 = vst [vmem:[%s1007_s5 + $0x58] sm:$0xff] %v468_v9 }
 0x1bf   :  { %v469_v14 = vmul.f32 %v453_v10, %v907_v27  ;;  %v454_v44 = vmul.f32 0.5, %v438_v11  ;;  %v439_v15 = vadd.f32 1.0, %v535_v13 }
 0x1c1   :  { %v537_v40 = vpop.eup %536  ;;  %485 = vst [vmem:[%s1007_s5 + $0x60] sm:$0xff] %v469_v14  ;;  %v470_v41 = vmul.f32 %v454_v44, %v928_v16  ;;  %v455_v32 = vmul.f32 0.5, %v439_v15 }
 0x1c2   :  { %v440_v50 = vadd.f32 1.0, %v537_v40 }
 0x1c3   :  { %486 = vst [vmem:[%s1007_s5 + $0x68] sm:$0xff] %v470_v41  ;;  %v471_v17 = vmul.f32 %v455_v32, %v936_v19 }
 0x1c4   :  { %v456_v48 = vmul.f32 0.5, %v440_v50 }
 0x1c5   :  { %487 = vst [vmem:[%s1007_s5 + $0x70] sm:$0xff] %v471_v17 }
 0x1c6   :  { %v472_v27 = vmul.f32 %v456_v48, %v945_v23 }
 0x1c8   :  { %488 = vst [vmem:[%s1007_s5 + $0x78] sm:$0xff] %v472_v27 }

// kernel: gpt2_forward.12
= control target key start
LH: loop header
LB: loop body
LE: loop exit
PB: predicated region body
PF: predicated region fallthrough
CT: control target
= control target key end

     0   :  { %s1967_s12 = smov 0   ;;  %s1969_s13 = smov 0   ;;  %s2473_s0 = inlined_call_operand.vmem [shape: f32[32,384], index: 0, kind: input, shape index: {}, may-alias: {0,1,2}]   ;;  %s2474_s1 = inlined_call_operand.vmem [shape: f32[32,384], index: 1, kind: input, shape index: {}, may-alias: {0,1,2}]   ;;  %s2475_s2 = inlined_call_operand.vmem [shape: f32[32,384], index: 2, kind: input, shape index: {}, may-alias: {0,1,2}]   ;;  %s2476_s3 = inlined_call_operand.vmem [shape: f32[32,128], index: 3, kind: output, shape index: {}]  }
   0x1   :  { %s1971_s14 = smov 0   ;;  %s1973_s15 = smov 0  }
   0x2   :  { %s1975_s16 = smov 0  }
   0x3 LB: > { %s32_s17 = sadd.s32 1, %s1933_s15  ;;  %p48_p1 = scmp.ne.s32.totalorder %s1925_s13, %s1921_s12  ;;  %s1937_s16 = sphi %s1975_s16, %s13_s16   ;;  %s1933_s15 = sphi %s1973_s15, %s2481_s15   ;;  %s1929_s14 = sphi %s1971_s14, %s2480_s14   ;;  %s1925_s13 = sphi %s1969_s13, %s2479_s13   ;;  %s1921_s12 = sphi %s1967_s12, %s2478_s12  }
   0x4   : > { %p34_p0 = scmp.ge.s32.totalorder %s32_s17, 2  ;;  %p49_p2 = scmp.eq.s32.totalorder %s1937_s16, 0 }
   0x5   : > { %s41_s20 = sadd.s32 1, %s1925_s13  ;;  %p1684_p5 = scmp.ge.s32.totalorder %s1937_s16, 2 }
   0x6   : > { %s2483_s17 = smov (%p34_p0, %s32_s17), 0  ;;  %p1998_p3 = por %p49_p2, %p48_p1 }
   0x7   : > { %s38_s19 = ssub.s32 %s1933_s15, %s2483_s17  ;;  %158 = sbr.rel (%p1684_p5) target bundleno = 33 (0x21), region = 16 }
   0x8   : > { %p39_p4 = scmp.eq.s32.totalorder %s38_s19, 0 }
   0xa   : > { %s2006_s21 = scalar_select %p39_p4, %s1925_s13, %s41_s20  }
   0xc   : > { %161 = sbr.rel (!%p1998_p3) target bundleno = 19 (0x13), region = 20  ;;  %s163_s22 = sand.u32 (%p1998_p3), 1, %s1925_s13  }
   0xd   : > { %s1721_s23 = smul.u32 (%p1998_p3), 48, %s1933_s15  ;;  %s1685_s24 = sshll.u32 (%p1998_p3), %s163_s22, 4 }
   0xe   : > { %s165_s28 = scalar_lea.vmem (%p1998_p3), [#allocation5], %s1685_s24 }
   0xf   : > { %s170_s27 = scalar_lea.vmem (%p1998_p3), %s2473_s0, %s1721_s23 }
  0x10   : > { %v201_v0 = vld [vmem:[%s170_s27] sm:$0xff] (%p1998_p3)  ;;  %v203_v1 = vld [vmem:[%s170_s27 + $0x18] sm:$0xff] (%p1998_p3) }
  0x11   : > { %202 = vst [vmem:[%s165_s28] sm:$0xff] %v201_v0 }
  0x12   : > { %204 = vst [vmem:[%s165_s28 + $0x8] sm:$0xff] %v203_v1 }
  0x13 PF: > { %210 = sbr.rel (!%p1998_p3) target bundleno = 26 (0x1a), region = 58  ;;  %s212_s29 = sand.u32 (%p1998_p3), 1, %s1925_s13  }
  0x14   : > { %s1690_s30 = smul.u32 (%p1998_p3), 48, %s1933_s15  ;;  %s1689_s4 = sshll.u32 (%p1998_p3), %s212_s29, 4 }
  0x15   : > { %s214_s8 = scalar_lea.vmem (%p1998_p3), [#allocation6], %s1689_s4 }
  0x16   : > { %s1596_s7 = scalar_lea.vmem (%p1998_p3), %s2474_s1, %s1690_s30 }
  0x17   : > { %v1691_v2 = vld [vmem:[%s1596_s7 + $0x8] sm:$0xff] (%p1998_p3)  ;;  %v1692_v3 = vld [vmem:[%s1596_s7 + $0x20] sm:$0xff] (%p1998_p3) }
  0x18   : > { %252 = vst [vmem:[%s214_s8] sm:$0xff] %v1691_v2 }
  0x19   : > { %254 = vst [vmem:[%s214_s8 + $0x8] sm:$0xff] %v1692_v3 }
  0x1a PF: > { %260 = sbr.rel (!%p1998_p3) target bundleno = 33 (0x21), region = 96  ;;  %s262_s9 = sand.u32 (%p1998_p3), 1, %s1925_s13  }
  0x1b   : > { %s1694_s10 = smul.u32 (%p1998_p3), 48, %s1933_s15  ;;  %s1693_s11 = sshll.u32 (%p1998_p3), %s262_s9, 4 }
  0x1c   : > { %s264_s23 = scalar_lea.vmem (%p1998_p3), [#allocation7], %s1693_s11 }
  0x1d   : > { %s1603_s22 = scalar_lea.vmem (%p1998_p3), %s2475_s2, %s1694_s10 }
  0x1e   : > { %v1695_v4 = vld [vmem:[%s1603_s22 + $0x10] sm:$0xff] (%p1998_p3)  ;;  %v1696_v5 = vld [vmem:[%s1603_s22 + $0x28] sm:$0xff] (%p1998_p3) }
  0x1f   : > { %302 = vst [vmem:[%s264_s23] sm:$0xff] %v1695_v4 }
  0x20   : > { %304 = vst [vmem:[%s264_s23 + $0x8] sm:$0xff] %v1696_v5 }
  0x21 PF: > { %p1697_p6 = scmp.ge.s32.totalorder %s1937_s16, 1  ;;  %p309_p7 = scmp.lt.s32.totalorder %s1937_s16, 3 }
  0x23   : > { %p310_p8 = pnand %p1697_p6, %p309_p7 }
  0x24   : > { %s316_s18 = sand.u32 (!%p310_p8), 1, %s1921_s12   ;;  %s1939_s27 = smov (!%p310_p8), 96  }
  0x25   : > { %313 = sbr.rel (%p310_p8) target bundleno = 1292 (0x50c), region = 134  ;;  %s2033_s24 = sshll.u32 (!%p310_p8), %s316_s18, 4 }
  0x26   : > { %s325_s25 = scalar_lea.vmem (!%p310_p8), [#allocation6], %s2033_s24  ;;  %s318_s26 = scalar_lea.vmem (!%p310_p8), [#allocation5], %s2033_s24 }
  0x27   : > { %s1940_s28 = smov (!%p310_p8), 64   ;;  %s1941_s29 = smov (!%p310_p8), 32  }
  0x28   : > { %s332_s12 = scalar_lea.vmem (!%p310_p8), [#allocation7], %s2033_s24  ;;  %s1701_s30 = sshll.u32 (!%p310_p8), %s1929_s14, 1 }
  0x29   : > { %p370_p9 = scmp.lt.s32.totalorder (!%p310_p8), %s1701_s30, 3 }
  0x2a   : > { %v431_v6 = vld [vmem:[%s325_s25] sm:$0xff]  ;;  %v432_v7 = vld [vmem:[%s325_s25 + $0x8] sm:$0xff]  ;;  %vm397_vm0 = vcmask 261120   ;;  %v712_v56 = vlaneseq  ;;  %vm744_vm2 = vcmask 130048   ;;  %vm380_vm3 = vcmask 7168  }
  0x2b   : > { %v1780_v8 = vpack.i.bf16 %v432_v7, %v431_v6  ;;  %v413_v9 = vld [vmem:[%s318_s26] sm:$0xff]  ;;  %v414_v11 = vld [vmem:[%s318_s26 + $0x8] sm:$0xff]  ;;  %v1942_v3 = vmov -inf   ;;  %s2485_s30 = smov (!%p370_p9, %s1701_s30), 3 }
  0x2c   : > { %v2037_v10 = vmul.f32 0.17677669, %v413_v9  ;;  %v2046_v12 = vmul.f32 0.17677669, %v414_v11  ;;  %v713_v57 = vshrl.u32 %v712_v56, 7  ;;  %v2066_v58 = vand.u32 127, %v712_v56 }
  0x2d   : > { %1781 = vrot.lane.b32.xlu1 %v1780_v8, %s1939_s27  ;;  %1771 = vrot.lane.b32.xlu0 %v1780_v8, %s1940_s28  ;;  %387 = vst.msk [vmem:[#allocation2 + $0x30] sm:$0xff] %vm380_vm3, %v1942_v3  ;;  %s1702_s4 = sshll.u32 %s2485_s30, 3 }
  0x2e   : > { %427 = vrot.lane.b32.xlu2 %v2037_v10, %s1941_s29  ;;  %vm722_vm1 = vcmp.le.s32.totalorder %v2066_v58, %v713_v57  ;;  %v2081_v2 = vadd.s32 8, %v713_v57  ;;  %381 = vst.msk [vmem:[#allocation2] sm:$0xff] %vm380_vm3, %v1942_v3  ;;  %s373_s7 = scalar_lea.vmem %s2476_s3, %s1702_s4 }
  0x2f   : > { %382 = vst.msk [vmem:[#allocation2 + $0x8] sm:$0xff] %vm380_vm3, %v1942_v3 }
  0x30   : > { %vm723_vm4 = vcmp.le.s32.totalorder %v2066_v58, %v2081_v2  ;;  %383 = vst.msk [vmem:[#allocation2 + $0x10] sm:$0xff] %vm380_vm3, %v1942_v3 }
  0x31   : > { %384 = vst.msk [vmem:[#allocation2 + $0x18] sm:$0xff] %vm380_vm3, %v1942_v3 }
  0x32   : > { %385 = vst.msk [vmem:[#allocation2 + $0x20] sm:$0xff] %vm380_vm3, %v1942_v3 }
  0x33   : > { %386 = vst.msk [vmem:[#allocation2 + $0x28] sm:$0xff] %vm380_vm3, %v1942_v3 }
  0x34   : > { %388 = vst.msk [vmem:[#allocation2 + $0x38] sm:$0xff] %vm380_vm3, %v1942_v3 }
  0x35   : > { %1776 = vrot.lane.b32.xlu0 %v1780_v8, %s1941_s29  ;;  %423 = vrot.lane.b32.xlu1 %v2037_v10, %s1940_s28 }
  0x3d   : > { %429 = vrot.lane.b32.xlu1 %v2046_v12, %s1941_s29  ;;  %425 = vrot.lane.b32.xlu0 %v2046_v12, %s1940_s28 }
  0x45   : > { %419 = vrot.lane.b32.xlu0 %v2037_v10, %s1939_s27 }
  0x4d   : > { %421 = vrot.lane.b32.xlu0 %v2046_v12, %s1939_s27 }
  0x88   : > { %v428_v27 = vpop.permute.xlu2 %427 }
  0x9f   : > { %v1782_v13 = vpop.permute.xlu1 %1781  ;;  %v1772_v14 = vpop.permute.xlu0 %1771 }
  0xa0   : > { %v1783_v15 = vunpack.i.l.bf16 %v1782_v13  ;;  %v1784_v17 = vunpack.i.h.bf16 %v1782_v13  ;;  %v1773_v20 = vunpack.i.l.bf16 %v1772_v14  ;;  %v1774_v24 = vunpack.i.h.bf16 %v1772_v14 }
  0xa2   : > { %v1809_v16 = vpack.i.bf16 %v1783_v15, %v431_v6  ;;  %v1811_v19 = vpack.i.bf16 %v1784_v17, %v432_v7 }
  0xa4   : > { %1810 = vxpose.xlu1.b32.start [1/2] (short) (narrow) %v1809_v16, 32 }
  0xa7   : > { %v1777_v18 = vpop.permute.xlu0 %1776  ;;  %v424_v26 = vpop.permute.xlu1 %423 }
  0xa8   : > { %v1778_v21 = vunpack.i.l.bf16 %v1777_v18  ;;  %v1779_v23 = vunpack.i.h.bf16 %v1777_v18  ;;  %v453_v18 = vld [vmem:[%s332_s12] sm:$0xff] }
  0xaa   : > { %v1785_v22 = vpack.i.bf16 %v1778_v21, %v1773_v20  ;;  %v1787_v25 = vpack.i.bf16 %v1779_v23, %v1774_v24  ;;  %v1943_v21 = vmov 0.0   ;;  %v2147_v23 = vld [vmem:[#allocation2 + $0x30] sm:$0xff]  ;;  %v2149_v24 = vld [vmem:[#allocation2 + $0x20] sm:$0xff] }
  0xab   : > { %389 = vst.msk [vmem:[#allocation3] sm:$0xff] %vm380_vm3, %v1943_v21 }
  0xac   : > { %1786 = vxpose.xlu2.b32.start [1/2] (short) (narrow) %v1785_v22, 32  ;;  %1812 = vxpose.xlu1.b32.end [2/2] (short) (narrow) %v1811_v19, 32  ;;  %v454_v19 = vld [vmem:[%s332_s12 + $0x8] sm:$0xff]  ;;  %390 = vst.msk [vmem:[#allocation3 + $0x8] sm:$0xff] %vm380_vm3, %v1943_v21  ;;  %v1944_v22 = vmov 0  }
  0xad   : > { %v2127_v20 = vpack.i.bf16 %v453_v18, %v454_v19  ;;  %391 = vst.msk [vmem:[#allocation3 + $0x10] sm:$0xff] %vm380_vm3, %v1943_v21  ;;  %1838 = vset.pattern.permute.xlu0 %v1944_v22 }
  0xae   : > { %392 = vst.msk [vmem:[#allocation3 + $0x18] sm:$0xff] %vm380_vm3, %v1943_v21 }
  0xaf   : > { %v430_v28 = vpop.permute.xlu1 %429  ;;  %v426_v38 = vpop.permute.xlu0 %425  ;;  %393 = vst.msk [vmem:[#allocation3 + $0x20] sm:$0xff] %vm380_vm3, %v1943_v21 }
  0xb0   : > { %394 = vst.msk [vmem:[#allocation3 + $0x28] sm:$0xff] %vm380_vm3, %v1943_v21 }
  0xb1   : > { %395 = vst.msk [vmem:[#allocation3 + $0x30] sm:$0xff] %vm380_vm3, %v1943_v21 }
  0xb2   : > { %396 = vst.msk [vmem:[#allocation3 + $0x38] sm:$0xff] %vm380_vm3, %v1943_v21 }
  0xb3   : > { %398 = vst.msk [vmem:[#allocation4] sm:$0xff] %vm397_vm0, %v1943_v21 }
  0xb4   : > { %1788 = vxpose.xlu2.b32.end [2/2] (short) (narrow) %v1787_v25, 32  ;;  %399 = vst.msk [vmem:[#allocation4 + $0x8] sm:$0xff] %vm397_vm0, %v1943_v21 }
  0xb5   : > { %400 = vst.msk [vmem:[#allocation4 + $0x10] sm:$0xff] %vm397_vm0, %v1943_v21 }
  0xb6   : > { %401 = vst.msk [vmem:[#allocation4 + $0x18] sm:$0xff] %vm397_vm0, %v1943_v21 }
  0xb7   : > { %v420_v54 = vpop.permute.xlu0 %419  ;;  %402 = vst.msk [vmem:[#allocation4 + $0x20] sm:$0xff] %vm397_vm0, %v1943_v21 }
  0xb8   : > { %403 = vst.msk [vmem:[#allocation4 + $0x28] sm:$0xff] %vm397_vm0, %v1943_v21 }
  0xb9   : > { %404 = vst.msk [vmem:[#allocation4 + $0x30] sm:$0xff] %vm397_vm0, %v1943_v21 }
  0xba   : > { %405 = vst.msk [vmem:[#allocation4 + $0x38] sm:$0xff] %vm397_vm0, %v1943_v21 }
  0xbf   : > { %v422_v55 = vpop.permute.xlu0 %421 }
  0xff   : > { %1845 = vset.pattern.permute.xlu1 %v1944_v22 }
 0x116   : > { %1839 = vset.pattern.permute.xlu2 %v1944_v22 }
 0x145   : > { %v1789_v29 = vpop.trf.xlu2 }
 0x146   : > { %v1790_v48 = vunpack.i.l.bf16 %v1789_v29  ;;  %v1793_v49 = vunpack.i.h.bf16 %v1789_v29  ;;  %v2161_v29 = vld [vmem:[#allocation2 + $0x28] sm:$0xff] }
 0x148   : > { %v1813_v30 = vpop.trf.xlu1 }
 0x149   : > { %v1814_v52 = vunpack.i.l.bf16 %v1813_v30  ;;  %v1817_v53 = vunpack.i.h.bf16 %v1813_v30  ;;  %v2163_v30 = vld [vmem:[#allocation2] sm:$0xff] }
 0x14d   : > { %v1794_v31 = vpop.trf.xlu2 }
 0x14e   : > { %v1795_v46 = vunpack.i.l.bf16 %v1794_v31  ;;  %v1798_v47 = vunpack.i.h.bf16 %v1794_v31 }
 0x150   : > { %v1818_v32 = vpop.trf.xlu1 }
 0x151   : > { %v1819_v50 = vunpack.i.l.bf16 %v1818_v32  ;;  %v1822_v51 = vunpack.i.h.bf16 %v1818_v32 }
 0x155   : > { %v1799_v33 = vpop.trf.xlu2 }
 0x156   : > { %v1800_v40 = vunpack.i.l.bf16 %v1799_v33  ;;  %v1803_v41 = vunpack.i.h.bf16 %v1799_v33 }
 0x158   : > { %v1823_v34 = vpop.trf.xlu1 }
 0x159   : > { %v1824_v42 = vunpack.i.l.bf16 %v1823_v34  ;;  %v1827_v43 = vunpack.i.h.bf16 %v1823_v34 }
 0x15d   : > { %v1804_v35 = vpop.trf.xlu2 }
 0x15e   : > { %v1805_v36 = vunpack.i.l.bf16 %v1804_v35  ;;  %v1808_v37 = vunpack.i.h.bf16 %v1804_v35 }
 0x160   : > { %674 = vmatpush.msra.mxu2 %v1805_v36  ;;  %701 = vmatpush.msra.mxu3 %v1808_v37  ;;  %v1828_v39 = vpop.trf.xlu1 }
 0x161   : > { %v1829_v44 = vunpack.i.l.bf16 %v1828_v39  ;;  %v1832_v45 = vunpack.i.h.bf16 %v1828_v39  ;;  %v2186_v39 = vld [vmem:[#allocation2 + $0x10] sm:$0xff] }
 0x162   : > { %675 = vmatpush.msra.mxu2 %v1800_v40  ;;  %702 = vmatpush.msra.mxu3 %v1803_v41 }
 0x163   : > { %620 = vmatpush.msra.mxu0 %v1829_v44  ;;  %647 = vmatpush.msra.mxu1 %v1832_v45  ;;  %v2197_v44 = vld [vmem:[#allocation2 + $0x8] sm:$0xff] }
 0x164   : > { %676 = vmatpush.msra.mxu2 %v1795_v46  ;;  %703 = vmatpush.msra.mxu3 %v1798_v47 }
 0x165   : > { %621 = vmatpush.msra.mxu0 %v1824_v42  ;;  %648 = vmatpush.msra.mxu1 %v1827_v43 }
 0x166   : > { %677 = vmatpush.msra.mxu2 %v1790_v48  ;;  %704 = vmatpush.msra.mxu3 %v1793_v49  ;;  %v2206_v48 = vld [vmem:[#allocation2 + $0x18] sm:$0xff] }
 0x167   : > { %622 = vmatpush.msra.mxu0 %v1819_v50  ;;  %649 = vmatpush.msra.mxu1 %v1822_v51 }
 0x168   : > { %1707 = vmatmul.msk.f32.vlgmr.msra.gmra.mxu2 %vm397_vm0, %v424_v26  ;;  %1709 = vmatmul.msk.f32.vlgmr.msra.gmra.mxu3 %vm397_vm0, %v428_v27 }
 0x169   : > { %623 = vmatpush.msra.mxu0 %v1814_v52  ;;  %650 = vmatpush.msra.mxu1 %v1817_v53 }
 0x16a   : > { %1703 = vmatmul.msk.f32.vlgmr.msra.gmra.mxu0 %vm397_vm0, %v2037_v10  ;;  %1705 = vmatmul.msk.f32.vlgmr.msra.gmra.mxu1 %vm397_vm0, %v420_v54 }
 0x16b   : > { %942 = vmatpush.msrb.mxu0 %v454_v19 }
 0x16d   : > { %943 = vmatpush.msrb.mxu0 %v453_v18 }
 0x170   : > { %1708 = vmatmul.msk.f32.gmra.mxu2 %vm397_vm0, %v426_v38  ;;  %1710 = vmatmul.msk.f32.gmra.mxu3 %vm397_vm0, %v430_v28 }
 0x172   : > { %1704 = vmatmul.msk.f32.gmra.mxu0 %vm397_vm0, %v2046_v12  ;;  %1706 = vmatmul.msk.f32.gmra.mxu1 %vm397_vm0, %v422_v55 }
 0x1e7   : > { %v625_v1 = vpop.f32.mrf.mxu0  ;;  %v652_v9 = vpop.f32.mrf.mxu1 }
 0x1e8   : > { %v2086_v4 = vsel %vm722_vm1, %v625_v1, -1e+30  ;;  %v2108_v10 = vsel %vm722_vm1, %v652_v9, -1e+30 }
 0x1e9   : > { %v745_v6 = vsel %vm744_vm2, %v2086_v4, -inf  ;;  %v751_v11 = vsel %vm744_vm2, %v2108_v10, -inf }
 0x1eb   : > { %v679_v59 = vpop.f32.mrf.mxu2  ;;  %v706_v60 = vpop.f32.mrf.mxu3 }
 0x1ec   : > { %v2071_v61 = vsel %vm722_vm1, %v679_v59, -1e+30  ;;  %v2075_v62 = vsel %vm722_vm1, %v706_v60, -1e+30  ;;  %v2226_v59 = vld [vmem:[#allocation2 + $0x38] sm:$0xff] }
 0x1ed   : > { %v763_v63 = vsel %vm744_vm2, %v2075_v62, -inf  ;;  %v757_v0 = vsel %vm744_vm2, %v2071_v61, -inf }
 0x1ee   : > { %764 = vmax.xlane.f32.xlu2 %v763_v63  ;;  %758 = vmax.xlane.f32.xlu0 %v757_v0 }
 0x1ef   : > { %v628_v12 = vpop.f32.mrf.mxu0  ;;  %v655_v15 = vpop.f32.mrf.mxu1 }
 0x1f0   : > { %v2115_v13 = vsel %vm723_vm4, %v628_v12, -1e+30  ;;  %v2122_v16 = vsel %vm723_vm4, %v655_v15, -1e+30 }
 0x1f1   : > { %v748_v14 = vsel %vm744_vm2, %v2115_v13, -inf  ;;  %v754_v17 = vsel %vm744_vm2, %v2122_v16, -inf }
 0x1f3   : > { %v682_v5 = vpop.f32.mrf.mxu2  ;;  %v709_v37 = vpop.f32.mrf.mxu3 }
 0x1f4   : > { %v2099_v7 = vsel %vm723_vm4, %v682_v5, -1e+30  ;;  %v2184_v38 = vsel %vm723_vm4, %v709_v37, -1e+30 }
 0x1f5   : > { %v760_v8 = vsel %vm744_vm2, %v2099_v7, -inf  ;;  %v766_v42 = vsel %vm744_vm2, %v2184_v38, -inf }
 0x1f6   : > { %761 = vmax.xlane.f32.xlu1 %v760_v8  ;;  %746 = vmax.xlane.f32.xlu0 %v745_v6 }
 0x1fe   : > { %752 = vmax.xlane.f32.xlu0 %v751_v11 }
 0x206   : > { %749 = vmax.xlane.f32.xlu0 %v748_v14 }
 0x20e   : > { %755 = vmax.xlane.f32.xlu0 %v754_v17 }
 0x222   : > { %1834 = vrot.lane.b32.xlu0 %v2127_v20, %s1940_s28 }
 0x261   : > { %v765_v25 = vpop.xlane.xlu2 %764  ;;  %v759_v26 = vpop.xlane.xlu0 %758 }
 0x262   : > { %v2152_v27 = vmax.f32 %v2147_v23, %v765_v25  ;;  %v2155_v28 = vmax.f32 %v2149_v24, %v759_v26 }
 0x264   : > { %1116 = vst.msk [vmem:[#allocation2 + $0x30] sm:$0xff] %vm380_vm3, %v2152_v27 }
 0x265   : > { %1114 = vst.msk [vmem:[#allocation2 + $0x20] sm:$0xff] %vm380_vm3, %v2155_v28 }
 0x269   : > { %v762_v31 = vpop.xlane.xlu1 %761  ;;  %v747_v32 = vpop.xlane.xlu0 %746 }
 0x26a   : > { %v2166_v33 = vmax.f32 %v2161_v29, %v762_v31  ;;  %v2169_v34 = vmax.f32 %v2163_v30, %v747_v32 }
 0x26c   : > { %v782_v35 = vsub.f32 %v2161_v29, %v2166_v33  ;;  %1115 = vst.msk [vmem:[#allocation2 + $0x28] sm:$0xff] %vm380_vm3, %v2166_v33  ;;  %v777_v36 = vsub.f32 %v2163_v30, %v2169_v34  ;;  %828 = vperm.xlu2 %1839, %v2166_v33   ;;  %803 = vperm.xlu0 %1838, %v2169_v34  }
 0x26d   : > { %1110 = vst.msk [vmem:[#allocation2] sm:$0xff] %vm380_vm3, %v2169_v34 }
 0x271   : > { %v753_v40 = vpop.xlane.xlu0 %752 }
 0x272   : > { %v2189_v41 = vmax.f32 %v2186_v39, %v753_v40 }
 0x274   : > { %v779_v43 = vsub.f32 %v2186_v39, %v2189_v41  ;;  %1112 = vst.msk [vmem:[#allocation2 + $0x10] sm:$0xff] %vm380_vm3, %v2189_v41  ;;  %1847 = vrot.lane.b32.xlu2 %v2127_v20, %s1939_s27  ;;  %v781_v39 = vsub.f32 %v2149_v24, %v2155_v28  ;;  %v867_v24 = vld [vmem:[#allocation3 + $0x10] sm:$0xff] }
 0x279   : > { %v750_v45 = vpop.xlane.xlu0 %749 }
 0x27a   : > { %v2200_v46 = vmax.f32 %v2197_v44, %v750_v45 }
 0x27c   : > { %v778_v47 = vsub.f32 %v2197_v44, %v2200_v46  ;;  %1111 = vst.msk [vmem:[#allocation2 + $0x8] sm:$0xff] %vm380_vm3, %v2200_v46 }
 0x281   : > { %v756_v49 = vpop.xlane.xlu0 %755 }
 0x282   : > { %v2209_v50 = vmax.f32 %v2206_v48, %v756_v49 }
 0x284   : > { %v780_v51 = vsub.f32 %v2206_v48, %v2209_v50  ;;  %1113 = vst.msk [vmem:[#allocation2 + $0x18] sm:$0xff] %vm380_vm3, %v2209_v50 }
 0x286   : > { %v791_v30 = vmul.f32 1.442695, %v780_v51 }
 0x294   : > { %v1835_v52 = vpop.permute.xlu0 %1834 }
 0x295   : > { %v1836_v53 = vunpack.i.l.bf16 %v1835_v52  ;;  %v1837_v54 = vunpack.i.h.bf16 %v1835_v52 }
 0x296   : > { %767 = vmax.xlane.f32.xlu0 %v766_v42 }
 0x297   : > { %1000 = vmatpush.msrb.mxu2 %v1836_v53 }
 0x299   : > { %1001 = vmatpush.msrb.mxu2 %v1837_v54 }
 0x2aa   : > { %823 = vperm.xlu0 %1838, %v2155_v28  }
 0x2b2   : > { %833 = vperm.xlu0 %1838, %v2152_v27  }
 0x2ba   : > { %1841 = vrot.lane.b32.xlu0 %v2127_v20, %s1941_s29 }
 0x2c2   : > { %813 = vperm.xlu0 %1838, %v2189_v41   ;;  %v793_v41 = vmul.f32 1.442695, %v781_v39 }
 0x2c6   : > { %v829_v1 = vpop.permute.xlu2 %828 }
 0x2c7   : > { %v846_v9 = vsub.f32 %v2099_v7, %v829_v1 }
 0x2c9   : > { %v859_v12 = vmul.f32 1.442695, %v846_v9 }
 0x2ca   : > { %808 = vperm.xlu0 %1838, %v2200_v46  }
 0x2ce   : > { %v1848_v2 = vpop.permute.xlu2 %1847 }
 0x2cf   : > { %v1850_v6 = vunpack.i.h.bf16 %v1848_v2 }
 0x2d2   : > { %818 = vperm.xlu0 %1838, %v2209_v50  }
 0x2de   : > { %v804_v55 = vpop.permute.xlu0 %803 }
 0x2df   : > { %v841_v56 = vsub.f32 %v2086_v4, %v804_v55  ;;  %v1849_v4 = vunpack.i.l.bf16 %v1848_v2 }
 0x2e1   : > { %v849_v57 = vmul.f32 1.442695, %v841_v56  ;;  %971 = vmatpush.msrb.mxu1 %v1849_v4  ;;  %v795_v56 = vmul.f32 1.442695, %v782_v35 }
 0x2e3   : > { %1851 = vpow2.f32 %v849_v57  ;;  %972 = vmatpush.msrb.mxu1 %v1850_v6  ;;  %v785_v57 = vmul.f32 1.442695, %v777_v36 }
 0x2e9   : > { %v1852_v58 = vpop.eup %1851 }
 0x2ea   : > { %1711 = vmatmul.msk.f32.vlgmr.msrb.gmra.mxu0 %vm744_vm2, %v1852_v58  ;;  %v881_v22 = vsel %vm744_vm2, %v1852_v58, 0.0  ;;  %v783_v58 = vsub.f32 %v2147_v23, %v2152_v27  ;;  %v789_v23 = vmul.f32 1.442695, %v779_v43 }
 0x2ec   : > { %v797_v2 = vmul.f32 1.442695, %v783_v58 }
 0x309   : > { %v768_v60 = vpop.xlane.xlu0 %767 }
 0x30a   : > { %v2229_v63 = vmax.f32 %v2226_v59, %v768_v60  ;;  %v787_v60 = vmul.f32 1.442695, %v778_v47 }
 0x30c   : > { %v784_v0 = vsub.f32 %v2226_v59, %v2229_v63  ;;  %1117 = vst.msk [vmem:[#allocation2 + $0x38] sm:$0xff] %vm380_vm3, %v2229_v63  ;;  %838 = vperm.xlu1 %1845, %v2229_v63   ;;  %v869_v63 = vld [vmem:[#allocation3 + $0x20] sm:$0xff] }
 0x30e   : > { %v799_v43 = vmul.f32 1.442695, %v784_v0  ;;  %v866_v0 = vld [vmem:[#allocation3 + $0x8] sm:$0xff] }
 0x31c   : > { %v824_v3 = vpop.permute.xlu0 %823 }
 0x31d   : > { %v845_v5 = vsub.f32 %v2071_v61, %v824_v3 }
 0x31f   : > { %v857_v8 = vmul.f32 1.442695, %v845_v5 }
 0x321   : > { %1853 = vpow2.f32 %v857_v8 }
 0x322   : > { %1855 = vpow2.f32 %v859_v12 }
 0x324   : > { %v834_v11 = vpop.permute.xlu0 %833 }
 0x325   : > { %v847_v14 = vsub.f32 %v2075_v62, %v834_v11 }
 0x327   : > { %v1854_v15 = vpop.eup %1853  ;;  %v861_v17 = vmul.f32 1.442695, %v847_v14 }
 0x328   : > { %1715 = vmatmul.msk.f32.vlgmr.msrb.gmra.mxu2 %vm744_vm2, %v1854_v15  ;;  %v1856_v20 = vpop.eup %1855  ;;  %v893_v52 = vsel %vm744_vm2, %v1854_v15, 0.0 }
 0x329   : > { %1857 = vpow2.f32 %v861_v17 }
 0x32c   : > { %v1842_v18 = vpop.permute.xlu0 %1841 }
 0x32d   : > { %v1843_v19 = vunpack.i.l.bf16 %v1842_v18  ;;  %v1844_v61 = vunpack.i.h.bf16 %v1842_v18 }
 0x32f   : > { %1029 = vmatpush.msrb.mxu3 %v1843_v19  ;;  %v1858_v21 = vpop.eup %1857 }
 0x330   : > { %1716 = vmatmul.msk.f32.gmra.mxu2 %vm744_vm2, %v1856_v20  ;;  %v899_v54 = vsel %vm744_vm2, %v1858_v21, 0.0 }
 0x331   : > { %1030 = vmatpush.msrb.mxu3 %v1844_v61 }
 0x332   : > { %1717 = vmatmul.msk.f32.vlgmr.msrb.gmra.mxu3 %vm744_vm2, %v1858_v21 }
 0x334   : > { %v814_v7 = vpop.permute.xlu0 %813 }
 0x335   : > { %v843_v62 = vsub.f32 %v2108_v10, %v814_v7 }
 0x336   : > { %882 = vadd.xlane.f32.xlu1 %v881_v22  ;;  %v868_v22 = vld [vmem:[#allocation3 + $0x18] sm:$0xff] }
 0x337   : > { %v853_v25 = vmul.f32 1.442695, %v843_v62  ;;  %v871_v62 = vld [vmem:[#allocation3 + $0x30] sm:$0xff] }
 0x339   : > { %1859 = vpow2.f32 %v853_v25 }
 0x33c   : > { %v809_v26 = vpop.permute.xlu0 %808 }
 0x33d   : > { %v842_v31 = vsub.f32 %v2115_v13, %v809_v26 }
 0x33f   : > { %v1860_v32 = vpop.eup %1859  ;;  %v851_v37 = vmul.f32 1.442695, %v842_v31 }
 0x340   : > { %1713 = vmatmul.msk.f32.vlgmr.msrb.gmra.mxu1 %vm744_vm2, %v1860_v32  ;;  %v887_v40 = vsel %vm744_vm2, %v1860_v32, 0.0 }
 0x341   : > { %1861 = vpow2.f32 %v851_v37  ;;  %888 = vadd.xlane.f32.xlu2 %v887_v40 }
 0x344   : > { %v819_v42 = vpop.permute.xlu0 %818 }
 0x345   : > { %v844_v45 = vsub.f32 %v2122_v16, %v819_v42  ;;  %v896_v16 = vsel %vm744_vm2, %v1856_v20, 0.0 }
 0x347   : > { %v1862_v10 = vpop.eup %1861  ;;  %v855_v49 = vmul.f32 1.442695, %v844_v45 }
 0x348   : > { %1712 = vmatmul.msk.f32.gmra.mxu0 %vm744_vm2, %v1862_v10  ;;  %v884_v53 = vsel %vm744_vm2, %v1862_v10, 0.0 }
 0x349   : > { %1863 = vpow2.f32 %v855_v49  ;;  %894 = vadd.xlane.f32.xlu2 %v893_v52  ;;  %885 = vadd.xlane.f32.xlu0 %v884_v53 }
 0x34a   : > { %1865 = vpow2.f32 %v795_v56 }
 0x34b   : > { %1867 = vpow2.f32 %v785_v57 }
 0x34c   : > { %1869 = vpow2.f32 %v787_v60 }
 0x34d   : > { %1871 = vpow2.f32 %v797_v2 }
 0x34e   : > { %1873 = vpow2.f32 %v791_v30 }
 0x34f   : > { %v1864_v13 = vpop.eup %1863  ;;  %1875 = vpow2.f32 %v789_v23 }
 0x350   : > { %1714 = vmatmul.msk.f32.gmra.mxu1 %vm744_vm2, %v1864_v13  ;;  %v890_v55 = vsel %vm744_vm2, %v1864_v13, 0.0  ;;  %v2266_v1 = vpop.eup %1865 }
 0x351   : > { %900 = vadd.xlane.f32.xlu2 %v899_v54  ;;  %891 = vadd.xlane.f32.xlu0 %v890_v55  ;;  %v1868_v29 = vpop.eup %1867  ;;  %v870_v54 = vld [vmem:[#allocation3 + $0x28] sm:$0xff] }
 0x352   : > { %v1870_v33 = vpop.eup %1869  ;;  %v878_v56 = vmul.f32 %v2266_v1, %v870_v54 }
 0x353   : > { %v1872_v27 = vpop.eup %1871  ;;  %v874_v12 = vmul.f32 %v1870_v33, %v866_v0 }
 0x354   : > { %v1874_v34 = vpop.eup %1873  ;;  %v879_v32 = vmul.f32 %v1872_v27, %v871_v62  ;;  %v1041_v62 = vld [vmem:[#allocation4 + $0x18] sm:$0xff] }
 0x355   : > { %v1876_v35 = vpop.eup %1875  ;;  %v876_v37 = vmul.f32 %v1874_v34, %v868_v22 }
 0x356   : > { %v875_v28 = vmul.f32 %v1876_v35, %v867_v24 }
 0x359   : > { %897 = vadd.xlane.f32.xlu0 %v896_v16  ;;  %v1043_v16 = vld [vmem:[#allocation4 + $0x28] sm:$0xff] }
 0x369   : > { %1073 = vperm.xlu2 %1839, %v2266_v1  }
 0x36d   : > { %1048 = vperm.xlu0 %1838, %v1868_v29  }
 0x371   : > { %1053 = vperm.xlu2 %1839, %v1870_v33   ;;  %v2298_v33 = vpop.f32.mrf.mxu0 }
 0x375   : > { %1078 = vperm.xlu0 %1838, %v1872_v27  }
 0x379   : > { %1063 = vperm.xlu2 %1839, %v1874_v34  }
 0x37d   : > { %1058 = vperm.xlu0 %1838, %v1876_v35  }
 0x37e   : > { %v839_v36 = vpop.permute.xlu1 %838 }
 0x37f   : > { %v848_v44 = vsub.f32 %v2184_v38, %v839_v36  ;;  %v865_v38 = vld [vmem:[#allocation3] sm:$0xff] }
 0x380   : > { %v873_v51 = vmul.f32 %v1868_v29, %v865_v38 }
 0x381   : > { %v863_v46 = vmul.f32 1.442695, %v848_v44 }
 0x383   : > { %1877 = vpow2.f32 %v863_v46 }
 0x384   : > { %1879 = vpow2.f32 %v793_v41  ;;  %v1039_v41 = vld [vmem:[#allocation4 + $0x8] sm:$0xff] }
 0x385   : > { %1881 = vpow2.f32 %v799_v43 }
 0x389   : > { %v1878_v47 = vpop.eup %1877 }
 0x38a   : > { %1718 = vmatmul.msk.f32.gmra.mxu3 %vm744_vm2, %v1878_v47  ;;  %v902_v48 = vsel %vm744_vm2, %v1878_v47, 0.0  ;;  %v1880_v50 = vpop.eup %1879 }
 0x38b   : > { %903 = vadd.xlane.f32.xlu1 %v902_v48  ;;  %v2283_v5 = vpop.eup %1881  ;;  %v877_v11 = vmul.f32 %v1880_v50, %v869_v63 }
 0x3a4   : > { %1068 = vperm.xlu1 %1845, %v1880_v50  }
 0x3a9   : > { %v883_v3 = vpop.xlane.xlu1 %882 }
 0x3aa   : > { %v905_v4 = vadd.f32 %v883_v3, %v873_v51 }
 0x3ab   : > { %v2290_v31 = vpop.f32.mrf.mxu2 }
 0x3ac   : > { %914 = vst.msk [vmem:[#allocation3] sm:$0xff] %vm380_vm3, %v905_v4  ;;  %1083 = vperm.xlu1 %1845, %v2283_v5  }
 0x3b3   : > { %v1121_v6 = vld [vmem:[#allocation3] sm:$0xff]  ;;  %v1006_v23 = vpop.f32.mrf.mxu2 }
 0x3b4   : > { %v889_v8 = vpop.xlane.xlu2 %888  ;;  %1883 = vrcp.f32 %v1121_v6  ;;  %v1140_v20 = vand.u32 2147483648, %v1121_v6  ;;  %v1138_v7 = vand.u32 2147483647, %v1121_v6  ;;  %vm1134_vm6 = vweird.f32 %v1121_v6 }
 0x3b5   : > { %v907_v59 = vadd.f32 %v889_v8, %v875_v28 }
 0x3b6   : > { %v1141_v26 = vor.u32 1.1754944e-38, %v1140_v20  ;;  %vm1139_vm8 = vcmp.eq.f32.partialorder %v1138_v7, 8.507059e+37 }
 0x3b7   : > { %916 = vst.msk [vmem:[#allocation3 + $0x10] sm:$0xff] %vm380_vm3, %v907_v59 }
 0x3ba   : > { %v1884_v9 = vpop.eup %1883 }
 0x3bb   : > { %v1130_v14 = vmul.f32 %v1884_v9, %v1121_v6  ;;  %vm1135_vm5 = vweird.f32 %v1884_v9 }
 0x3bc   : > { %v895_v15 = vpop.xlane.xlu2 %894  ;;  %v886_v17 = vpop.xlane.xlu0 %885  ;;  %vm1136_vm7 = vmor %vm1134_vm6, %vm1135_vm5 }
 0x3bd   : > { %v909_v18 = vadd.f32 %v895_v15, %v877_v11  ;;  %v906_v19 = vadd.f32 %v886_v17, %v874_v12  ;;  %v1131_v61 = vsub.f32 1.0, %v1130_v14  ;;  %v2312_v63 = vpop.f32.mrf.mxu1 }
 0x3be   : > { %v2294_v55 = vld [vmem:[#allocation3 + $0x10] sm:$0xff] }
 0x3bf   : > { %918 = vst.msk [vmem:[#allocation3 + $0x20] sm:$0xff] %vm380_vm3, %v909_v18  ;;  %v1132_v21 = vmul.f32 %v1884_v9, %v1131_v61 }
 0x3c0   : > { %915 = vst.msk [vmem:[#allocation3 + $0x8] sm:$0xff] %vm380_vm3, %v906_v19 }
 0x3c1   : > { %v1133_v25 = vadd.f32 %v1884_v9, %v1132_v21 }
 0x3c3   : > { %v1137_v40 = vsel %vm1136_vm7, %v1884_v9, %v1133_v25 }
 0x3c4   : > { %v901_v42 = vpop.xlane.xlu2 %900  ;;  %v892_v45 = vpop.xlane.xlu0 %891  ;;  %v1142_v10 = vsel %vm1139_vm8, %v1141_v26, %v1137_v40  ;;  %vm1164_vm8 = vweird.f32 %v2294_v55 }
 0x3c5   : > { %v911_v49 = vadd.f32 %v901_v42, %v879_v32  ;;  %v908_v52 = vadd.f32 %v892_v45, %v876_v37  ;;  %1259 = vperm.xlu2 %1839, %v1142_v10   ;;  %v948_v0 = vpop.f32.mrf.mxu0  ;;  %v1038_v10 = vld [vmem:[#allocation4] sm:$0xff] }
 0x3c6   : > { %v1125_v53 = vld [vmem:[#allocation3 + $0x20] sm:$0xff] }
 0x3c7   : > { %920 = vst.msk [vmem:[#allocation3 + $0x30] sm:$0xff] %vm380_vm3, %v911_v49  ;;  %1885 = vrcp.f32 %v1125_v53  ;;  %v1122_v13 = vld [vmem:[#allocation3 + $0x8] sm:$0xff]  ;;  %v1198_v47 = vand.u32 2147483647, %v1125_v53  ;;  %v1200_v48 = vand.u32 2147483648, %v1125_v53  ;;  %vm1194_vm11 = vweird.f32 %v1125_v53 }
 0x3c8   : > { %917 = vst.msk [vmem:[#allocation3 + $0x18] sm:$0xff] %vm380_vm3, %v908_v52  ;;  %1887 = vrcp.f32 %v1122_v13  ;;  %v1153_v50 = vand.u32 2147483647, %v1122_v13  ;;  %v1155_v38 = vand.u32 2147483648, %v1122_v13  ;;  %vm1149_vm12 = vweird.f32 %v1122_v13 }
 0x3c9   : > { %1889 = vrcp.f32 %v2294_v55  ;;  %vm1199_vm14 = vcmp.eq.f32.partialorder %v1198_v47, 8.507059e+37  ;;  %v1201_v8 = vor.u32 1.1754944e-38, %v1200_v48  ;;  %v1044_v48 = vld [vmem:[#allocation4 + $0x30] sm:$0xff] }
 0x3ca   : > { %vm1154_vm1 = vcmp.eq.f32.partialorder %v1153_v50, 8.507059e+37  ;;  %v1156_v11 = vor.u32 1.1754944e-38, %v1155_v38 }
 0x3cc   : > { %v1074_v57 = vpop.permute.xlu2 %1073  ;;  %v898_v58 = vpop.xlane.xlu0 %897 }
 0x3cd   : > { %v1886_v60 = vpop.eup %1885  ;;  %v1091_v2 = vmul.f32 %v1074_v57, %v1043_v16  ;;  %v910_v29 = vadd.f32 %v898_v58, %v878_v56  ;;  %v977_v52 = vpop.f32.mrf.mxu1 }
 0x3ce   : > { %v1888_v30 = vpop.eup %1887  ;;  %v1190_v27 = vmul.f32 %v1886_v60, %v1125_v53  ;;  %v2300_v34 = vld [vmem:[#allocation3 + $0x30] sm:$0xff]  ;;  %vm1195_vm9 = vweird.f32 %v1886_v60 }
 0x3cf   : > { %v1099_v35 = vadd.f32 %v1091_v2, %v1006_v23  ;;  %919 = vst.msk [vmem:[#allocation3 + $0x28] sm:$0xff] %vm380_vm3, %v910_v29  ;;  %v1145_v36 = vmul.f32 %v1888_v30, %v1122_v13  ;;  %1891 = vrcp.f32 %v2300_v34  ;;  %v2304_v44 = vld [vmem:[#allocation3 + $0x18] sm:$0xff]  ;;  %v2306_v46 = vpop.eup %1889  ;;  %vm1150_vm10 = vweird.f32 %v1888_v30  ;;  %vm1196_vm13 = vmor %vm1194_vm11, %vm1195_vm9 }
 0x3d0   : > { %v1191_v1 = vsub.f32 1.0, %v1190_v27  ;;  %1893 = vrcp.f32 %v2304_v44  ;;  %v1160_v24 = vmul.f32 %v2306_v46, %v2294_v55  ;;  %vm1151_vm15 = vmor %vm1149_vm12, %vm1150_vm10  ;;  %v1230_v7 = vand.u32 2147483648, %v2300_v34 }
 0x3d1   : > { %1107 = vst.msk [vmem:[#allocation4 + $0x28] sm:$0xff] %vm397_vm0, %v1099_v35  ;;  %v1146_v39 = vsub.f32 1.0, %v1145_v36  ;;  %v1228_v25 = vand.u32 2147483647, %v2300_v34  ;;  %vm1224_vm4 = vweird.f32 %v2300_v34  ;;  %vm1165_vm7 = vweird.f32 %v2306_v46 }
 0x3d2   : > { %v1192_v43 = vmul.f32 %v1886_v60, %v1191_v1  ;;  %v1161_v20 = vsub.f32 1.0, %v1160_v24  ;;  %v1231_v49 = vor.u32 1.1754944e-38, %v1230_v7  ;;  %v1168_v29 = vand.u32 2147483647, %v2294_v55  ;;  %vm1166_vm10 = vmor %vm1164_vm8, %vm1165_vm7 }
 0x3d3   : > { %v1147_v51 = vmul.f32 %v1888_v30, %v1146_v39  ;;  %vm1229_vm6 = vcmp.eq.f32.partialorder %v1228_v25, 8.507059e+37  ;;  %v1183_v24 = vand.u32 2147483647, %v2304_v44 }
 0x3d4   : > { %v1054_v3 = vpop.permute.xlu2 %1053  ;;  %v1193_v4 = vadd.f32 %v1886_v60, %v1192_v43  ;;  %v1162_v37 = vmul.f32 %v2306_v46, %v1161_v20 }
 0x3d5   : > { %v1892_v28 = vpop.eup %1891  ;;  %v1087_v6 = vmul.f32 %v1054_v3, %v1039_v41  ;;  %v1148_v59 = vadd.f32 %v1888_v30, %v1147_v51  ;;  %v1185_v3 = vand.u32 2147483648, %v2304_v44 }
 0x3d6   : > { %v1197_v9 = vsel %vm1196_vm13, %v1886_v60, %v1193_v4  ;;  %v1220_v12 = vmul.f32 %v1892_v28, %v2300_v34  ;;  %v1126_v14 = vld [vmem:[#allocation3 + $0x28] sm:$0xff]  ;;  %v2316_v21 = vpop.eup %1893  ;;  %vm1225_vm2 = vweird.f32 %v1892_v28  ;;  %v1163_v58 = vadd.f32 %v2306_v46, %v1162_v37 }
 0x3d7   : > { %v1095_v15 = vadd.f32 %v1087_v6, %v948_v0  ;;  %v1202_v17 = vsel %vm1199_vm14, %v1201_v8, %v1197_v9  ;;  %v1152_v18 = vsel %vm1151_vm15, %v1888_v30, %v1148_v59  ;;  %1895 = vrcp.f32 %v1126_v14  ;;  %vm1226_vm5 = vmor %vm1224_vm4, %vm1225_vm2  ;;  %v1040_v6 = vld [vmem:[#allocation4 + $0x10] sm:$0xff] }
 0x3d8   : > { %1279 = vperm.xlu1 %1845, %v1202_v17   ;;  %v1157_v19 = vsel %vm1154_vm1, %v1156_v11, %v1152_v18  ;;  %v1221_v61 = vsub.f32 1.0, %v1220_v12  ;;  %v1175_v40 = vmul.f32 %v2316_v21, %v2304_v44  ;;  %v1170_v30 = vand.u32 2147483648, %v2294_v55  ;;  %v872_v12 = vld [vmem:[#allocation3 + $0x38] sm:$0xff] }
 0x3d9   : > { %1103 = vst.msk [vmem:[#allocation4 + $0x8] sm:$0xff] %vm397_vm0, %v1095_v15  ;;  %1264 = vperm.xlu0 %1838, %v1157_v19   ;;  %v1215_v23 = vand.u32 2147483648, %v1126_v14  ;;  %v1213_v35 = vand.u32 2147483647, %v1126_v14  ;;  %v1167_v36 = vsel %vm1166_vm10, %v2306_v46, %v1163_v58  ;;  %vm1209_vm11 = vweird.f32 %v1126_v14  ;;  %v1032_v46 = vpop.f32.mrf.mxu3 }
 0x3da   : > { %v1222_v22 = vmul.f32 %v1892_v28, %v1221_v61  ;;  %v1176_v2 = vsub.f32 1.0, %v1175_v40  ;;  %v1171_v39 = vor.u32 1.1754944e-38, %v1170_v30  ;;  %vm1169_vm13 = vcmp.eq.f32.partialorder %v1168_v29, 8.507059e+37  ;;  %v1045_v40 = vld [vmem:[#allocation4 + $0x38] sm:$0xff] }
 0x3db   : > { %v1216_v55 = vor.u32 1.1754944e-38, %v1215_v23  ;;  %vm1214_vm14 = vcmp.eq.f32.partialorder %v1213_v35, 8.507059e+37  ;;  %vm1180_vm15 = vweird.f32 %v2316_v21  ;;  %vm1179_vm1 = vweird.f32 %v2304_v44 }
 0x3dc   : > { %v1064_v26 = vpop.permute.xlu2 %1063  ;;  %v1223_v32 = vadd.f32 %v1892_v28, %v1222_v22  ;;  %v1177_v47 = vmul.f32 %v2316_v21, %v1176_v2  ;;  %v1172_v43 = vsel %vm1169_vm13, %v1171_v39, %v1167_v36  ;;  %vm1181_vm2 = vmor %vm1179_vm1, %vm1180_vm15  ;;  %v1186_v8 = vor.u32 1.1754944e-38, %v1185_v3 }
 0x3dd   : > { %v1896_v42 = vpop.eup %1895  ;;  %v1089_v45 = vmul.f32 %v1064_v26, %v1041_v62  ;;  %vm1184_vm4 = vcmp.eq.f32.partialorder %v1183_v24, 8.507059e+37  ;;  %v1946_v35 = vmov 1934713408   ;;  %vm1556_vm10 = vcmask 785408  }
 0x3de   : > { %v1227_v53 = vsel %vm1226_vm5, %v1892_v28, %v1223_v32  ;;  %v1205_v13 = vmul.f32 %v1896_v42, %v1126_v14  ;;  %vm1210_vm9 = vweird.f32 %v1896_v42  ;;  %v1178_v51 = vadd.f32 %v2316_v21, %v1177_v47 }
 0x3df   : > { %v1097_v54 = vadd.f32 %v1089_v45, %v977_v52  ;;  %v1049_v16 = vpop.permute.xlu0 %1048  ;;  %v1232_v56 = vsel %vm1229_vm6, %v1231_v49, %v1227_v53  ;;  %vm1211_vm12 = vmor %vm1209_vm11, %vm1210_vm9  ;;  %v880_v14 = vmul.f32 %v2283_v5, %v872_v12  ;;  %v1335_v36 = vunpack.c.l.s4 %v1946_v35 }
 0x3e0   : > { %v1086_v57 = vmul.f32 %v1049_v16, %v1038_v10  ;;  %1289 = vperm.xlu1 %1845, %v1232_v56   ;;  %v1206_v60 = vsub.f32 1.0, %v1205_v13  ;;  %v1182_v28 = vsel %vm1181_vm2, %v2316_v21, %v1178_v51  ;;  %v1042_v21 = vld [vmem:[#allocation4 + $0x20] sm:$0xff]  ;;  %vm1553_vm9 = vcmask 523264  }
 0x3e1   : > { %1105 = vst.msk [vmem:[#allocation4 + $0x18] sm:$0xff] %vm397_vm0, %v1097_v54  ;;  %v1187_v0 = vsel %vm1184_vm4, %v1186_v8, %v1182_v28 }
 0x3e2   : > { %v1094_v27 = vadd.f32 %v1086_v57, %v2298_v33  ;;  %v1207_v34 = vmul.f32 %v1896_v42, %v1206_v60 }
 0x3e4   : > { %1102 = vst.msk [vmem:[#allocation4] sm:$0xff] %vm397_vm0, %v1094_v27  ;;  %v1208_v1 = vadd.f32 %v1896_v42, %v1207_v34 }
 0x3e6   : > { %v1212_v33 = vsel %vm1211_vm12, %v1896_v42, %v1208_v1 }
 0x3e7   : > { %v1079_v41 = vpop.permute.xlu0 %1078  ;;  %v1217_v50 = vsel %vm1214_vm14, %v1216_v55, %v1212_v33 }
 0x3e8   : > { %v1092_v38 = vmul.f32 %v1079_v41, %v1044_v48  ;;  %1269 = vperm.xlu1 %1845, %v1172_v43   ;;  %1284 = vperm.xlu0 %1838, %v1217_v50   ;;  %v2357_v43 = vunpack.c.0.s8 %v1335_v36  ;;  %v1252_v35 = vld [vmem:[#allocation4 + $0x18] sm:$0xff] }
 0x3ea   : > { %v1100_v4 = vadd.f32 %v1092_v38, %v1032_v46 }
 0x3eb   : > { %v1249_v16 = vld [vmem:[#allocation4] sm:$0xff] }
 0x3ec   : > { %1108 = vst.msk [vmem:[#allocation4 + $0x30] sm:$0xff] %vm397_vm0, %v1100_v4 }
 0x3ef   : > { %v1059_v59 = vpop.permute.xlu0 %1058 }
 0x3f0   : > { %v1088_v9 = vmul.f32 %v1059_v59, %v1040_v6  ;;  %1274 = vperm.xlu0 %1838, %v1187_v0  }
 0x3f2   : > { %v1096_v11 = vadd.f32 %v1088_v9, %v2312_v63 }
 0x3f3   : > { %v1255_v2 = vld [vmem:[#allocation4 + $0x30] sm:$0xff] }
 0x3f4   : > { %1104 = vst.msk [vmem:[#allocation4 + $0x10] sm:$0xff] %vm397_vm0, %v1096_v11 }
 0x3fb   : > { %v1251_v48 = vld [vmem:[#allocation4 + $0x10] sm:$0xff] }
 0x3fe   : > { %v904_v44 = vpop.xlane.xlu1 %903 }
 0x3ff   : > { %v912_v15 = vadd.f32 %v904_v44, %v880_v14 }
 0x401   : > { %921 = vst.msk [vmem:[#allocation3 + $0x38] sm:$0xff] %vm380_vm3, %v912_v15  ;;  %vm1306_vm3 = vcmask 1047556  }
 0x408   : > { %v1128_v17 = vld [vmem:[#allocation3 + $0x38] sm:$0xff] }
 0x409   : > { %1897 = vrcp.f32 %v1128_v17  ;;  %v1245_v20 = vand.u32 2147483648, %v1128_v17  ;;  %v1243_v62 = vand.u32 2147483647, %v1128_v17  ;;  %vm1239_vm6 = vweird.f32 %v1128_v17 }
 0x40b   : > { %v1246_v5 = vor.u32 1.1754944e-38, %v1245_v20  ;;  %vm1244_vm8 = vcmp.eq.f32.partialorder %v1243_v62, 8.507059e+37 }
 0x40d   : > { %v1035_v10 = vpop.f32.mrf.mxu3 }
 0x40f   : > { %v1898_v18 = vpop.eup %1897 }
 0x410   : > { %v1235_v19 = vmul.f32 %v1898_v18, %v1128_v17  ;;  %vm1240_vm5 = vweird.f32 %v1898_v18 }
 0x411   : > { %vm1241_vm7 = vmor %vm1239_vm6, %vm1240_vm5 }
 0x412   : > { %v1236_v61 = vsub.f32 1.0, %v1235_v19 }
 0x414   : > { %v1237_v7 = vmul.f32 %v1898_v18, %v1236_v61 }
 0x416   : > { %v1069_v63 = vpop.permute.xlu1 %1068  ;;  %v1238_v22 = vadd.f32 %v1898_v18, %v1237_v7 }
 0x417   : > { %v1090_v25 = vmul.f32 %v1069_v63, %v1042_v21 }
 0x418   : > { %v1242_v26 = vsel %vm1241_vm7, %v1898_v18, %v1238_v22 }
 0x419   : > { %v1098_v32 = vadd.f32 %v1090_v25, %v2290_v31  ;;  %v1247_v37 = vsel %vm1244_vm8, %v1246_v5, %v1242_v26  ;;  %v1945_v31 = vmov 1983009808  }
 0x41a   : > { %1294 = vperm.xlu2 %1839, %v1247_v37   ;;  %v1311_v60 = vunpack.c.l.s4 %v1945_v31 }
 0x41b   : > { %1106 = vst.msk [vmem:[#allocation4 + $0x20] sm:$0xff] %vm397_vm0, %v1098_v32  ;;  %v1250_v32 = vld [vmem:[#allocation4 + $0x8] sm:$0xff] }
 0x41c   : > { %v2352_v27 = vunpack.c.0.s8 %v1311_v60 }
 0x41e   : > { %v1084_v42 = vpop.permute.xlu1 %1083 }
 0x41f   : > { %v1093_v45 = vmul.f32 %v1084_v42, %v1045_v40  ;;  %v1260_v54 = vpop.permute.xlu2 %1259 }
 0x420   : > { %v1297_v57 = vmul.f32 %v1260_v54, %v1249_v16 }
 0x421   : > { %v1101_v49 = vadd.f32 %v1093_v45, %v1035_v10 }
 0x422   : > { %v1253_v53 = vld [vmem:[#allocation4 + $0x20] sm:$0xff]  ;;  %v1308_v29 = vrot.slane %v1297_v57, 4 }
 0x423   : > { %1109 = vst.msk [vmem:[#allocation4 + $0x38] sm:$0xff] %vm397_vm0, %v1101_v49  ;;  %v1254_v49 = vld [vmem:[#allocation4 + $0x28] sm:$0xff] }
 0x44a   : > { %v1280_v52 = vpop.permute.xlu1 %1279 }
 0x44b   : > { %v1301_v13 = vmul.f32 %v1280_v52, %v1253_v53  ;;  %v1265_v41 = vpop.permute.xlu0 %1264 }
 0x44c   : > { %v1298_v10 = vmul.f32 %v1265_v41, %v1250_v32 }
 0x44d   : > { %v1305_v58 = vrot.slane %v1301_v13, 4  ;;  %v1309_v34 = vsel %vm1306_vm3, %v1301_v13, %v1308_v29 }
 0x44e   : > { %v1317_v33 = vperm.slane %v1309_v34, %v2352_v27 }
 0x44f   : > { %v1307_v30 = vsel %vm1306_vm3, %v1305_v58, %v1297_v57 }
 0x450   : > { %v1313_v1 = vperm.slane %v1307_v30, %v2352_v27  ;;  %v1344_v4 = vrot.slane %v1317_v33, 4  ;;  %v1364_v30 = vrot.slane %v1298_v10, 4 }
 0x452   : > { %v1290_v56 = vpop.permute.xlu1 %1289  ;;  %v1332_v51 = vrot.slane %v1313_v1, 4 }
 0x453   : > { %v1303_v23 = vmul.f32 %v1290_v56, %v1255_v2 }
 0x455   : > { %v1318_v39 = vrot.slane %v1303_v23, 4 }
 0x45a   : > { %v1270_v47 = vpop.permute.xlu1 %1269  ;;  %v1285_v15 = vpop.permute.xlu0 %1284 }
 0x45b   : > { %v1299_v55 = vmul.f32 %v1270_v47, %v1251_v48  ;;  %v1302_v53 = vmul.f32 %v1285_v15, %v1254_v49 }
 0x45d   : > { %v1319_v50 = vsel %vm1306_vm3, %v1318_v39, %v1299_v55  ;;  %v1320_v38 = vrot.slane %v1299_v55, 4  ;;  %v1365_v39 = vsel %vm1306_vm3, %v1302_v53, %v1364_v30 }
 0x45e   : > { %v1325_v46 = vperm.slane %v1319_v50, %v2352_v27 }
 0x45f   : > { %v1321_v3 = vsel %vm1306_vm3, %v1303_v23, %v1320_v38  ;;  %v1362_v23 = vrot.slane %v1302_v53, 4 }
 0x460   : > { %v1329_v24 = vperm.slane %v1321_v3, %v2352_v27  ;;  %v1330_v28 = vrot.slane %v1325_v46, 4  ;;  %v1333_v6 = vsel %vm1306_vm3, %v1325_v46, %v1332_v51  ;;  %v1373_v51 = vperm.slane %v1365_v39, %v2352_v27  ;;  %v1256_v3 = vld [vmem:[#allocation4 + $0x38] sm:$0xff] }
 0x461   : > { %v1341_v8 = vperm.slane %v1333_v6, %v2357_v43  ;;  %v1363_v38 = vsel %vm1306_vm3, %v1362_v23, %v1298_v10 }
 0x462   : > { %v1331_v59 = vsel %vm1306_vm3, %v1330_v28, %v1313_v1  ;;  %v1342_v0 = vrot.slane %v1329_v24, 4  ;;  %v1345_v9 = vsel %vm1306_vm3, %v1329_v24, %v1344_v4  ;;  %v1275_v60 = vpop.permute.xlu0 %1274  ;;  %v1369_v6 = vperm.slane %v1363_v38, %v2352_v27 }
 0x463   : > { %v1337_v11 = vperm.slane %v1331_v59, %v2357_v43  ;;  %v1353_v12 = vperm.slane %v1345_v9, %v2357_v43  ;;  %v1356_v14 = vrot.slane %v1341_v8, 4  ;;  %v1300_v55 = vmul.f32 %v1275_v60, %v1252_v35 }
 0x464   : > { %v1343_v44 = vsel %vm1306_vm3, %v1342_v0, %v1317_v33  ;;  %v1400_v0 = vrot.slane %v1373_v51, 4 }
 0x465   : > { %v1349_v17 = vperm.slane %v1343_v44, %v2357_v43  ;;  %v1354_v18 = vrot.slane %v1337_v11, 4  ;;  %v1357_v19 = vsel %vm1306_vm3, 0.0, %v1356_v14  ;;  %v1360_v61 = vrot.slane %v1353_v12, 4 }
 0x466   : > { %v1423_v20 = vrot.slane %v1357_v19, 4  ;;  %v1418_v21 = vsel %vm1306_vm3, %v1356_v14, %v1337_v11  ;;  %v1376_v24 = vrot.slane %v1300_v55, 4  ;;  %v1388_v12 = vrot.slane %v1369_v6, 4 }
 0x467   : > { %v1358_v7 = vrot.slane %v1349_v17, 4  ;;  %v1361_v62 = vsel %vm1306_vm3, 0.0, %v1360_v61  ;;  %v1355_v63 = vsel %vm1306_vm3, 0.0, %v1354_v18  ;;  %v1422_v22 = vperm.slane %v1418_v21, %v2352_v27 }
 0x468   : > { %v1434_v25 = vrot.slane %v1361_v62, 4  ;;  %v1424_v5 = vsel %vm1306_vm3, %v1423_v20, %v1355_v63  ;;  %v1429_v26 = vsel %vm1306_vm3, %v1360_v61, %v1349_v17 }
 0x469   : > { %v1359_v37 = vsel %vm1306_vm3, 0.0, %v1358_v7  ;;  %v1428_v40 = vperm.slane %v1424_v5, %v2352_v27  ;;  %v1433_v42 = vperm.slane %v1429_v26, %v2352_v27  ;;  %v1442_v45 = vrot.slane %v1422_v22, 4 }
 0x46a   : > { %v1435_v52 = vsel %vm1306_vm3, %v1434_v25, %v1359_v37 }
 0x46b   : > { %v1439_v13 = vperm.slane %v1435_v52, %v2352_v27  ;;  %v1454_v54 = vrot.slane %v1433_v42, 4  ;;  %v1440_v16 = vrot.slane %v1428_v40, 4  ;;  %v1443_v56 = vsel %vm1306_vm3, %v1428_v40, %v1442_v45 }
 0x46c   : > { %v2392_v36 = vperm.slane %v1443_v56, %v2357_v43 }
 0x46d   : > { %v1455_v57 = vsel %vm1306_vm3, %v1439_v13, %v1454_v54  ;;  %v1441_v58 = vsel %vm1306_vm3, %v1440_v16, %v1422_v22  ;;  %v1452_v31 = vrot.slane %v1439_v13, 4 }
 0x46e   : > { %v2387_v2 = vperm.slane %v1455_v57, %v2357_v43  ;;  %v1447_v29 = vperm.slane %v1441_v58, %v2357_v43 }
 0x46f   : > { %v1453_v34 = vsel %vm1306_vm3, %v1452_v31, %v1433_v42 }
 0x470   : > { %v1468_v1 = vrot.slane %v2387_v2, 4  ;;  %v1459_v47 = vperm.slane %v1453_v34, %v2357_v43  ;;  %v1466_v48 = vrot.slane %v1447_v29, 4 }
 0x472   : > { %v1469_v33 = vsel %vm1306_vm3, %v1468_v1, %v2392_v36  ;;  %v1464_v41 = vrot.slane %v1459_v47, 4  ;;  %v1467_v50 = vsel %vm1306_vm3, %v1459_v47, %v1466_v48 }
 0x473   : > { %1536 = vrot.lane.b32.xlu0 %v1469_v33, %s1940_s28  ;;  %1528 = vrot.lane.b32.xlu2 %v1467_v50, %s1941_s29 }
 0x474   : > { %v1295_v46 = vpop.permute.xlu2 %1294  ;;  %v2405_v4 = vsel %vm1306_vm3, %v1464_v41, %v1447_v29 }
 0x475   : > { %v1304_v28 = vmul.f32 %v1295_v46, %v1256_v3  ;;  %v1470_v46 = vrot.slane %v2392_v36, 4 }
 0x477   : > { %v1374_v8 = vrot.slane %v1304_v28, 4  ;;  %v1377_v59 = vsel %vm1306_vm3, %v1304_v28, %v1376_v24 }
 0x478   : > { %v1385_v9 = vperm.slane %v1377_v59, %v2352_v27 }
 0x479   : > { %v1375_v11 = vsel %vm1306_vm3, %v1374_v8, %v1300_v55 }
 0x47a   : > { %v1381_v14 = vperm.slane %v1375_v11, %v2352_v27  ;;  %v1398_v44 = vrot.slane %v1385_v9, 4  ;;  %v1401_v15 = vsel %vm1306_vm3, %v1385_v9, %v1400_v0 }
 0x47b   : > { %v1409_v17 = vperm.slane %v1401_v15, %v2357_v43 }
 0x47c   : > { %v1386_v18 = vrot.slane %v1381_v14, 4  ;;  %v1389_v19 = vsel %vm1306_vm3, %v1381_v14, %v1388_v12  ;;  %v1399_v61 = vsel %vm1306_vm3, %v1398_v44, %v1373_v51 }
 0x47d   : > { %v1397_v20 = vperm.slane %v1389_v19, %v2357_v43  ;;  %v1405_v21 = vperm.slane %v1399_v61, %v2357_v43  ;;  %v1416_v7 = vrot.slane %v1409_v17, 4 }
 0x47e   : > { %v1387_v62 = vsel %vm1306_vm3, %v1386_v18, %v1369_v6 }
 0x47f   : > { %v1393_v63 = vperm.slane %v1387_v62, %v2357_v43  ;;  %v1412_v22 = vrot.slane %v1397_v20, 4  ;;  %v1414_v25 = vrot.slane %v1405_v21, 4  ;;  %v1417_v5 = vsel %vm1306_vm3, 0.0, %v1416_v7 }
 0x480   : > { %v1483_v26 = vsel %vm1306_vm3, %v1416_v7, %v1405_v21  ;;  %v1488_v32 = vrot.slane %v1417_v5, 4 }
 0x481   : > { %v1413_v37 = vsel %vm1306_vm3, 0.0, %v1412_v22  ;;  %v1410_v40 = vrot.slane %v1393_v63, 4  ;;  %v1415_v42 = vsel %vm1306_vm3, 0.0, %v1414_v25  ;;  %v1472_v45 = vsel %vm1306_vm3, %v1412_v22, %v1393_v63 }
 0x482   : > { %v1477_v10 = vrot.slane %v1413_v37, 4  ;;  %v1476_v49 = vperm.slane %v1472_v45, %v2352_v27  ;;  %v1487_v52 = vperm.slane %v1483_v26, %v2352_v27  ;;  %v1489_v53 = vsel %vm1306_vm3, %v1488_v32, %v1415_v42 }
 0x483   : > { %v1411_v13 = vsel %vm1306_vm3, 0.0, %v1410_v40  ;;  %v1493_v54 = vperm.slane %v1489_v53, %v2352_v27 }
 0x484   : > { %v1478_v16 = vsel %vm1306_vm3, %v1477_v10, %v1411_v13  ;;  %v1496_v56 = vrot.slane %v1476_v49, 4  ;;  %v1508_v57 = vrot.slane %v1487_v52, 4 }
 0x485   : > { %v1482_v58 = vperm.slane %v1478_v16, %v2352_v27  ;;  %v1506_v31 = vrot.slane %v1493_v54, 4 }
 0x486   : > { %v1509_v60 = vsel %vm1306_vm3, %v1493_v54, %v1508_v57 }
 0x487   : > { %v1497_v29 = vsel %vm1306_vm3, %v1482_v58, %v1496_v56  ;;  %v1517_v30 = vperm.slane %v1509_v60, %v2357_v43  ;;  %v1494_v23 = vrot.slane %v1482_v58, 4  ;;  %v1507_v34 = vsel %vm1306_vm3, %v1506_v31, %v1487_v52 }
 0x488   : > { %v1505_v35 = vperm.slane %v1497_v29, %v2357_v43  ;;  %v1513_v1 = vperm.slane %v1507_v34, %v2357_v43 }
 0x489   : > { %v1522_v47 = vrot.slane %v1517_v30, 4  ;;  %v1495_v48 = vsel %vm1306_vm3, %v1494_v23, %v1476_v49 }
 0x48a   : > { %v1524_v39 = vrot.slane %v1505_v35, 4  ;;  %v1501_v27 = vperm.slane %v1495_v48, %v2357_v43  ;;  %v1518_v55 = vrot.slane %v1513_v1, 4  ;;  %v1471_v43 = vsel %vm1306_vm3, %v2387_v2, %v1470_v46 }
 0x48b   : > { %v1523_v33 = vsel %vm1306_vm3, %v1522_v47, %v1505_v35 }
 0x48c   : > { %1538 = vrot.lane.b32.xlu2 %v1523_v33, %s1940_s28  ;;  %v1525_v41 = vsel %vm1306_vm3, %v1517_v30, %v1524_v39  ;;  %v1520_v50 = vrot.slane %v1501_v27, 4  ;;  %v1519_v38 = vsel %vm1306_vm3, %v1518_v55, %v1501_v27 }
 0x48d   : > { %1546 = vrot.lane.b32.xlu0 %v1525_v41, %s1939_s27 }
 0x48e   : > { %v1521_v51 = vsel %vm1306_vm3, %v1513_v1, %v1520_v50 }
 0x48f   : > { %1530 = vrot.lane.b32.xlu1 %v1521_v51, %s1941_s29 }
 0x497   : > { %1544 = vrot.lane.b32.xlu1 %v1471_v43, %s1939_s27 }
 0x4cd   : > { %v1529_v3 = vpop.permute.xlu2 %1528 }
 0x4ce   : > { %v1551_v59 = vsel %vm397_vm0, %v2405_v4, %v1529_v3 }
 0x4e5   : > { %v1537_v28 = vpop.permute.xlu0 %1536 }
 0x4e6   : > { %v1539_v8 = vpop.permute.xlu2 %1538  ;;  %v1554_v2 = vsel %vm1553_vm9, %v1551_v59, %v1537_v28 }
 0x4ff   : > { %v1547_v9 = vpop.permute.xlu0 %1546 }
 0x501   : > { %v1531_v24 = vpop.permute.xlu1 %1530 }
 0x502   : > { %v1552_v6 = vsel %vm397_vm0, %v1519_v38, %v1531_v24 }
 0x503   : > { %v1555_v36 = vsel %vm1553_vm9, %v1552_v6, %v1539_v8 }
 0x504   : > { %v1558_v12 = vsel %vm1556_vm10, %v1555_v36, %v1547_v9 }
 0x505   : > { %1560 = vst [vmem:[%s373_s7 + $0x8] sm:$0xff] %v1558_v12 }
 0x509   : > { %v1545_v0 = vpop.permute.xlu1 %1544 }
 0x50a   : > { %v1557_v11 = vsel %vm1556_vm10, %v1554_v2, %v1545_v0 }
 0x50b   : > { %1559 = vst [vmem:[%s373_s7] sm:$0xff] %v1557_v11 }
 0x50c PF: > { %s13_s16 = sadd.s32 1, %s1937_s16   ;;  %s2478_s12 = smov %s1925_s13 }
 0x50d   : > { %p10_p10 = scmp.ge.s32.totalorder %s13_s16, 4   ;;  %s2479_s13 = smov %s2006_s21 }
 0x50e   : > { %s2480_s14 = smov %s1933_s15  ;;  %s2481_s15 = smov %s2483_s17 }
 0x50f   :  { %12 = sbr.rel (!%p10_p10) target bundleno = 3 (0x3), region = 209 }

// kernel: gpt2_forward.15
= control target key start
LH: loop header
LB: loop body
LE: loop exit
PB: predicated region body
PF: predicated region fallthrough
CT: control target
= control target key end

     0   :  { %s562_s1 = inlined_call_operand.vmem [shape: f32[512,128], index: 1, kind: input, shape index: {}]   ;;  %s563_s2 = inlined_call_operand.vmem [shape: f32[1,128], index: 2, kind: input, shape index: {}]   ;;  %s564_s0 = inlined_call_operand.vmem [shape: f32[32,512], index: 0, kind: input, shape index: {}]   ;;  %s565_s3 = inlined_call_operand.vmem [shape: f32[32,128], index: 3, kind: input, shape index: {}]   ;;  %s566_s4 = inlined_call_operand.vmem [shape: f32[32,128], index: 4, kind: output, shape index: {}]  }
   0x1   :  { %v116_v0 = vld [vmem:[%s562_s1 + $0x178] sm:$0xff]  ;;  %v115_v2 = vld [vmem:[%s562_s1 + $0x170] sm:$0xff]  ;;  %v114_v6 = vld [vmem:[%s562_s1 + $0x168] sm:$0xff] }
   0x2   :  { %v84_v1 = vld [vmem:[%s562_s1 + $0x78] sm:$0xff]  ;;  %195 = vmatpush.msra.mxu2 %v116_v0  ;;  %v83_v4 = vld [vmem:[%s562_s1 + $0x70] sm:$0xff]  ;;  %v82_v8 = vld [vmem:[%s562_s1 + $0x68] sm:$0xff] }
   0x3   :  { %137 = vmatpush.msra.mxu0 %v84_v1  ;;  %v132_v3 = vld [vmem:[%s562_s1 + $0x1f8] sm:$0xff]  ;;  %v131_v7 = vld [vmem:[%s562_s1 + $0x1f0] sm:$0xff]  ;;  %v130_v10 = vld [vmem:[%s562_s1 + $0x1e8] sm:$0xff] }
   0x4   :  { %v100_v5 = vld [vmem:[%s562_s1 + $0xf8] sm:$0xff]  ;;  %224 = vmatpush.msra.mxu3 %v132_v3  ;;  %196 = vmatpush.msra.mxu2 %v115_v2  ;;  %v99_v9 = vld [vmem:[%s562_s1 + $0xf0] sm:$0xff]  ;;  %v113_v11 = vld [vmem:[%s562_s1 + $0x160] sm:$0xff] }
   0x5   :  { %166 = vmatpush.msra.mxu1 %v100_v5  ;;  %138 = vmatpush.msra.mxu0 %v83_v4  ;;  %v81_v12 = vld [vmem:[%s562_s1 + $0x60] sm:$0xff]  ;;  %v98_v13 = vld [vmem:[%s562_s1 + $0xe8] sm:$0xff]  ;;  %v112_v16 = vld [vmem:[%s562_s1 + $0x158] sm:$0xff] }
   0x6   :  { %225 = vmatpush.msra.mxu3 %v131_v7  ;;  %197 = vmatpush.msra.mxu2 %v114_v6  ;;  %v129_v14 = vld [vmem:[%s562_s1 + $0x1e0] sm:$0xff]  ;;  %v80_v17 = vld [vmem:[%s562_s1 + $0x58] sm:$0xff]  ;;  %v111_v20 = vld [vmem:[%s562_s1 + $0x150] sm:$0xff] }
   0x7   :  { %167 = vmatpush.msra.mxu1 %v99_v9  ;;  %139 = vmatpush.msra.mxu0 %v82_v8  ;;  %v97_v15 = vld [vmem:[%s562_s1 + $0xe0] sm:$0xff]  ;;  %v128_v18 = vld [vmem:[%s562_s1 + $0x1d8] sm:$0xff]  ;;  %v79_v21 = vld [vmem:[%s562_s1 + $0x50] sm:$0xff] }
   0x8   :  { %226 = vmatpush.msra.mxu3 %v130_v10  ;;  %198 = vmatpush.msra.mxu2 %v113_v11  ;;  %v96_v19 = vld [vmem:[%s562_s1 + $0xd8] sm:$0xff]  ;;  %v127_v22 = vld [vmem:[%s562_s1 + $0x1d0] sm:$0xff]  ;;  %v110_v24 = vld [vmem:[%s562_s1 + $0x148] sm:$0xff] }
   0x9   :  { %168 = vmatpush.msra.mxu1 %v98_v13  ;;  %140 = vmatpush.msra.mxu0 %v81_v12  ;;  %v95_v23 = vld [vmem:[%s562_s1 + $0xd0] sm:$0xff]  ;;  %v78_v25 = vld [vmem:[%s562_s1 + $0x48] sm:$0xff]  ;;  %v109_v28 = vld [vmem:[%s562_s1 + $0x140] sm:$0xff] }
   0xa   :  { %227 = vmatpush.msra.mxu3 %v129_v14  ;;  %199 = vmatpush.msra.mxu2 %v112_v16  ;;  %v126_v26 = vld [vmem:[%s562_s1 + $0x1c8] sm:$0xff]  ;;  %v77_v29 = vld [vmem:[%s562_s1 + $0x40] sm:$0xff]  ;;  %v108_v32 = vld [vmem:[%s562_s1 + $0x138] sm:$0xff] }
   0xb   :  { %169 = vmatpush.msra.mxu1 %v97_v15  ;;  %141 = vmatpush.msra.mxu0 %v80_v17  ;;  %v94_v27 = vld [vmem:[%s562_s1 + $0xc8] sm:$0xff]  ;;  %v125_v30 = vld [vmem:[%s562_s1 + $0x1c0] sm:$0xff]  ;;  %v76_v33 = vld [vmem:[%s562_s1 + $0x38] sm:$0xff] }
   0xc   :  { %228 = vmatpush.msra.mxu3 %v128_v18  ;;  %200 = vmatpush.msra.mxu2 %v111_v20  ;;  %v93_v31 = vld [vmem:[%s562_s1 + $0xc0] sm:$0xff]  ;;  %v124_v34 = vld [vmem:[%s562_s1 + $0x1b8] sm:$0xff]  ;;  %v107_v36 = vld [vmem:[%s562_s1 + $0x130] sm:$0xff] }
   0xd   :  { %170 = vmatpush.msra.mxu1 %v96_v19  ;;  %142 = vmatpush.msra.mxu0 %v79_v21  ;;  %v92_v35 = vld [vmem:[%s562_s1 + $0xb8] sm:$0xff]  ;;  %v75_v37 = vld [vmem:[%s562_s1 + $0x30] sm:$0xff]  ;;  %v106_v40 = vld [vmem:[%s562_s1 + $0x128] sm:$0xff] }
   0xe   :  { %229 = vmatpush.msra.mxu3 %v127_v22  ;;  %201 = vmatpush.msra.mxu2 %v110_v24  ;;  %v123_v38 = vld [vmem:[%s562_s1 + $0x1b0] sm:$0xff]  ;;  %v74_v41 = vld [vmem:[%s562_s1 + $0x28] sm:$0xff]  ;;  %v105_v44 = vld [vmem:[%s562_s1 + $0x120] sm:$0xff] }
   0xf   :  { %171 = vmatpush.msra.mxu1 %v95_v23  ;;  %143 = vmatpush.msra.mxu0 %v78_v25  ;;  %v91_v39 = vld [vmem:[%s562_s1 + $0xb0] sm:$0xff]  ;;  %v122_v42 = vld [vmem:[%s562_s1 + $0x1a8] sm:$0xff]  ;;  %v73_v45 = vld [vmem:[%s562_s1 + $0x20] sm:$0xff] }
  0x10   :  { %230 = vmatpush.msra.mxu3 %v126_v26  ;;  %202 = vmatpush.msra.mxu2 %v109_v28  ;;  %v90_v43 = vld [vmem:[%s562_s1 + $0xa8] sm:$0xff]  ;;  %v121_v46 = vld [vmem:[%s562_s1 + $0x1a0] sm:$0xff]  ;;  %v104_v48 = vld [vmem:[%s562_s1 + $0x118] sm:$0xff] }
  0x11   :  { %172 = vmatpush.msra.mxu1 %v94_v27  ;;  %144 = vmatpush.msra.mxu0 %v77_v29  ;;  %v89_v47 = vld [vmem:[%s562_s1 + $0xa0] sm:$0xff]  ;;  %v72_v49 = vld [vmem:[%s562_s1 + $0x18] sm:$0xff]  ;;  %v103_v52 = vld [vmem:[%s562_s1 + $0x110] sm:$0xff] }
  0x12   :  { %231 = vmatpush.msra.mxu3 %v125_v30  ;;  %203 = vmatpush.msra.mxu2 %v108_v32  ;;  %v120_v50 = vld [vmem:[%s562_s1 + $0x198] sm:$0xff]  ;;  %v71_v53 = vld [vmem:[%s562_s1 + $0x10] sm:$0xff]  ;;  %v102_v56 = vld [vmem:[%s562_s1 + $0x108] sm:$0xff] }
  0x13   :  { %173 = vmatpush.msra.mxu1 %v93_v31  ;;  %145 = vmatpush.msra.mxu0 %v76_v33  ;;  %v88_v51 = vld [vmem:[%s562_s1 + $0x98] sm:$0xff]  ;;  %v119_v54 = vld [vmem:[%s562_s1 + $0x190] sm:$0xff]  ;;  %v70_v57 = vld [vmem:[%s562_s1 + $0x8] sm:$0xff] }
  0x14   :  { %232 = vmatpush.msra.mxu3 %v124_v34  ;;  %204 = vmatpush.msra.mxu2 %v107_v36  ;;  %v87_v55 = vld [vmem:[%s562_s1 + $0x90] sm:$0xff]  ;;  %v118_v58 = vld [vmem:[%s562_s1 + $0x188] sm:$0xff]  ;;  %v101_v60 = vld [vmem:[%s562_s1 + $0x100] sm:$0xff] }
  0x15   :  { %174 = vmatpush.msra.mxu1 %v92_v35  ;;  %146 = vmatpush.msra.mxu0 %v75_v37  ;;  %v86_v59 = vld [vmem:[%s562_s1 + $0x88] sm:$0xff]  ;;  %v69_v61 = vld [vmem:[%s562_s1] sm:$0xff]  ;;  %v23_v62 = vld [vmem:[%s564_s0 + $0x10] sm:$0xff] }
  0x16   :  { %233 = vmatpush.msra.mxu3 %v123_v38  ;;  %205 = vmatpush.msra.mxu2 %v106_v40  ;;  %v117_v63 = vld [vmem:[%s562_s1 + $0x180] sm:$0xff]  ;;  %v24_v1 = vld [vmem:[%s564_s0 + $0x18] sm:$0xff]  ;;  %v22_v3 = vld [vmem:[%s564_s0 + $0x8] sm:$0xff] }
  0x17   :  { %175 = vmatpush.msra.mxu1 %v91_v39  ;;  %147 = vmatpush.msra.mxu0 %v74_v41  ;;  %v21_v0 = vld [vmem:[%s564_s0] sm:$0xff]  ;;  %v27_v4 = vld [vmem:[%s564_s0 + $0x30] sm:$0xff]  ;;  %v28_v6 = vld [vmem:[%s564_s0 + $0x38] sm:$0xff] }
  0x18   :  { %234 = vmatpush.msra.mxu3 %v122_v42  ;;  %206 = vmatpush.msra.mxu2 %v105_v44  ;;  %v85_v2 = vld [vmem:[%s562_s1 + $0x80] sm:$0xff]  ;;  %v26_v7 = vld [vmem:[%s564_s0 + $0x28] sm:$0xff]  ;;  %v31_v8 = vld [vmem:[%s564_s0 + $0x50] sm:$0xff] }
  0x19   :  { %176 = vmatpush.msra.mxu1 %v90_v43  ;;  %148 = vmatpush.msra.mxu0 %v73_v45  ;;  %v25_v5 = vld [vmem:[%s564_s0 + $0x20] sm:$0xff]  ;;  %v32_v10 = vld [vmem:[%s564_s0 + $0x58] sm:$0xff]  ;;  %v30_v11 = vld [vmem:[%s564_s0 + $0x48] sm:$0xff] }
  0x1a   :  { %235 = vmatpush.msra.mxu3 %v121_v46  ;;  %207 = vmatpush.msra.mxu2 %v104_v48  ;;  %v29_v9 = vld [vmem:[%s564_s0 + $0x40] sm:$0xff]  ;;  %v35_v12 = vld [vmem:[%s564_s0 + $0x70] sm:$0xff]  ;;  %v36_v14 = vld [vmem:[%s564_s0 + $0x78] sm:$0xff] }
  0x1b   :  { %177 = vmatpush.msra.mxu1 %v89_v47  ;;  %149 = vmatpush.msra.mxu0 %v72_v49  ;;  %v33_v13 = vld [vmem:[%s564_s0 + $0x60] sm:$0xff]  ;;  %v34_v15 = vld [vmem:[%s564_s0 + $0x68] sm:$0xff]  ;;  %v255_v44 = vld [vmem:[%s565_s3 + $0x10] sm:$0xff] }
  0x1c   :  { %236 = vmatpush.msra.mxu3 %v120_v50  ;;  %208 = vmatpush.msra.mxu2 %v103_v52  ;;  %v269_v16 = vld [vmem:[%s563_s2] ss:$0 sm:$0xff]  ;;  %v254_v34 = vld [vmem:[%s565_s3 + $0x8] sm:$0xff] }
  0x1d   :  { %178 = vmatpush.msra.mxu1 %v88_v51  ;;  %150 = vmatpush.msra.mxu0 %v71_v53  ;;  %v253_v24 = vld [vmem:[%s565_s3] sm:$0xff] }
  0x1e   :  { %237 = vmatpush.msra.mxu3 %v119_v54  ;;  %209 = vmatpush.msra.mxu2 %v102_v56  ;;  %v256_v54 = vld [vmem:[%s565_s3 + $0x18] sm:$0xff] }
  0x1f   :  { %179 = vmatpush.msra.mxu1 %v87_v55  ;;  %151 = vmatpush.msra.mxu0 %v70_v57 }
  0x20   :  { %238 = vmatpush.msra.mxu3 %v118_v58  ;;  %210 = vmatpush.msra.mxu2 %v101_v60 }
  0x21   :  { %180 = vmatpush.msra.mxu1 %v86_v59  ;;  %152 = vmatpush.msra.mxu0 %v69_v61 }
  0x22   :  { %211 = vmatmul.f32.vlgmr.msra.gmra.mxu2 %v23_v62  ;;  %239 = vmatpush.msra.mxu3 %v117_v63 }
  0x23   :  { %153 = vmatmul.f32.vlgmr.msra.gmra.mxu0 %v21_v0  ;;  %240 = vmatmul.f32.vlgmr.msra.gmra.mxu3 %v24_v1 }
  0x24   :  { %181 = vmatpush.msra.mxu1 %v85_v2 }
  0x25   :  { %182 = vmatmul.f32.vlgmr.msra.gmra.mxu1 %v22_v3 }
  0x2a   :  { %214 = vmatmul.f32.gmra.mxu2 %v27_v4 }
  0x2b   :  { %156 = vmatmul.f32.gmra.mxu0 %v25_v5  ;;  %243 = vmatmul.f32.gmra.mxu3 %v28_v6 }
  0x2d   :  { %185 = vmatmul.f32.gmra.mxu1 %v26_v7 }
  0x32   :  { %217 = vmatmul.f32.gmra.mxu2 %v31_v8 }
  0x33   :  { %159 = vmatmul.f32.gmra.mxu0 %v29_v9  ;;  %246 = vmatmul.f32.gmra.mxu3 %v32_v10 }
  0x35   :  { %188 = vmatmul.f32.gmra.mxu1 %v30_v11 }
  0x3a   :  { %220 = vmatmul.f32.gmra.mxu2 %v35_v12 }
  0x3b   :  { %162 = vmatmul.f32.gmra.mxu0 %v33_v13  ;;  %249 = vmatmul.f32.gmra.mxu3 %v36_v14 }
  0x3d   :  { %191 = vmatmul.f32.gmra.mxu1 %v34_v15 }
  0xa0   :  { %v154_v17 = vpop.f32.mrf.mxu0 }
  0xa1   :  { %v155_v18 = vadd.f32 %v269_v16, %v154_v17 }
  0xa2   :  { %v183_v19 = vpop.f32.mrf.mxu1 }
  0xa3   :  { %v184_v20 = vadd.f32 %v183_v19, %v155_v18 }
  0xa5   :  { %v212_v21 = vpop.f32.mrf.mxu2 }
  0xa6   :  { %v213_v22 = vadd.f32 %v212_v21, %v184_v20  ;;  %v241_v23 = vpop.f32.mrf.mxu3 }
  0xa8   :  { %v242_v25 = vadd.f32 %v241_v23, %v213_v22  ;;  %v157_v26 = vpop.f32.mrf.mxu0 }
  0xa9   :  { %v158_v27 = vadd.f32 %v269_v16, %v157_v26 }
  0xaa   :  { %v257_v28 = vadd.f32 %v253_v24, %v242_v25  ;;  %v186_v29 = vpop.f32.mrf.mxu1 }
  0xab   :  { %v187_v30 = vadd.f32 %v186_v29, %v158_v27 }
  0xac   :  { %261 = vst [vmem:[%s566_s4] sm:$0xff] %v257_v28 }
  0xad   :  { %v215_v31 = vpop.f32.mrf.mxu2 }
  0xae   :  { %v216_v32 = vadd.f32 %v215_v31, %v187_v30  ;;  %v244_v33 = vpop.f32.mrf.mxu3 }
  0xb0   :  { %v245_v35 = vadd.f32 %v244_v33, %v216_v32  ;;  %v160_v36 = vpop.f32.mrf.mxu0 }
  0xb1   :  { %v161_v37 = vadd.f32 %v269_v16, %v160_v36 }
  0xb2   :  { %v258_v38 = vadd.f32 %v254_v34, %v245_v35  ;;  %v189_v39 = vpop.f32.mrf.mxu1 }
  0xb3   :  { %v190_v40 = vadd.f32 %v189_v39, %v161_v37 }
  0xb4   :  { %262 = vst [vmem:[%s566_s4 + $0x8] sm:$0xff] %v258_v38 }
  0xb5   :  { %v218_v41 = vpop.f32.mrf.mxu2 }
  0xb6   :  { %v219_v42 = vadd.f32 %v218_v41, %v190_v40  ;;  %v247_v43 = vpop.f32.mrf.mxu3 }
  0xb8   :  { %v248_v45 = vadd.f32 %v247_v43, %v219_v42  ;;  %v163_v46 = vpop.f32.mrf.mxu0 }
  0xb9   :  { %v164_v47 = vadd.f32 %v269_v16, %v163_v46 }
  0xba   :  { %v259_v48 = vadd.f32 %v255_v44, %v248_v45  ;;  %v192_v49 = vpop.f32.mrf.mxu1 }
  0xbb   :  { %v193_v50 = vadd.f32 %v192_v49, %v164_v47 }
  0xbc   :  { %263 = vst [vmem:[%s566_s4 + $0x10] sm:$0xff] %v259_v48 }
  0xbd   :  { %v221_v51 = vpop.f32.mrf.mxu2 }
  0xbe   :  { %v222_v52 = vadd.f32 %v221_v51, %v193_v50  ;;  %v250_v53 = vpop.f32.mrf.mxu3 }
  0xc0   :  { %v251_v55 = vadd.f32 %v250_v53, %v222_v52 }
  0xc2   :  { %v260_v56 = vadd.f32 %v256_v54, %v251_v55 }
  0xc4   :  { %264 = vst [vmem:[%s566_s4 + $0x18] sm:$0xff] %v260_v56 }

// kernel: gpt2_forward.21
= control target key start
LH: loop header
LB: loop body
LE: loop exit
PB: predicated region body
PF: predicated region fallthrough
CT: control target
= control target key end

     0   :  { %s505_s0 = inlined_call_operand.vmem [shape: f32[32,128], index: 0, kind: input, shape index: {}]   ;;  %s506_s1 = inlined_call_operand.vmem [shape: f32[128,512], index: 1, kind: input, shape index: {}]   ;;  %s507_s2 = inlined_call_operand.vmem [shape: f32[1,512], index: 2, kind: input, shape index: {}]   ;;  %s508_s3 = inlined_call_operand.hbm [shape: f32[32,512], index: 3, kind: output, shape index: {}]  }
   0x1   :  { %v81_v0 = vld [vmem:[%s506_s1 + $0x1f0] sm:$0xff]  ;;  %v82_v1 = vld [vmem:[%s506_s1 + $0x1f8] sm:$0xff]  ;;  %v79_v6 = vld [vmem:[%s506_s1 + $0x1e0] sm:$0xff] }
   0x2   :  { %v77_v2 = vld [vmem:[%s506_s1 + $0x1d0] sm:$0xff]  ;;  %151 = vmatpush.msra.mxu2 %v81_v0  ;;  %180 = vmatpush.msra.mxu3 %v82_v1  ;;  %v78_v3 = vld [vmem:[%s506_s1 + $0x1d8] sm:$0xff]  ;;  %v80_v7 = vld [vmem:[%s506_s1 + $0x1e8] sm:$0xff] }
   0x3   :  { %v73_v4 = vld [vmem:[%s506_s1 + $0x1b0] sm:$0xff]  ;;  %v74_v5 = vld [vmem:[%s506_s1 + $0x1b8] sm:$0xff]  ;;  %v75_v8 = vld [vmem:[%s506_s1 + $0x1c0] sm:$0xff]  ;;  %93 = vmatpush.msra.mxu0 %v79_v6  ;;  %122 = vmatpush.msra.mxu1 %v80_v7 }
   0x4   :  { %152 = vmatpush.msra.mxu2 %v77_v2  ;;  %181 = vmatpush.msra.mxu3 %v78_v3  ;;  %v76_v9 = vld [vmem:[%s506_s1 + $0x1c8] sm:$0xff]  ;;  %v69_v10 = vld [vmem:[%s506_s1 + $0x190] sm:$0xff]  ;;  %v70_v11 = vld [vmem:[%s506_s1 + $0x198] sm:$0xff] }
   0x5   :  { %v71_v12 = vld [vmem:[%s506_s1 + $0x1a0] sm:$0xff]  ;;  %v72_v13 = vld [vmem:[%s506_s1 + $0x1a8] sm:$0xff]  ;;  %94 = vmatpush.msra.mxu0 %v75_v8  ;;  %123 = vmatpush.msra.mxu1 %v76_v9  ;;  %v65_v14 = vld [vmem:[%s506_s1 + $0x170] sm:$0xff] }
   0x6   :  { %153 = vmatpush.msra.mxu2 %v73_v4  ;;  %182 = vmatpush.msra.mxu3 %v74_v5  ;;  %v66_v15 = vld [vmem:[%s506_s1 + $0x178] sm:$0xff]  ;;  %v67_v16 = vld [vmem:[%s506_s1 + $0x180] sm:$0xff]  ;;  %v68_v17 = vld [vmem:[%s506_s1 + $0x188] sm:$0xff] }
   0x7   :  { %95 = vmatpush.msra.mxu0 %v71_v12  ;;  %124 = vmatpush.msra.mxu1 %v72_v13  ;;  %v61_v18 = vld [vmem:[%s506_s1 + $0x150] sm:$0xff]  ;;  %v62_v19 = vld [vmem:[%s506_s1 + $0x158] sm:$0xff]  ;;  %v63_v20 = vld [vmem:[%s506_s1 + $0x160] sm:$0xff] }
   0x8   :  { %154 = vmatpush.msra.mxu2 %v69_v10  ;;  %183 = vmatpush.msra.mxu3 %v70_v11  ;;  %v64_v21 = vld [vmem:[%s506_s1 + $0x168] sm:$0xff]  ;;  %v57_v22 = vld [vmem:[%s506_s1 + $0x130] sm:$0xff]  ;;  %v58_v23 = vld [vmem:[%s506_s1 + $0x138] sm:$0xff] }
   0x9   :  { %96 = vmatpush.msra.mxu0 %v67_v16  ;;  %125 = vmatpush.msra.mxu1 %v68_v17  ;;  %v59_v24 = vld [vmem:[%s506_s1 + $0x140] sm:$0xff]  ;;  %v60_v25 = vld [vmem:[%s506_s1 + $0x148] sm:$0xff]  ;;  %v53_v26 = vld [vmem:[%s506_s1 + $0x110] sm:$0xff] }
   0xa   :  { %155 = vmatpush.msra.mxu2 %v65_v14  ;;  %184 = vmatpush.msra.mxu3 %v66_v15  ;;  %v54_v27 = vld [vmem:[%s506_s1 + $0x118] sm:$0xff]  ;;  %v55_v28 = vld [vmem:[%s506_s1 + $0x120] sm:$0xff]  ;;  %v56_v29 = vld [vmem:[%s506_s1 + $0x128] sm:$0xff] }
   0xb   :  { %97 = vmatpush.msra.mxu0 %v63_v20  ;;  %126 = vmatpush.msra.mxu1 %v64_v21  ;;  %v49_v30 = vld [vmem:[%s506_s1 + $0xf0] sm:$0xff]  ;;  %v50_v31 = vld [vmem:[%s506_s1 + $0xf8] sm:$0xff]  ;;  %v51_v32 = vld [vmem:[%s506_s1 + $0x100] sm:$0xff] }
   0xc   :  { %156 = vmatpush.msra.mxu2 %v61_v18  ;;  %185 = vmatpush.msra.mxu3 %v62_v19  ;;  %v52_v33 = vld [vmem:[%s506_s1 + $0x108] sm:$0xff]  ;;  %v45_v34 = vld [vmem:[%s506_s1 + $0xd0] sm:$0xff]  ;;  %v46_v35 = vld [vmem:[%s506_s1 + $0xd8] sm:$0xff] }
   0xd   :  { %98 = vmatpush.msra.mxu0 %v59_v24  ;;  %127 = vmatpush.msra.mxu1 %v60_v25  ;;  %v47_v36 = vld [vmem:[%s506_s1 + $0xe0] sm:$0xff]  ;;  %v48_v37 = vld [vmem:[%s506_s1 + $0xe8] sm:$0xff]  ;;  %v41_v38 = vld [vmem:[%s506_s1 + $0xb0] sm:$0xff] }
   0xe   :  { %157 = vmatpush.msra.mxu2 %v57_v22  ;;  %186 = vmatpush.msra.mxu3 %v58_v23  ;;  %v42_v39 = vld [vmem:[%s506_s1 + $0xb8] sm:$0xff]  ;;  %v43_v40 = vld [vmem:[%s506_s1 + $0xc0] sm:$0xff]  ;;  %v44_v41 = vld [vmem:[%s506_s1 + $0xc8] sm:$0xff] }
   0xf   :  { %99 = vmatpush.msra.mxu0 %v55_v28  ;;  %128 = vmatpush.msra.mxu1 %v56_v29  ;;  %v37_v42 = vld [vmem:[%s506_s1 + $0x90] sm:$0xff]  ;;  %v38_v43 = vld [vmem:[%s506_s1 + $0x98] sm:$0xff]  ;;  %v39_v44 = vld [vmem:[%s506_s1 + $0xa0] sm:$0xff] }
  0x10   :  { %158 = vmatpush.msra.mxu2 %v53_v26  ;;  %187 = vmatpush.msra.mxu3 %v54_v27  ;;  %v40_v45 = vld [vmem:[%s506_s1 + $0xa8] sm:$0xff]  ;;  %v33_v46 = vld [vmem:[%s506_s1 + $0x70] sm:$0xff]  ;;  %v34_v47 = vld [vmem:[%s506_s1 + $0x78] sm:$0xff] }
  0x11   :  { %100 = vmatpush.msra.mxu0 %v51_v32  ;;  %129 = vmatpush.msra.mxu1 %v52_v33 }
  0x12   :  { %159 = vmatpush.msra.mxu2 %v49_v30  ;;  %188 = vmatpush.msra.mxu3 %v50_v31 }
  0x13   :  { %101 = vmatpush.msra.mxu0 %v47_v36  ;;  %130 = vmatpush.msra.mxu1 %v48_v37 }
  0x14   :  { %160 = vmatpush.msra.mxu2 %v45_v34  ;;  %189 = vmatpush.msra.mxu3 %v46_v35 }
  0x15   :  { %102 = vmatpush.msra.mxu0 %v43_v40  ;;  %131 = vmatpush.msra.mxu1 %v44_v41 }
  0x16   :  { %161 = vmatpush.msra.mxu2 %v41_v38  ;;  %190 = vmatpush.msra.mxu3 %v42_v39 }
  0x17   :  { %8 = vsyncpa [#allocation3], 0  ;;  %v35_v48 = vld [vmem:[%s506_s1 + $0x80] sm:$0xff]  ;;  %v36_v49 = vld [vmem:[%s506_s1 + $0x88] sm:$0xff]  ;;  %103 = vmatpush.msra.mxu0 %v39_v44  ;;  %132 = vmatpush.msra.mxu1 %v40_v45  ;;  %s231_s16 = sshll.u32 %s508_s3, 4  ;;  %s273_s17 = smov 512   ;;  %s232_s16 = int_to_ptr.hbm [resolvable:$true] %s231_s16 }
  0x18   :  { %162 = vmatpush.msra.mxu2 %v37_v42  ;;  %191 = vmatpush.msra.mxu3 %v38_v43  ;;  %v29_v50 = vld [vmem:[%s506_s1 + $0x50] sm:$0xff]  ;;  %v30_v51 = vld [vmem:[%s506_s1 + $0x58] sm:$0xff]  ;;  %v31_v52 = vld [vmem:[%s506_s1 + $0x60] sm:$0xff]  ;;  %s274_s18 = smov 32  }
  0x19   :  { %v32_v53 = vld [vmem:[%s506_s1 + $0x68] sm:$0xff]  ;;  %104 = vmatpush.msra.mxu0 %v35_v48  ;;  %133 = vmatpush.msra.mxu1 %v36_v49  ;;  %v25_v54 = vld [vmem:[%s506_s1 + $0x30] sm:$0xff]  ;;  %v26_v55 = vld [vmem:[%s506_s1 + $0x38] sm:$0xff] }
  0x1a   :  { %163 = vmatpush.msra.mxu2 %v33_v46  ;;  %192 = vmatpush.msra.mxu3 %v34_v47  ;;  %v27_v56 = vld [vmem:[%s506_s1 + $0x40] sm:$0xff]  ;;  %v28_v57 = vld [vmem:[%s506_s1 + $0x48] sm:$0xff]  ;;  %v21_v58 = vld [vmem:[%s506_s1 + $0x10] sm:$0xff] }
  0x1b   :  { %105 = vmatpush.msra.mxu0 %v31_v52  ;;  %134 = vmatpush.msra.mxu1 %v32_v53  ;;  %v22_v59 = vld [vmem:[%s506_s1 + $0x18] sm:$0xff]  ;;  %v15_v60 = vld [vmem:[%s505_s0] sm:$0xff]  ;;  %v24_v62 = vld [vmem:[%s506_s1 + $0x28] sm:$0xff] }
  0x1c   :  { %164 = vmatpush.msra.mxu2 %v29_v50  ;;  %193 = vmatpush.msra.mxu3 %v30_v51  ;;  %v23_v61 = vld [vmem:[%s506_s1 + $0x20] sm:$0xff]  ;;  %v20_v0 = vld [vmem:[%s506_s1 + $0x8] sm:$0xff]  ;;  %v17_v2 = vld [vmem:[%s505_s0 + $0x10] sm:$0xff] }
  0x1d   :  { %106 = vmatpush.msra.mxu0 %v27_v56  ;;  %135 = vmatpush.msra.mxu1 %v28_v57  ;;  %v19_v63 = vld [vmem:[%s506_s1] sm:$0xff]  ;;  %v16_v1 = vld [vmem:[%s505_s0 + $0x8] sm:$0xff]  ;;  %v18_v3 = vld [vmem:[%s505_s0 + $0x18] sm:$0xff]  ;;  %s272_s0 = smov [#allocation2]  }
  0x1e   :  { %165 = vmatpush.msra.mxu2 %v25_v54  ;;  %194 = vmatpush.msra.mxu3 %v26_v55  ;;  %v83_v4 = vld [vmem:[%s507_s2] sm:$0xf]  ;;  %s229_s2 = sshll.u32 %s272_s0, 4  ;;  %s230_s2 = int_to_ptr.vmem [resolvable:$true] %s229_s2 }
  0x1f   :  { %107 = vmatpush.msra.mxu0 %v23_v61  ;;  %136 = vmatpush.msra.mxu1 %v24_v62  ;;  %v85_v5 = vperm.slane %v83_v4, 0  ;;  %v86_v6 = vperm.slane %v83_v4, 1  ;;  %v87_v7 = vperm.slane %v83_v4, 2  ;;  %v88_v8 = vperm.slane %v83_v4, 3 }
  0x20   :  { %166 = vmatpush.msra.mxu2 %v21_v58  ;;  %195 = vmatpush.msra.mxu3 %v22_v59 }
  0x21   :  { %167 = vmatmul.f32.vlgmr.msra.gmra.mxu2 %v15_v60  ;;  %196 = vmatmul.f32.vlgmr.msra.gmra.mxu3 %v15_v60 }
  0x22   :  { %108 = vmatpush.msra.mxu0 %v19_v63  ;;  %137 = vmatpush.msra.mxu1 %v20_v0 }
  0x23   :  { %109 = vmatmul.f32.vlgmr.msra.gmra.mxu0 %v15_v60  ;;  %138 = vmatmul.f32.vlgmr.msra.gmra.mxu1 %v15_v60 }
  0x29   :  { %170 = vmatmul.f32.gmra.mxu2 %v16_v1  ;;  %199 = vmatmul.f32.gmra.mxu3 %v16_v1 }
  0x2b   :  { %112 = vmatmul.f32.gmra.mxu0 %v16_v1  ;;  %141 = vmatmul.f32.gmra.mxu1 %v16_v1 }
  0x31   :  { %173 = vmatmul.f32.gmra.mxu2 %v17_v2  ;;  %202 = vmatmul.f32.gmra.mxu3 %v17_v2 }
  0x33   :  { %115 = vmatmul.f32.gmra.mxu0 %v17_v2  ;;  %144 = vmatmul.f32.gmra.mxu1 %v17_v2 }
  0x39   :  { %176 = vmatmul.f32.gmra.mxu2 %v18_v3  ;;  %205 = vmatmul.f32.gmra.mxu3 %v18_v3 }
  0x3b   :  { %118 = vmatmul.f32.gmra.mxu0 %v18_v3  ;;  %147 = vmatmul.f32.gmra.mxu1 %v18_v3 }
  0xa0   :  { %v110_v9 = vpop.f32.mrf.mxu0  ;;  %v139_v10 = vpop.f32.mrf.mxu1 }
  0xa1   :  { %v111_v11 = vadd.f32 %v110_v9, %v85_v5  ;;  %v140_v12 = vadd.f32 %v139_v10, %v86_v6 }
  0xa3   :  { %209 = vst [vmem:[#allocation2] sm:$0xff] %v111_v11 }
  0xa4   :  { %v168_v13 = vpop.f32.mrf.mxu2  ;;  %v197_v14 = vpop.f32.mrf.mxu3  ;;  %210 = vst [vmem:[#allocation2 + $0x8] sm:$0xff] %v140_v12 }
  0xa5   :  { %v169_v15 = vadd.f32 %v168_v13, %v87_v7  ;;  %v198_v16 = vadd.f32 %v197_v14, %v88_v8 }
  0xa7   :  { %211 = vst [vmem:[#allocation2 + $0x10] sm:$0xff] %v169_v15 }
  0xa8   :  { %212 = vst [vmem:[#allocation2 + $0x18] sm:$0xff] %v198_v16  ;;  %v113_v17 = vpop.f32.mrf.mxu0  ;;  %v142_v18 = vpop.f32.mrf.mxu1 }
  0xa9   :  { %v114_v19 = vadd.f32 %v113_v17, %v85_v5  ;;  %v143_v20 = vadd.f32 %v142_v18, %v86_v6 }
  0xab   :  { %213 = vst [vmem:[#allocation2 + $0x20] sm:$0xff] %v114_v19 }
  0xac   :  { %v171_v21 = vpop.f32.mrf.mxu2  ;;  %v200_v22 = vpop.f32.mrf.mxu3  ;;  %214 = vst [vmem:[#allocation2 + $0x28] sm:$0xff] %v143_v20 }
  0xad   :  { %v172_v23 = vadd.f32 %v171_v21, %v87_v7  ;;  %v201_v24 = vadd.f32 %v200_v22, %v88_v8 }
  0xaf   :  { %215 = vst [vmem:[#allocation2 + $0x30] sm:$0xff] %v172_v23 }
  0xb0   :  { %216 = vst [vmem:[#allocation2 + $0x38] sm:$0xff] %v201_v24  ;;  %v116_v25 = vpop.f32.mrf.mxu0  ;;  %v145_v26 = vpop.f32.mrf.mxu1 }
  0xb1   :  { %v117_v27 = vadd.f32 %v116_v25, %v85_v5  ;;  %v146_v28 = vadd.f32 %v145_v26, %v86_v6 }
  0xb3   :  { %217 = vst [vmem:[#allocation2 + $0x40] sm:$0xff] %v117_v27 }
  0xb4   :  { %v174_v29 = vpop.f32.mrf.mxu2  ;;  %v203_v30 = vpop.f32.mrf.mxu3  ;;  %218 = vst [vmem:[#allocation2 + $0x48] sm:$0xff] %v146_v28 }
  0xb5   :  { %v175_v31 = vadd.f32 %v174_v29, %v87_v7  ;;  %v204_v32 = vadd.f32 %v203_v30, %v88_v8 }
  0xb7   :  { %219 = vst [vmem:[#allocation2 + $0x50] sm:$0xff] %v175_v31 }
  0xb8   :  { %220 = vst [vmem:[#allocation2 + $0x58] sm:$0xff] %v204_v32  ;;  %v119_v33 = vpop.f32.mrf.mxu0  ;;  %v148_v34 = vpop.f32.mrf.mxu1 }
  0xb9   :  { %v120_v35 = vadd.f32 %v119_v33, %v85_v5  ;;  %v149_v36 = vadd.f32 %v148_v34, %v86_v6 }
  0xbb   :  { %221 = vst [vmem:[#allocation2 + $0x60] sm:$0xff] %v120_v35 }
  0xbc   :  { %v177_v37 = vpop.f32.mrf.mxu2  ;;  %v206_v38 = vpop.f32.mrf.mxu3  ;;  %222 = vst [vmem:[#allocation2 + $0x68] sm:$0xff] %v149_v36 }
  0xbd   :  { %v178_v39 = vadd.f32 %v177_v37, %v87_v7  ;;  %v207_v40 = vadd.f32 %v206_v38, %v88_v8 }
  0xbf   :  { %223 = vst [vmem:[#allocation2 + $0x70] sm:$0xff] %v178_v39 }
  0xc0   :  { %224 = vst [vmem:[#allocation2 + $0x78] sm:$0xff] %v207_v40 }
  0xc1   :  { %237 = dma.vmem_to_hbm [thread:$0]  %s230_s2, 2048, %s232_s16, [#allocation3], %s273_s17, %s273_s17, %s274_s18  }
  0xc2   :  { %270 = dma.done.wait [#allocation3], 2048  }
  0xc3   :  { %271 = vsyncadd [#allocation3], 4294965248 }
  0xc4   :  { %242 = vsyncpa [#allocation3], 1 }

</bundles_post_ra>
